<compile_context>
chip_gen: v7x
topology: tpu7x:2x2x1
jax: 0.10.0
libtpu: 0.0.40
codegen_flags: <defaults>
</compile_context>

<pallas_src>
import math

import jax
import jax.numpy as jnp
from jax.experimental import pallas as pl
from jax.experimental.pallas import tpu as pltpu


# ----------------------------------------------------------------------------
# Fused forward kernel
# ----------------------------------------------------------------------------
def _make_kernel(num_layers, pool, leaky_alpha, use_tanh, n_inputs):
    L, P = num_layers, pool

    def kernel(*refs):
        in_refs = refs[:n_inputs]
        o_ref = refs[n_inputs]
        scratch = refs[n_inputs + 1:]

        it = iter(in_refs)
        x_ref = next(it)
        down = [(next(it), next(it)) for _ in range(L + 1)]             # (w, b)
        ups = [tuple(next(it) for _ in range(5)) for _ in range(L)]     # (wt, bt, wcx, wcs, bc)
        wfx_ref, wfs_ref, bf_ref = next(it), next(it), next(it)

        si = iter(scratch)
        halo_down = [next(si) for _ in range(L + 1)]  # zero-edged conv inputs (encoder)
        act_buf = [next(si) for _ in range(L)]        # full-res activations (max-pool source)
        halo_up = [next(si) for _ in range(L)]        # conv-transpose output + halo (decoder)
        halo_skip = [next(si) for _ in range(L)]      # zero-edged skip operand (decoder)

        def leaky(v):
            return jnp.where(v > 0, v, leaky_alpha * v)

        def fill_halo(buf, xv, pad):
            """buf <- zeros(pad) ++ xv ++ zeros(rest): only the edges are zeroed."""
            T = xv.shape[0]
            C = buf.shape[1]
            if pad > 0:
                buf[0:pad, :] = jnp.zeros((pad, C), jnp.float32)
            tail = buf.shape[0] - pad - T
            if tail > 0:
                buf[pad + T:, :] = jnp.zeros((tail, C), jnp.float32)
            buf[pad:pad + T, :] = xv

        def conv_taps(buf, w_ref):
            """'same' Conv1d: sum_k buf[k:k+T] @ w[k], f32 MXU accumulation."""
            K = w_ref.shape[0]
            T = buf.shape[0] - (K - 1)
            acc = jnp.zeros((T, w_ref.shape[2]), jnp.float32)
            for k in range(K):
                acc = acc + jnp.dot(buf[k:k + T, :], w_ref[k],
                                    preferred_element_type=jnp.float32)
            return acc

        # ---------------- encoder ----------------
        xv = x_ref[...]                      # (T0, C_in)
        for i in range(L):
            w_ref, b_ref = down[i]
            pad = (w_ref.shape[0] - 1) // 2
            fill_halo(halo_down[i], xv, pad)
            y = conv_taps(halo_down[i], w_ref) + b_ref[...]

            # Pre-activation skip (matches the reference): stash it straight into
            # the decoder's zero-padded skip halo so it never stays live in vregs.
            dec_j = L - 1 - i
            skip_pad = (ups[dec_j][3].shape[0] - 1) // 2     # decoder conv kernel
            fill_halo(halo_skip[dec_j], y, skip_pad)

            act_buf[i][...] = leaky(y)       # fused LeakyReLU
            # fused MaxPool1d(P, stride=P): P strided reads of the activated output
            Tq = y.shape[0] // P
            m = act_buf[i][pl.ds(0, Tq, stride=P), :]
            for r in range(1, P):
                m = jnp.maximum(m, act_buf[i][pl.ds(r, Tq, stride=P), :])
            xv = m                           # dropout == identity (eval mode)

        # bottleneck conv (no activation, matching the reference forward)
        w_ref, b_ref = down[L]
        pad = (w_ref.shape[0] - 1) // 2
        fill_halo(halo_down[L], xv, pad)
        xv = conv_taps(halo_down[L], w_ref) + b_ref[...]

        # ---------------- decoder ----------------
        for j in range(L):
            wt_ref, bt_ref, wcx_ref, wcs_ref, bc_ref = ups[j]
            pad = (wcx_ref.shape[0] - 1) // 2
            T_prev = xv.shape[0]
            T_up = T_prev * P

            # ConvTranspose1d(C, C, kernel=P, stride=P): P phase matmuls stored
            # interleaved (stride-P stores) straight into the next conv's halo
            # buffer.  Only the head/tail halo rows need zeroing (the P phases
            # cover rows [pad, pad+T_up) exactly); any unfilled tail rows stay
            # zero which reproduces F.pad(x, (0, diff)).
            ub = halo_up[j]
            C_up = ub.shape[1]
            if pad > 0:
                ub[0:pad, :] = jnp.zeros((pad, C_up), jnp.float32)
            tail = ub.shape[0] - pad - T_up
            if tail > 0:
                ub[pad + T_up:, :] = jnp.zeros((tail, C_up), jnp.float32)
            for r in range(P):
                yr = jnp.dot(xv, wt_ref[r],
                             preferred_element_type=jnp.float32) + bt_ref[...]
                ub[pl.ds(pad + r, T_prev, stride=P), :] = yr

            # channel concat replaced by split-weight convolution (sum of two convs)
            y = (conv_taps(ub, wcx_ref) + conv_taps(halo_skip[j], wcs_ref)
                 + bc_ref[...])
            xv = leaky(y)                    # dropout == identity (eval mode)

        # ---------------- final 1x1 conv over cat([x, input]) ----------------
        y = (jnp.dot(xv, wfx_ref[...], preferred_element_type=jnp.float32)
             + jnp.dot(x_ref[...], wfs_ref[...], preferred_element_type=jnp.float32)
             + bf_ref[...])
        if use_tanh:
            y = jnp.tanh(y)
        o_ref[...] = y.astype(o_ref.dtype)

    return kernel


# ----------------------------------------------------------------------------
# Wrapper: weight layout prep + pallas_call
# ----------------------------------------------------------------------------
def wave_unet_forward(params, x_ncl, num_layers, pool_size,
                      leaky_alpha=0.2, use_tanh=True):
    """x_ncl: (B, C_in, T) float32 -> (B, C_out, T) float32 (NCL, like PyTorch)."""
    L, P = num_layers, pool_size
    B, C_in, T = x_ncl.shape
    x = jnp.transpose(x_ncl, (0, 2, 1)).astype(jnp.float32)     # NLC

    inputs = [x]
    in_specs = [pl.BlockSpec((None, T, C_in), lambda b: (b, 0, 0))]

    def add_full(arr):
        arr = arr.astype(jnp.float32)
        inputs.append(arr)
        in_specs.append(pl.BlockSpec(arr.shape, lambda b, _n=arr.ndim: (0,) * _n))

    # encoder weights: (Cout, Cin, K) -> (K, Cin, Cout)
    down_T, t = [], T
    for i in range(L + 1):
        w, b = params["down"][i]
        add_full(jnp.transpose(w, (2, 1, 0)))
        add_full(b.reshape(1, -1))
        down_T.append(t)
        if i < L:
            t = t // P

    # decoder weights
    for j in range(L):
        wt, bt = params["up_tr"][j]          # ConvTranspose1d weight: (Cin, Cout, P)
        wc, bc = params["up_conv"][j]        # Conv1d weight: (Cout2, C_up + C_skip, 5)
        c_up = wt.shape[1]
        add_full(jnp.transpose(wt, (2, 0, 1)))                  # (P, Cin, Cout)
        add_full(bt.reshape(1, -1))
        add_full(jnp.transpose(wc[:, :c_up, :], (2, 1, 0)))     # x-part    (5, C_up, Cout2)
        add_full(jnp.transpose(wc[:, c_up:, :], (2, 1, 0)))     # skip-part (5, C_skip, Cout2)
        add_full(bc.reshape(1, -1))

    # final 1x1 conv, split into (decoder, input-skip) parts
    wf, bf = params["final"]                 # (C_out, C_last + C_in, 1)
    c_last = (params["up_conv"][L - 1][0].shape[0] if L > 0
              else params["down"][L][0].shape[0])
    add_full(jnp.transpose(wf[:, :c_last, 0]))                  # (C_last, C_out)
    add_full(jnp.transpose(wf[:, c_last:, 0]))                  # (C_in,   C_out)
    add_full(bf.reshape(1, -1))
    c_out = wf.shape[0]

    # VMEM scratch: halo buffers + activation buffers (all tiny; total << 1 MiB)
    scratch = []
    for i in range(L + 1):                                       # encoder halos
        w = params["down"][i][0]
        scratch.append(pltpu.VMEM((down_T[i] + w.shape[2] - 1, w.shape[1]), jnp.float32))
    for i in range(L):                                           # max-pool sources
        scratch.append(pltpu.VMEM((down_T[i], params["down"][i][0].shape[0]), jnp.float32))
    for j in range(L):                                           # decoder up halos
        kc = params["up_conv"][j][0].shape[2]
        scratch.append(pltpu.VMEM((down_T[L - 1 - j] + kc - 1,
                                   params["up_tr"][j][0].shape[1]), jnp.float32))
    for j in range(L):                                           # decoder skip halos
        kc = params["up_conv"][j][0].shape[2]
        i_skip = L - 1 - j
        scratch.append(pltpu.VMEM((down_T[i_skip] + kc - 1,
                                   params["down"][i_skip][0].shape[0]), jnp.float32))

    kernel = _make_kernel(L, P, leaky_alpha, use_tanh, len(inputs))
    out = pl.pallas_call(
        kernel,
        out_shape=jax.ShapeDtypeStruct((B, T, c_out), jnp.float32),
        grid=(B,),
        in_specs=in_specs,
        out_specs=pl.BlockSpec((None, T, c_out), lambda b: (b, 0, 0)),
        scratch_shapes=scratch,
        compiler_params=pltpu.CompilerParams(
            dimension_semantics=("parallel",)),   # split batch across TCs on v7x
    )(*inputs)
    return jnp.transpose(out, (0, 2, 1))          # back to NCL


# ----------------------------------------------------------------------------
# Deterministic parameter init (shapes mirror the nn.Module __init__)
# ----------------------------------------------------------------------------
def init_params(key, num_layers, nif, pool, in_channels=6, out_channels=4):
    params = {"down": [], "up_tr": [], "up_conv": []}
    keys = iter(jax.random.split(key, 256))

    def u(shape, fan):
        s = 1.0 / math.sqrt(fan)
        return jax.random.uniform(next(keys), shape, jnp.float32, -s, s)

    for i in range(num_layers + 1):
        cin = in_channels if i == 0 else nif * pool ** (i - 1)
        cout = nif * pool ** i
        params["down"].append((u((cout, cin, 15), cin * 15), u((cout,), cin * 15)))
    for j in range(num_layers):
        c = nif * pool ** (num_layers - j)
        cs = nif * pool ** (num_layers - j - 1)
        params["up_tr"].append((u((c, c, pool), c * pool), u((c,), c * pool)))
        cc = c + cs
        params["up_conv"].append((u((cs, cc, 5), cc * 5), u((cs,), cc * 5)))
    # TODO(synk): the PyTorch __init__ declares final_conv with in_channels =
    # num_initial_filters + 2, which is inconsistent with the 6-channel input it
    # concatenates in forward(); we size it nif + in_channels so the forward runs.
    cfin = nif + in_channels
    params["final"] = (u((out_channels, cfin, 1), cfin), u((out_channels,), cfin))
    return params


# ----------------------------------------------------------------------------
# Pure-JAX reference (NCL layout, mirrors the PyTorch forward, eval mode)
# ----------------------------------------------------------------------------
def _ref_conv1d(x, w, b, pad):
    out = jax.lax.conv_general_dilated(
        x, w, window_strides=(1,), padding=[(pad, pad)],
        dimension_numbers=("NCH", "OIH", "NCH"),
        precision=jax.lax.Precision.HIGHEST)
    return out + b[None, :, None]


def _ref_convtr(x, w, b):
    y = jnp.einsum("bct,cok->botk", x, w, precision=jax.lax.Precision.HIGHEST)
    B, Co, T, K = y.shape
    return y.reshape(B, Co, T * K) + b[None, :, None]


def _ref_maxpool(x, p):
    B, C, T = x.shape
    return jnp.max(x[:, :, : (T // p) * p].reshape(B, C, T // p, p), axis=-1)


def ref_forward(params, x, num_layers, pool, alpha=0.2, use_tanh=True):
    feats = [x]
    for i in range(num_layers):
        w, b = params["down"][i]
        x = _ref_conv1d(x, w, b, 7)
        feats.append(x)
        x = jnp.where(x > 0, x, alpha * x)
        x = _ref_maxpool(x, pool)          # dropout: identity in eval mode
    w, b = params["down"][num_layers]
    x = _ref_conv1d(x, w, b, 7)
    for j in range(num_layers):
        wt, bt = params["up_tr"][j]
        x = _ref_convtr(x, wt, bt)
        skip = feats[num_layers - j]
        if x.shape[2] != skip.shape[2]:
            diff = skip.shape[2] - x.shape[2]
            x = (jnp.pad(x, ((0, 0), (0, 0), (0, diff))) if diff > 0
                 else x[:, :, :skip.shape[2]])
        x = jnp.concatenate([x, skip], axis=1)
        wc, bc = params["up_conv"][j]
        x = _ref_conv1d(x, wc, bc, 2)
        x = jnp.where(x > 0, x, alpha * x)
    x = jnp.concatenate([x, feats[0]], axis=1)
    wf, bf = params["final"]
    x = _ref_conv1d(x, wf, bf, 0)
    if use_tanh:
        x = jnp.tanh(x)
    return x


# ----------------------------------------------------------------------------
if __name__ == "__main__":
    NUM_LAYERS = 2        # small, shape-consistent instantiation of the module
    NIF = 8               # num_initial_filters
    POOL = 4              # pool_size (maxpool / upsample factor and channel growth)
    B, CIN, T = 2, 6, 64  # T divisible by POOL**NUM_LAYERS

    key = jax.random.PRNGKey(0)
    kp, kx = jax.random.split(key)
    params = init_params(kp, NUM_LAYERS, NIF, POOL, in_channels=CIN, out_channels=4)
    x = jax.random.normal(kx, (B, CIN, T), jnp.float32)

    out = jax.block_until_ready(wave_unet_forward(params, x, NUM_LAYERS, POOL))
    assert out.shape == (B, 4, T), out.shape

    ref = jax.block_until_ready(ref_forward(params, x, NUM_LAYERS, POOL))
    err = float(jnp.max(jnp.abs(out - ref)))
    assert jnp.allclose(out, ref, atol=2e-3, rtol=1e-2), f"max abs err = {err}"

    print("KERNEL_OK")
</pallas_src>

<mosaic_0001>
module attributes {stable_mosaic.version = 11 : i64} {
  func.func @kernel(%arg0: i32, %arg1: memref<1x64x6xf32, #tpu.memory_space<vmem>>, %arg2: memref<15x6x8xf32, #tpu.memory_space<vmem>>, %arg3: memref<1x8xf32, #tpu.memory_space<vmem>>, %arg4: memref<15x8x32xf32, #tpu.memory_space<vmem>>, %arg5: memref<1x32xf32, #tpu.memory_space<vmem>>, %arg6: memref<15x32x128xf32, #tpu.memory_space<vmem>>, %arg7: memref<1x128xf32, #tpu.memory_space<vmem>>, %arg8: memref<4x128x128xf32, #tpu.memory_space<vmem>>, %arg9: memref<1x128xf32, #tpu.memory_space<vmem>>, %arg10: memref<5x128x32xf32, #tpu.memory_space<vmem>>, %arg11: memref<5x32x32xf32, #tpu.memory_space<vmem>>, %arg12: memref<1x32xf32, #tpu.memory_space<vmem>>, %arg13: memref<4x32x32xf32, #tpu.memory_space<vmem>>, %arg14: memref<1x32xf32, #tpu.memory_space<vmem>>, %arg15: memref<5x32x8xf32, #tpu.memory_space<vmem>>, %arg16: memref<5x8x8xf32, #tpu.memory_space<vmem>>, %arg17: memref<1x8xf32, #tpu.memory_space<vmem>>, %arg18: memref<8x4xf32, #tpu.memory_space<vmem>>, %arg19: memref<6x4xf32, #tpu.memory_space<vmem>>, %arg20: memref<1x4xf32, #tpu.memory_space<vmem>>, %arg21: memref<1x64x4xf32, #tpu.memory_space<vmem>>, %arg22: memref<78x6xf32, #tpu.memory_space<vmem>>, %arg23: memref<30x8xf32, #tpu.memory_space<vmem>>, %arg24: memref<18x32xf32, #tpu.memory_space<vmem>>, %arg25: memref<64x8xf32, #tpu.memory_space<vmem>>, %arg26: memref<16x32xf32, #tpu.memory_space<vmem>>, %arg27: memref<20x128xf32, #tpu.memory_space<vmem>>, %arg28: memref<68x32xf32, #tpu.memory_space<vmem>>, %arg29: memref<20x32xf32, #tpu.memory_space<vmem>>, %arg30: memref<68x8xf32, #tpu.memory_space<vmem>>) attributes {dimension_semantics = [#tpu.dimension_semantics<parallel>], iteration_bounds = array<i64: 2>, scalar_prefetch = 0 : i64, scratch_operands = 9 : i64, tpu.core_type = #tpu.core_type<tc>, window_params = [{transform_indices = @transform_0, window_bounds = array<i64: 1, 64, 6>}, {pipeline_mode = #tpu.pipeline_mode<synchronous>, transform_indices = @transform_1, window_bounds = array<i64: 15, 6, 8>}, {pipeline_mode = #tpu.pipeline_mode<synchronous>, transform_indices = @transform_2, window_bounds = array<i64: 1, 8>}, {pipeline_mode = #tpu.pipeline_mode<synchronous>, transform_indices = @transform_3, window_bounds = array<i64: 15, 8, 32>}, {pipeline_mode = #tpu.pipeline_mode<synchronous>, transform_indices = @transform_4, window_bounds = array<i64: 1, 32>}, {pipeline_mode = #tpu.pipeline_mode<synchronous>, transform_indices = @transform_5, window_bounds = array<i64: 15, 32, 128>}, {pipeline_mode = #tpu.pipeline_mode<synchronous>, transform_indices = @transform_6, window_bounds = array<i64: 1, 128>}, {pipeline_mode = #tpu.pipeline_mode<synchronous>, transform_indices = @transform_7, window_bounds = array<i64: 4, 128, 128>}, {pipeline_mode = #tpu.pipeline_mode<synchronous>, transform_indices = @transform_8, window_bounds = array<i64: 1, 128>}, {pipeline_mode = #tpu.pipeline_mode<synchronous>, transform_indices = @transform_9, window_bounds = array<i64: 5, 128, 32>}, {pipeline_mode = #tpu.pipeline_mode<synchronous>, transform_indices = @transform_10, window_bounds = array<i64: 5, 32, 32>}, {pipeline_mode = #tpu.pipeline_mode<synchronous>, transform_indices = @transform_11, window_bounds = array<i64: 1, 32>}, {pipeline_mode = #tpu.pipeline_mode<synchronous>, transform_indices = @transform_12, window_bounds = array<i64: 4, 32, 32>}, {pipeline_mode = #tpu.pipeline_mode<synchronous>, transform_indices = @transform_13, window_bounds = array<i64: 1, 32>}, {pipeline_mode = #tpu.pipeline_mode<synchronous>, transform_indices = @transform_14, window_bounds = array<i64: 5, 32, 8>}, {pipeline_mode = #tpu.pipeline_mode<synchronous>, transform_indices = @transform_15, window_bounds = array<i64: 5, 8, 8>}, {pipeline_mode = #tpu.pipeline_mode<synchronous>, transform_indices = @transform_16, window_bounds = array<i64: 1, 8>}, {pipeline_mode = #tpu.pipeline_mode<synchronous>, transform_indices = @transform_17, window_bounds = array<i64: 8, 4>}, {pipeline_mode = #tpu.pipeline_mode<synchronous>, transform_indices = @transform_18, window_bounds = array<i64: 6, 4>}, {pipeline_mode = #tpu.pipeline_mode<synchronous>, transform_indices = @transform_19, window_bounds = array<i64: 1, 4>}, {transform_indices = @transform_20, window_bounds = array<i64: 1, 64, 4>}]} {
    %c0 = arith.constant 0 : index
    %c0_0 = arith.constant 0 : index
    %c0_1 = arith.constant 0 : index
    %0 = vector.load %arg1[%c0, %c0_0, %c0_1] : memref<1x64x6xf32, #tpu.memory_space<vmem>>, vector<1x64x6xf32>
    %1 = vector.shape_cast %0 : vector<1x64x6xf32> to vector<64x6xf32>
    %cst = arith.constant 0.000000e+00 : f32
    %2 = vector.broadcast %cst : f32 to vector<7x6xf32>
    %c0_2 = arith.constant 0 : index
    %c0_3 = arith.constant 0 : index
    %3 = vector.load %arg22[%c0_2, %c0_3] : memref<78x6xf32, #tpu.memory_space<vmem>>, vector<7x6xf32>
    tpu.vector_store %arg22[%c0_2, %c0_3], %2 {strides = array<i32>} : memref<78x6xf32, #tpu.memory_space<vmem>>, vector<7x6xf32>,
    %cst_4 = arith.constant 0.000000e+00 : f32
    %4 = vector.broadcast %cst_4 : f32 to vector<7x6xf32>
    %c71 = arith.constant 71 : index
    %c0_5 = arith.constant 0 : index
    %5 = vector.load %arg22[%c71, %c0_5] : memref<78x6xf32, #tpu.memory_space<vmem>>, vector<7x6xf32>
    tpu.vector_store %arg22[%c71, %c0_5], %4 {strides = array<i32>} : memref<78x6xf32, #tpu.memory_space<vmem>>, vector<7x6xf32>,
    %c7 = arith.constant 7 : index
    %c0_6 = arith.constant 0 : index
    %6 = vector.load %arg22[%c7, %c0_6] : memref<78x6xf32, #tpu.memory_space<vmem>>, vector<64x6xf32>
    tpu.vector_store %arg22[%c7, %c0_6], %1 {strides = array<i32>} : memref<78x6xf32, #tpu.memory_space<vmem>>, vector<64x6xf32>,
    %cst_7 = arith.constant 0.000000e+00 : f32
    %7 = vector.broadcast %cst_7 : f32 to vector<64x8xf32>
    %c0_8 = arith.constant 0 : index
    %c0_9 = arith.constant 0 : index
    %8 = vector.load %arg22[%c0_8, %c0_9] : memref<78x6xf32, #tpu.memory_space<vmem>>, vector<64x6xf32>
    %c0_10 = arith.constant 0 : index
    %c0_11 = arith.constant 0 : index
    %c0_12 = arith.constant 0 : index
    %9 = vector.load %arg2[%c0_10, %c0_11, %c0_12] : memref<15x6x8xf32, #tpu.memory_space<vmem>>, vector<1x6x8xf32>
    %10 = vector.shape_cast %9 : vector<1x6x8xf32> to vector<6x8xf32>
    %cst_13 = arith.constant dense<0.000000e+00> : vector<64x8xf32>
    %11 = tpu.matmul %8, %10, %cst_13 {dimension_numbers = #tpu.dot_dimension_numbers<[1], [0], [0], [1], [0, 0, 1, 1], [], []>} : vector<64x6xf32>, vector<6x8xf32>, vector<64x8xf32> -> vector<64x8xf32>
    %12 = arith.addf %7, %11 : vector<64x8xf32>
    %c1 = arith.constant 1 : index
    %c0_14 = arith.constant 0 : index
    %13 = vector.load %arg22[%c1, %c0_14] : memref<78x6xf32, #tpu.memory_space<vmem>>, vector<64x6xf32>
    %c1_15 = arith.constant 1 : index
    %c0_16 = arith.constant 0 : index
    %c0_17 = arith.constant 0 : index
    %14 = vector.load %arg2[%c1_15, %c0_16, %c0_17] : memref<15x6x8xf32, #tpu.memory_space<vmem>>, vector<1x6x8xf32>
    %15 = vector.shape_cast %14 : vector<1x6x8xf32> to vector<6x8xf32>
    %cst_18 = arith.constant dense<0.000000e+00> : vector<64x8xf32>
    %16 = tpu.matmul %13, %15, %cst_18 {dimension_numbers = #tpu.dot_dimension_numbers<[1], [0], [0], [1], [0, 0, 1, 1], [], []>} : vector<64x6xf32>, vector<6x8xf32>, vector<64x8xf32> -> vector<64x8xf32>
    %17 = arith.addf %12, %16 : vector<64x8xf32>
    %c2 = arith.constant 2 : index
    %c0_19 = arith.constant 0 : index
    %18 = vector.load %arg22[%c2, %c0_19] : memref<78x6xf32, #tpu.memory_space<vmem>>, vector<64x6xf32>
    %c2_20 = arith.constant 2 : index
    %c0_21 = arith.constant 0 : index
    %c0_22 = arith.constant 0 : index
    %19 = vector.load %arg2[%c2_20, %c0_21, %c0_22] : memref<15x6x8xf32, #tpu.memory_space<vmem>>, vector<1x6x8xf32>
    %20 = vector.shape_cast %19 : vector<1x6x8xf32> to vector<6x8xf32>
    %cst_23 = arith.constant dense<0.000000e+00> : vector<64x8xf32>
    %21 = tpu.matmul %18, %20, %cst_23 {dimension_numbers = #tpu.dot_dimension_numbers<[1], [0], [0], [1], [0, 0, 1, 1], [], []>} : vector<64x6xf32>, vector<6x8xf32>, vector<64x8xf32> -> vector<64x8xf32>
    %22 = arith.addf %17, %21 : vector<64x8xf32>
    %c3 = arith.constant 3 : index
    %c0_24 = arith.constant 0 : index
    %23 = vector.load %arg22[%c3, %c0_24] : memref<78x6xf32, #tpu.memory_space<vmem>>, vector<64x6xf32>
    %c3_25 = arith.constant 3 : index
    %c0_26 = arith.constant 0 : index
    %c0_27 = arith.constant 0 : index
    %24 = vector.load %arg2[%c3_25, %c0_26, %c0_27] : memref<15x6x8xf32, #tpu.memory_space<vmem>>, vector<1x6x8xf32>
    %25 = vector.shape_cast %24 : vector<1x6x8xf32> to vector<6x8xf32>
    %cst_28 = arith.constant dense<0.000000e+00> : vector<64x8xf32>
    %26 = tpu.matmul %23, %25, %cst_28 {dimension_numbers = #tpu.dot_dimension_numbers<[1], [0], [0], [1], [0, 0, 1, 1], [], []>} : vector<64x6xf32>, vector<6x8xf32>, vector<64x8xf32> -> vector<64x8xf32>
    %27 = arith.addf %22, %26 : vector<64x8xf32>
    %c4 = arith.constant 4 : index
    %c0_29 = arith.constant 0 : index
    %28 = vector.load %arg22[%c4, %c0_29] : memref<78x6xf32, #tpu.memory_space<vmem>>, vector<64x6xf32>
    %c4_30 = arith.constant 4 : index
    %c0_31 = arith.constant 0 : index
    %c0_32 = arith.constant 0 : index
    %29 = vector.load %arg2[%c4_30, %c0_31, %c0_32] : memref<15x6x8xf32, #tpu.memory_space<vmem>>, vector<1x6x8xf32>
    %30 = vector.shape_cast %29 : vector<1x6x8xf32> to vector<6x8xf32>
    %cst_33 = arith.constant dense<0.000000e+00> : vector<64x8xf32>
    %31 = tpu.matmul %28, %30, %cst_33 {dimension_numbers = #tpu.dot_dimension_numbers<[1], [0], [0], [1], [0, 0, 1, 1], [], []>} : vector<64x6xf32>, vector<6x8xf32>, vector<64x8xf32> -> vector<64x8xf32>
    %32 = arith.addf %27, %31 : vector<64x8xf32>
    %c5 = arith.constant 5 : index
    %c0_34 = arith.constant 0 : index
    %33 = vector.load %arg22[%c5, %c0_34] : memref<78x6xf32, #tpu.memory_space<vmem>>, vector<64x6xf32>
    %c5_35 = arith.constant 5 : index
    %c0_36 = arith.constant 0 : index
    %c0_37 = arith.constant 0 : index
    %34 = vector.load %arg2[%c5_35, %c0_36, %c0_37] : memref<15x6x8xf32, #tpu.memory_space<vmem>>, vector<1x6x8xf32>
    %35 = vector.shape_cast %34 : vector<1x6x8xf32> to vector<6x8xf32>
    %cst_38 = arith.constant dense<0.000000e+00> : vector<64x8xf32>
    %36 = tpu.matmul %33, %35, %cst_38 {dimension_numbers = #tpu.dot_dimension_numbers<[1], [0], [0], [1], [0, 0, 1, 1], [], []>} : vector<64x6xf32>, vector<6x8xf32>, vector<64x8xf32> -> vector<64x8xf32>
    %37 = arith.addf %32, %36 : vector<64x8xf32>
    %c6 = arith.constant 6 : index
    %c0_39 = arith.constant 0 : index
    %38 = vector.load %arg22[%c6, %c0_39] : memref<78x6xf32, #tpu.memory_space<vmem>>, vector<64x6xf32>
    %c6_40 = arith.constant 6 : index
    %c0_41 = arith.constant 0 : index
    %c0_42 = arith.constant 0 : index
    %39 = vector.load %arg2[%c6_40, %c0_41, %c0_42] : memref<15x6x8xf32, #tpu.memory_space<vmem>>, vector<1x6x8xf32>
    %40 = vector.shape_cast %39 : vector<1x6x8xf32> to vector<6x8xf32>
    %cst_43 = arith.constant dense<0.000000e+00> : vector<64x8xf32>
    %41 = tpu.matmul %38, %40, %cst_43 {dimension_numbers = #tpu.dot_dimension_numbers<[1], [0], [0], [1], [0, 0, 1, 1], [], []>} : vector<64x6xf32>, vector<6x8xf32>, vector<64x8xf32> -> vector<64x8xf32>
    %42 = arith.addf %37, %41 : vector<64x8xf32>
    %c7_44 = arith.constant 7 : index
    %c0_45 = arith.constant 0 : index
    %43 = vector.load %arg22[%c7_44, %c0_45] : memref<78x6xf32, #tpu.memory_space<vmem>>, vector<64x6xf32>
    %c7_46 = arith.constant 7 : index
    %c0_47 = arith.constant 0 : index
    %c0_48 = arith.constant 0 : index
    %44 = vector.load %arg2[%c7_46, %c0_47, %c0_48] : memref<15x6x8xf32, #tpu.memory_space<vmem>>, vector<1x6x8xf32>
    %45 = vector.shape_cast %44 : vector<1x6x8xf32> to vector<6x8xf32>
    %cst_49 = arith.constant dense<0.000000e+00> : vector<64x8xf32>
    %46 = tpu.matmul %43, %45, %cst_49 {dimension_numbers = #tpu.dot_dimension_numbers<[1], [0], [0], [1], [0, 0, 1, 1], [], []>} : vector<64x6xf32>, vector<6x8xf32>, vector<64x8xf32> -> vector<64x8xf32>
    %47 = arith.addf %42, %46 : vector<64x8xf32>
    %c8 = arith.constant 8 : index
    %c0_50 = arith.constant 0 : index
    %48 = vector.load %arg22[%c8, %c0_50] : memref<78x6xf32, #tpu.memory_space<vmem>>, vector<64x6xf32>
    %c8_51 = arith.constant 8 : index
    %c0_52 = arith.constant 0 : index
    %c0_53 = arith.constant 0 : index
    %49 = vector.load %arg2[%c8_51, %c0_52, %c0_53] : memref<15x6x8xf32, #tpu.memory_space<vmem>>, vector<1x6x8xf32>
    %50 = vector.shape_cast %49 : vector<1x6x8xf32> to vector<6x8xf32>
    %cst_54 = arith.constant dense<0.000000e+00> : vector<64x8xf32>
    %51 = tpu.matmul %48, %50, %cst_54 {dimension_numbers = #tpu.dot_dimension_numbers<[1], [0], [0], [1], [0, 0, 1, 1], [], []>} : vector<64x6xf32>, vector<6x8xf32>, vector<64x8xf32> -> vector<64x8xf32>
    %52 = arith.addf %47, %51 : vector<64x8xf32>
    %c9 = arith.constant 9 : index
    %c0_55 = arith.constant 0 : index
    %53 = vector.load %arg22[%c9, %c0_55] : memref<78x6xf32, #tpu.memory_space<vmem>>, vector<64x6xf32>
    %c9_56 = arith.constant 9 : index
    %c0_57 = arith.constant 0 : index
    %c0_58 = arith.constant 0 : index
    %54 = vector.load %arg2[%c9_56, %c0_57, %c0_58] : memref<15x6x8xf32, #tpu.memory_space<vmem>>, vector<1x6x8xf32>
    %55 = vector.shape_cast %54 : vector<1x6x8xf32> to vector<6x8xf32>
    %cst_59 = arith.constant dense<0.000000e+00> : vector<64x8xf32>
    %56 = tpu.matmul %53, %55, %cst_59 {dimension_numbers = #tpu.dot_dimension_numbers<[1], [0], [0], [1], [0, 0, 1, 1], [], []>} : vector<64x6xf32>, vector<6x8xf32>, vector<64x8xf32> -> vector<64x8xf32>
    %57 = arith.addf %52, %56 : vector<64x8xf32>
    %c10 = arith.constant 10 : index
    %c0_60 = arith.constant 0 : index
    %58 = vector.load %arg22[%c10, %c0_60] : memref<78x6xf32, #tpu.memory_space<vmem>>, vector<64x6xf32>
    %c10_61 = arith.constant 10 : index
    %c0_62 = arith.constant 0 : index
    %c0_63 = arith.constant 0 : index
    %59 = vector.load %arg2[%c10_61, %c0_62, %c0_63] : memref<15x6x8xf32, #tpu.memory_space<vmem>>, vector<1x6x8xf32>
    %60 = vector.shape_cast %59 : vector<1x6x8xf32> to vector<6x8xf32>
    %cst_64 = arith.constant dense<0.000000e+00> : vector<64x8xf32>
    %61 = tpu.matmul %58, %60, %cst_64 {dimension_numbers = #tpu.dot_dimension_numbers<[1], [0], [0], [1], [0, 0, 1, 1], [], []>} : vector<64x6xf32>, vector<6x8xf32>, vector<64x8xf32> -> vector<64x8xf32>
    %62 = arith.addf %57, %61 : vector<64x8xf32>
    %c11 = arith.constant 11 : index
    %c0_65 = arith.constant 0 : index
    %63 = vector.load %arg22[%c11, %c0_65] : memref<78x6xf32, #tpu.memory_space<vmem>>, vector<64x6xf32>
    %c11_66 = arith.constant 11 : index
    %c0_67 = arith.constant 0 : index
    %c0_68 = arith.constant 0 : index
    %64 = vector.load %arg2[%c11_66, %c0_67, %c0_68] : memref<15x6x8xf32, #tpu.memory_space<vmem>>, vector<1x6x8xf32>
    %65 = vector.shape_cast %64 : vector<1x6x8xf32> to vector<6x8xf32>
    %cst_69 = arith.constant dense<0.000000e+00> : vector<64x8xf32>
    %66 = tpu.matmul %63, %65, %cst_69 {dimension_numbers = #tpu.dot_dimension_numbers<[1], [0], [0], [1], [0, 0, 1, 1], [], []>} : vector<64x6xf32>, vector<6x8xf32>, vector<64x8xf32> -> vector<64x8xf32>
    %67 = arith.addf %62, %66 : vector<64x8xf32>
    %c12 = arith.constant 12 : index
    %c0_70 = arith.constant 0 : index
    %68 = vector.load %arg22[%c12, %c0_70] : memref<78x6xf32, #tpu.memory_space<vmem>>, vector<64x6xf32>
    %c12_71 = arith.constant 12 : index
    %c0_72 = arith.constant 0 : index
    %c0_73 = arith.constant 0 : index
    %69 = vector.load %arg2[%c12_71, %c0_72, %c0_73] : memref<15x6x8xf32, #tpu.memory_space<vmem>>, vector<1x6x8xf32>
    %70 = vector.shape_cast %69 : vector<1x6x8xf32> to vector<6x8xf32>
    %cst_74 = arith.constant dense<0.000000e+00> : vector<64x8xf32>
    %71 = tpu.matmul %68, %70, %cst_74 {dimension_numbers = #tpu.dot_dimension_numbers<[1], [0], [0], [1], [0, 0, 1, 1], [], []>} : vector<64x6xf32>, vector<6x8xf32>, vector<64x8xf32> -> vector<64x8xf32>
    %72 = arith.addf %67, %71 : vector<64x8xf32>
    %c13 = arith.constant 13 : index
    %c0_75 = arith.constant 0 : index
    %73 = vector.load %arg22[%c13, %c0_75] : memref<78x6xf32, #tpu.memory_space<vmem>>, vector<64x6xf32>
    %c13_76 = arith.constant 13 : index
    %c0_77 = arith.constant 0 : index
    %c0_78 = arith.constant 0 : index
    %74 = vector.load %arg2[%c13_76, %c0_77, %c0_78] : memref<15x6x8xf32, #tpu.memory_space<vmem>>, vector<1x6x8xf32>
    %75 = vector.shape_cast %74 : vector<1x6x8xf32> to vector<6x8xf32>
    %cst_79 = arith.constant dense<0.000000e+00> : vector<64x8xf32>
    %76 = tpu.matmul %73, %75, %cst_79 {dimension_numbers = #tpu.dot_dimension_numbers<[1], [0], [0], [1], [0, 0, 1, 1], [], []>} : vector<64x6xf32>, vector<6x8xf32>, vector<64x8xf32> -> vector<64x8xf32>
    %77 = arith.addf %72, %76 : vector<64x8xf32>
    %c14 = arith.constant 14 : index
    %c0_80 = arith.constant 0 : index
    %78 = vector.load %arg22[%c14, %c0_80] : memref<78x6xf32, #tpu.memory_space<vmem>>, vector<64x6xf32>
    %c14_81 = arith.constant 14 : index
    %c0_82 = arith.constant 0 : index
    %c0_83 = arith.constant 0 : index
    %79 = vector.load %arg2[%c14_81, %c0_82, %c0_83] : memref<15x6x8xf32, #tpu.memory_space<vmem>>, vector<1x6x8xf32>
    %80 = vector.shape_cast %79 : vector<1x6x8xf32> to vector<6x8xf32>
    %cst_84 = arith.constant dense<0.000000e+00> : vector<64x8xf32>
    %81 = tpu.matmul %78, %80, %cst_84 {dimension_numbers = #tpu.dot_dimension_numbers<[1], [0], [0], [1], [0, 0, 1, 1], [], []>} : vector<64x6xf32>, vector<6x8xf32>, vector<64x8xf32> -> vector<64x8xf32>
    %82 = arith.addf %77, %81 : vector<64x8xf32>
    %c0_85 = arith.constant 0 : index
    %c0_86 = arith.constant 0 : index
    %83 = vector.load %arg3[%c0_85, %c0_86] : memref<1x8xf32, #tpu.memory_space<vmem>>, vector<1x8xf32>
    %84 = vector.broadcast %83 : vector<1x8xf32> to vector<64x8xf32>
    %85 = arith.addf %82, %84 : vector<64x8xf32>
    %cst_87 = arith.constant 0.000000e+00 : f32
    %86 = vector.broadcast %cst_87 : f32 to vector<2x8xf32>
    %c0_88 = arith.constant 0 : index
    %c0_89 = arith.constant 0 : index
    %87 = vector.load %arg30[%c0_88, %c0_89] : memref<68x8xf32, #tpu.memory_space<vmem>>, vector<2x8xf32>
    tpu.vector_store %arg30[%c0_88, %c0_89], %86 {strides = array<i32>} : memref<68x8xf32, #tpu.memory_space<vmem>>, vector<2x8xf32>,
    %cst_90 = arith.constant 0.000000e+00 : f32
    %88 = vector.broadcast %cst_90 : f32 to vector<2x8xf32>
    %c66 = arith.constant 66 : index
    %c0_91 = arith.constant 0 : index
    %89 = vector.load %arg30[%c66, %c0_91] : memref<68x8xf32, #tpu.memory_space<vmem>>, vector<2x8xf32>
    tpu.vector_store %arg30[%c66, %c0_91], %88 {strides = array<i32>} : memref<68x8xf32, #tpu.memory_space<vmem>>, vector<2x8xf32>,
    %c2_92 = arith.constant 2 : index
    %c0_93 = arith.constant 0 : index
    %90 = vector.load %arg30[%c2_92, %c0_93] : memref<68x8xf32, #tpu.memory_space<vmem>>, vector<64x8xf32>
    tpu.vector_store %arg30[%c2_92, %c0_93], %85 {strides = array<i32>} : memref<68x8xf32, #tpu.memory_space<vmem>>, vector<64x8xf32>,
    %cst_94 = arith.constant 0.000000e+00 : f32
    %91 = vector.broadcast %cst_94 : f32 to vector<64x8xf32>
    %92 = arith.cmpf ogt, %85, %91 : vector<64x8xf32>
    %cst_95 = arith.constant 2.000000e-01 : f32
    %93 = vector.broadcast %cst_95 : f32 to vector<64x8xf32>
    %94 = arith.mulf %93, %85 : vector<64x8xf32>
    %95 = arith.select %92, %85, %94 : vector<64x8xi1>, vector<64x8xf32>
    %c0_96 = arith.constant 0 : index
    %c0_97 = arith.constant 0 : index
    %96 = vector.load %arg25[%c0_96, %c0_97] : memref<64x8xf32, #tpu.memory_space<vmem>>, vector<64x8xf32>
    tpu.vector_store %arg25[%c0_96, %c0_97], %95 {strides = array<i32>} : memref<64x8xf32, #tpu.memory_space<vmem>>, vector<64x8xf32>,
    %c0_98 = arith.constant 0 : index
    %c0_99 = arith.constant 0 : index
    %97 = tpu.strided_load %arg25[%c0_98, %c0_99] {strides = array<i32: 4, 1>} : memref<64x8xf32, #tpu.memory_space<vmem>>, vector<16x8xf32>
    %c1_100 = arith.constant 1 : index
    %c0_101 = arith.constant 0 : index
    %98 = tpu.strided_load %arg25[%c1_100, %c0_101] {strides = array<i32: 4, 1>} : memref<64x8xf32, #tpu.memory_space<vmem>>, vector<16x8xf32>
    %99 = arith.maximumf %97, %98 : vector<16x8xf32>
    %c2_102 = arith.constant 2 : index
    %c0_103 = arith.constant 0 : index
    %100 = tpu.strided_load %arg25[%c2_102, %c0_103] {strides = array<i32: 4, 1>} : memref<64x8xf32, #tpu.memory_space<vmem>>, vector<16x8xf32>
    %101 = arith.maximumf %99, %100 : vector<16x8xf32>
    %c3_104 = arith.constant 3 : index
    %c0_105 = arith.constant 0 : index
    %102 = tpu.strided_load %arg25[%c3_104, %c0_105] {strides = array<i32: 4, 1>} : memref<64x8xf32, #tpu.memory_space<vmem>>, vector<16x8xf32>
    %103 = arith.maximumf %101, %102 : vector<16x8xf32>
    %cst_106 = arith.constant 0.000000e+00 : f32
    %104 = vector.broadcast %cst_106 : f32 to vector<7x8xf32>
    %c0_107 = arith.constant 0 : index
    %c0_108 = arith.constant 0 : index
    %105 = vector.load %arg23[%c0_107, %c0_108] : memref<30x8xf32, #tpu.memory_space<vmem>>, vector<7x8xf32>
    tpu.vector_store %arg23[%c0_107, %c0_108], %104 {strides = array<i32>} : memref<30x8xf32, #tpu.memory_space<vmem>>, vector<7x8xf32>,
    %cst_109 = arith.constant 0.000000e+00 : f32
    %106 = vector.broadcast %cst_109 : f32 to vector<7x8xf32>
    %c23 = arith.constant 23 : index
    %c0_110 = arith.constant 0 : index
    %107 = vector.load %arg23[%c23, %c0_110] : memref<30x8xf32, #tpu.memory_space<vmem>>, vector<7x8xf32>
    tpu.vector_store %arg23[%c23, %c0_110], %106 {strides = array<i32>} : memref<30x8xf32, #tpu.memory_space<vmem>>, vector<7x8xf32>,
    %c7_111 = arith.constant 7 : index
    %c0_112 = arith.constant 0 : index
    %108 = vector.load %arg23[%c7_111, %c0_112] : memref<30x8xf32, #tpu.memory_space<vmem>>, vector<16x8xf32>
    tpu.vector_store %arg23[%c7_111, %c0_112], %103 {strides = array<i32>} : memref<30x8xf32, #tpu.memory_space<vmem>>, vector<16x8xf32>,
    %cst_113 = arith.constant 0.000000e+00 : f32
    %109 = vector.broadcast %cst_113 : f32 to vector<16x32xf32>
    %c0_114 = arith.constant 0 : index
    %c0_115 = arith.constant 0 : index
    %110 = vector.load %arg23[%c0_114, %c0_115] : memref<30x8xf32, #tpu.memory_space<vmem>>, vector<16x8xf32>
    %c0_116 = arith.constant 0 : index
    %c0_117 = arith.constant 0 : index
    %c0_118 = arith.constant 0 : index
    %111 = vector.load %arg4[%c0_116, %c0_117, %c0_118] : memref<15x8x32xf32, #tpu.memory_space<vmem>>, vector<1x8x32xf32>
    %112 = vector.shape_cast %111 : vector<1x8x32xf32> to vector<8x32xf32>
    %cst_119 = arith.constant dense<0.000000e+00> : vector<16x32xf32>
    %113 = tpu.matmul %110, %112, %cst_119 {dimension_numbers = #tpu.dot_dimension_numbers<[1], [0], [0], [1], [0, 0, 1, 1], [], []>} : vector<16x8xf32>, vector<8x32xf32>, vector<16x32xf32> -> vector<16x32xf32>
    %114 = arith.addf %109, %113 : vector<16x32xf32>
    %c1_120 = arith.constant 1 : index
    %c0_121 = arith.constant 0 : index
    %115 = vector.load %arg23[%c1_120, %c0_121] : memref<30x8xf32, #tpu.memory_space<vmem>>, vector<16x8xf32>
    %c1_122 = arith.constant 1 : index
    %c0_123 = arith.constant 0 : index
    %c0_124 = arith.constant 0 : index
    %116 = vector.load %arg4[%c1_122, %c0_123, %c0_124] : memref<15x8x32xf32, #tpu.memory_space<vmem>>, vector<1x8x32xf32>
    %117 = vector.shape_cast %116 : vector<1x8x32xf32> to vector<8x32xf32>
    %cst_125 = arith.constant dense<0.000000e+00> : vector<16x32xf32>
    %118 = tpu.matmul %115, %117, %cst_125 {dimension_numbers = #tpu.dot_dimension_numbers<[1], [0], [0], [1], [0, 0, 1, 1], [], []>} : vector<16x8xf32>, vector<8x32xf32>, vector<16x32xf32> -> vector<16x32xf32>
    %119 = arith.addf %114, %118 : vector<16x32xf32>
    %c2_126 = arith.constant 2 : index
    %c0_127 = arith.constant 0 : index
    %120 = vector.load %arg23[%c2_126, %c0_127] : memref<30x8xf32, #tpu.memory_space<vmem>>, vector<16x8xf32>
    %c2_128 = arith.constant 2 : index
    %c0_129 = arith.constant 0 : index
    %c0_130 = arith.constant 0 : index
    %121 = vector.load %arg4[%c2_128, %c0_129, %c0_130] : memref<15x8x32xf32, #tpu.memory_space<vmem>>, vector<1x8x32xf32>
    %122 = vector.shape_cast %121 : vector<1x8x32xf32> to vector<8x32xf32>
    %cst_131 = arith.constant dense<0.000000e+00> : vector<16x32xf32>
    %123 = tpu.matmul %120, %122, %cst_131 {dimension_numbers = #tpu.dot_dimension_numbers<[1], [0], [0], [1], [0, 0, 1, 1], [], []>} : vector<16x8xf32>, vector<8x32xf32>, vector<16x32xf32> -> vector<16x32xf32>
    %124 = arith.addf %119, %123 : vector<16x32xf32>
    %c3_132 = arith.constant 3 : index
    %c0_133 = arith.constant 0 : index
    %125 = vector.load %arg23[%c3_132, %c0_133] : memref<30x8xf32, #tpu.memory_space<vmem>>, vector<16x8xf32>
    %c3_134 = arith.constant 3 : index
    %c0_135 = arith.constant 0 : index
    %c0_136 = arith.constant 0 : index
    %126 = vector.load %arg4[%c3_134, %c0_135, %c0_136] : memref<15x8x32xf32, #tpu.memory_space<vmem>>, vector<1x8x32xf32>
    %127 = vector.shape_cast %126 : vector<1x8x32xf32> to vector<8x32xf32>
    %cst_137 = arith.constant dense<0.000000e+00> : vector<16x32xf32>
    %128 = tpu.matmul %125, %127, %cst_137 {dimension_numbers = #tpu.dot_dimension_numbers<[1], [0], [0], [1], [0, 0, 1, 1], [], []>} : vector<16x8xf32>, vector<8x32xf32>, vector<16x32xf32> -> vector<16x32xf32>
    %129 = arith.addf %124, %128 : vector<16x32xf32>
    %c4_138 = arith.constant 4 : index
    %c0_139 = arith.constant 0 : index
    %130 = vector.load %arg23[%c4_138, %c0_139] : memref<30x8xf32, #tpu.memory_space<vmem>>, vector<16x8xf32>
    %c4_140 = arith.constant 4 : index
    %c0_141 = arith.constant 0 : index
    %c0_142 = arith.constant 0 : index
    %131 = vector.load %arg4[%c4_140, %c0_141, %c0_142] : memref<15x8x32xf32, #tpu.memory_space<vmem>>, vector<1x8x32xf32>
    %132 = vector.shape_cast %131 : vector<1x8x32xf32> to vector<8x32xf32>
    %cst_143 = arith.constant dense<0.000000e+00> : vector<16x32xf32>
    %133 = tpu.matmul %130, %132, %cst_143 {dimension_numbers = #tpu.dot_dimension_numbers<[1], [0], [0], [1], [0, 0, 1, 1], [], []>} : vector<16x8xf32>, vector<8x32xf32>, vector<16x32xf32> -> vector<16x32xf32>
    %134 = arith.addf %129, %133 : vector<16x32xf32>
    %c5_144 = arith.constant 5 : index
    %c0_145 = arith.constant 0 : index
    %135 = vector.load %arg23[%c5_144, %c0_145] : memref<30x8xf32, #tpu.memory_space<vmem>>, vector<16x8xf32>
    %c5_146 = arith.constant 5 : index
    %c0_147 = arith.constant 0 : index
    %c0_148 = arith.constant 0 : index
    %136 = vector.load %arg4[%c5_146, %c0_147, %c0_148] : memref<15x8x32xf32, #tpu.memory_space<vmem>>, vector<1x8x32xf32>
    %137 = vector.shape_cast %136 : vector<1x8x32xf32> to vector<8x32xf32>
    %cst_149 = arith.constant dense<0.000000e+00> : vector<16x32xf32>
    %138 = tpu.matmul %135, %137, %cst_149 {dimension_numbers = #tpu.dot_dimension_numbers<[1], [0], [0], [1], [0, 0, 1, 1], [], []>} : vector<16x8xf32>, vector<8x32xf32>, vector<16x32xf32> -> vector<16x32xf32>
    %139 = arith.addf %134, %138 : vector<16x32xf32>
    %c6_150 = arith.constant 6 : index
    %c0_151 = arith.constant 0 : index
    %140 = vector.load %arg23[%c6_150, %c0_151] : memref<30x8xf32, #tpu.memory_space<vmem>>, vector<16x8xf32>
    %c6_152 = arith.constant 6 : index
    %c0_153 = arith.constant 0 : index
    %c0_154 = arith.constant 0 : index
    %141 = vector.load %arg4[%c6_152, %c0_153, %c0_154] : memref<15x8x32xf32, #tpu.memory_space<vmem>>, vector<1x8x32xf32>
    %142 = vector.shape_cast %141 : vector<1x8x32xf32> to vector<8x32xf32>
    %cst_155 = arith.constant dense<0.000000e+00> : vector<16x32xf32>
    %143 = tpu.matmul %140, %142, %cst_155 {dimension_numbers = #tpu.dot_dimension_numbers<[1], [0], [0], [1], [0, 0, 1, 1], [], []>} : vector<16x8xf32>, vector<8x32xf32>, vector<16x32xf32> -> vector<16x32xf32>
    %144 = arith.addf %139, %143 : vector<16x32xf32>
    %c7_156 = arith.constant 7 : index
    %c0_157 = arith.constant 0 : index
    %145 = vector.load %arg23[%c7_156, %c0_157] : memref<30x8xf32, #tpu.memory_space<vmem>>, vector<16x8xf32>
    %c7_158 = arith.constant 7 : index
    %c0_159 = arith.constant 0 : index
    %c0_160 = arith.constant 0 : index
    %146 = vector.load %arg4[%c7_158, %c0_159, %c0_160] : memref<15x8x32xf32, #tpu.memory_space<vmem>>, vector<1x8x32xf32>
    %147 = vector.shape_cast %146 : vector<1x8x32xf32> to vector<8x32xf32>
    %cst_161 = arith.constant dense<0.000000e+00> : vector<16x32xf32>
    %148 = tpu.matmul %145, %147, %cst_161 {dimension_numbers = #tpu.dot_dimension_numbers<[1], [0], [0], [1], [0, 0, 1, 1], [], []>} : vector<16x8xf32>, vector<8x32xf32>, vector<16x32xf32> -> vector<16x32xf32>
    %149 = arith.addf %144, %148 : vector<16x32xf32>
    %c8_162 = arith.constant 8 : index
    %c0_163 = arith.constant 0 : index
    %150 = vector.load %arg23[%c8_162, %c0_163] : memref<30x8xf32, #tpu.memory_space<vmem>>, vector<16x8xf32>
    %c8_164 = arith.constant 8 : index
    %c0_165 = arith.constant 0 : index
    %c0_166 = arith.constant 0 : index
    %151 = vector.load %arg4[%c8_164, %c0_165, %c0_166] : memref<15x8x32xf32, #tpu.memory_space<vmem>>, vector<1x8x32xf32>
    %152 = vector.shape_cast %151 : vector<1x8x32xf32> to vector<8x32xf32>
    %cst_167 = arith.constant dense<0.000000e+00> : vector<16x32xf32>
    %153 = tpu.matmul %150, %152, %cst_167 {dimension_numbers = #tpu.dot_dimension_numbers<[1], [0], [0], [1], [0, 0, 1, 1], [], []>} : vector<16x8xf32>, vector<8x32xf32>, vector<16x32xf32> -> vector<16x32xf32>
    %154 = arith.addf %149, %153 : vector<16x32xf32>
    %c9_168 = arith.constant 9 : index
    %c0_169 = arith.constant 0 : index
    %155 = vector.load %arg23[%c9_168, %c0_169] : memref<30x8xf32, #tpu.memory_space<vmem>>, vector<16x8xf32>
    %c9_170 = arith.constant 9 : index
    %c0_171 = arith.constant 0 : index
    %c0_172 = arith.constant 0 : index
    %156 = vector.load %arg4[%c9_170, %c0_171, %c0_172] : memref<15x8x32xf32, #tpu.memory_space<vmem>>, vector<1x8x32xf32>
    %157 = vector.shape_cast %156 : vector<1x8x32xf32> to vector<8x32xf32>
    %cst_173 = arith.constant dense<0.000000e+00> : vector<16x32xf32>
    %158 = tpu.matmul %155, %157, %cst_173 {dimension_numbers = #tpu.dot_dimension_numbers<[1], [0], [0], [1], [0, 0, 1, 1], [], []>} : vector<16x8xf32>, vector<8x32xf32>, vector<16x32xf32> -> vector<16x32xf32>
    %159 = arith.addf %154, %158 : vector<16x32xf32>
    %c10_174 = arith.constant 10 : index
    %c0_175 = arith.constant 0 : index
    %160 = vector.load %arg23[%c10_174, %c0_175] : memref<30x8xf32, #tpu.memory_space<vmem>>, vector<16x8xf32>
    %c10_176 = arith.constant 10 : index
    %c0_177 = arith.constant 0 : index
    %c0_178 = arith.constant 0 : index
    %161 = vector.load %arg4[%c10_176, %c0_177, %c0_178] : memref<15x8x32xf32, #tpu.memory_space<vmem>>, vector<1x8x32xf32>
    %162 = vector.shape_cast %161 : vector<1x8x32xf32> to vector<8x32xf32>
    %cst_179 = arith.constant dense<0.000000e+00> : vector<16x32xf32>
    %163 = tpu.matmul %160, %162, %cst_179 {dimension_numbers = #tpu.dot_dimension_numbers<[1], [0], [0], [1], [0, 0, 1, 1], [], []>} : vector<16x8xf32>, vector<8x32xf32>, vector<16x32xf32> -> vector<16x32xf32>
    %164 = arith.addf %159, %163 : vector<16x32xf32>
    %c11_180 = arith.constant 11 : index
    %c0_181 = arith.constant 0 : index
    %165 = vector.load %arg23[%c11_180, %c0_181] : memref<30x8xf32, #tpu.memory_space<vmem>>, vector<16x8xf32>
    %c11_182 = arith.constant 11 : index
    %c0_183 = arith.constant 0 : index
    %c0_184 = arith.constant 0 : index
    %166 = vector.load %arg4[%c11_182, %c0_183, %c0_184] : memref<15x8x32xf32, #tpu.memory_space<vmem>>, vector<1x8x32xf32>
    %167 = vector.shape_cast %166 : vector<1x8x32xf32> to vector<8x32xf32>
    %cst_185 = arith.constant dense<0.000000e+00> : vector<16x32xf32>
    %168 = tpu.matmul %165, %167, %cst_185 {dimension_numbers = #tpu.dot_dimension_numbers<[1], [0], [0], [1], [0, 0, 1, 1], [], []>} : vector<16x8xf32>, vector<8x32xf32>, vector<16x32xf32> -> vector<16x32xf32>
    %169 = arith.addf %164, %168 : vector<16x32xf32>
    %c12_186 = arith.constant 12 : index
    %c0_187 = arith.constant 0 : index
    %170 = vector.load %arg23[%c12_186, %c0_187] : memref<30x8xf32, #tpu.memory_space<vmem>>, vector<16x8xf32>
    %c12_188 = arith.constant 12 : index
    %c0_189 = arith.constant 0 : index
    %c0_190 = arith.constant 0 : index
    %171 = vector.load %arg4[%c12_188, %c0_189, %c0_190] : memref<15x8x32xf32, #tpu.memory_space<vmem>>, vector<1x8x32xf32>
    %172 = vector.shape_cast %171 : vector<1x8x32xf32> to vector<8x32xf32>
    %cst_191 = arith.constant dense<0.000000e+00> : vector<16x32xf32>
    %173 = tpu.matmul %170, %172, %cst_191 {dimension_numbers = #tpu.dot_dimension_numbers<[1], [0], [0], [1], [0, 0, 1, 1], [], []>} : vector<16x8xf32>, vector<8x32xf32>, vector<16x32xf32> -> vector<16x32xf32>
    %174 = arith.addf %169, %173 : vector<16x32xf32>
    %c13_192 = arith.constant 13 : index
    %c0_193 = arith.constant 0 : index
    %175 = vector.load %arg23[%c13_192, %c0_193] : memref<30x8xf32, #tpu.memory_space<vmem>>, vector<16x8xf32>
    %c13_194 = arith.constant 13 : index
    %c0_195 = arith.constant 0 : index
    %c0_196 = arith.constant 0 : index
    %176 = vector.load %arg4[%c13_194, %c0_195, %c0_196] : memref<15x8x32xf32, #tpu.memory_space<vmem>>, vector<1x8x32xf32>
    %177 = vector.shape_cast %176 : vector<1x8x32xf32> to vector<8x32xf32>
    %cst_197 = arith.constant dense<0.000000e+00> : vector<16x32xf32>
    %178 = tpu.matmul %175, %177, %cst_197 {dimension_numbers = #tpu.dot_dimension_numbers<[1], [0], [0], [1], [0, 0, 1, 1], [], []>} : vector<16x8xf32>, vector<8x32xf32>, vector<16x32xf32> -> vector<16x32xf32>
    %179 = arith.addf %174, %178 : vector<16x32xf32>
    %c14_198 = arith.constant 14 : index
    %c0_199 = arith.constant 0 : index
    %180 = vector.load %arg23[%c14_198, %c0_199] : memref<30x8xf32, #tpu.memory_space<vmem>>, vector<16x8xf32>
    %c14_200 = arith.constant 14 : index
    %c0_201 = arith.constant 0 : index
    %c0_202 = arith.constant 0 : index
    %181 = vector.load %arg4[%c14_200, %c0_201, %c0_202] : memref<15x8x32xf32, #tpu.memory_space<vmem>>, vector<1x8x32xf32>
    %182 = vector.shape_cast %181 : vector<1x8x32xf32> to vector<8x32xf32>
    %cst_203 = arith.constant dense<0.000000e+00> : vector<16x32xf32>
    %183 = tpu.matmul %180, %182, %cst_203 {dimension_numbers = #tpu.dot_dimension_numbers<[1], [0], [0], [1], [0, 0, 1, 1], [], []>} : vector<16x8xf32>, vector<8x32xf32>, vector<16x32xf32> -> vector<16x32xf32>
    %184 = arith.addf %179, %183 : vector<16x32xf32>
    %c0_204 = arith.constant 0 : index
    %c0_205 = arith.constant 0 : index
    %185 = vector.load %arg5[%c0_204, %c0_205] : memref<1x32xf32, #tpu.memory_space<vmem>>, vector<1x32xf32>
    %186 = vector.broadcast %185 : vector<1x32xf32> to vector<16x32xf32>
    %187 = arith.addf %184, %186 : vector<16x32xf32>
    %cst_206 = arith.constant 0.000000e+00 : f32
    %188 = vector.broadcast %cst_206 : f32 to vector<2x32xf32>
    %c0_207 = arith.constant 0 : index
    %c0_208 = arith.constant 0 : index
    %189 = vector.load %arg29[%c0_207, %c0_208] : memref<20x32xf32, #tpu.memory_space<vmem>>, vector<2x32xf32>
    tpu.vector_store %arg29[%c0_207, %c0_208], %188 {strides = array<i32>} : memref<20x32xf32, #tpu.memory_space<vmem>>, vector<2x32xf32>,
    %cst_209 = arith.constant 0.000000e+00 : f32
    %190 = vector.broadcast %cst_209 : f32 to vector<2x32xf32>
    %c18 = arith.constant 18 : index
    %c0_210 = arith.constant 0 : index
    %191 = vector.load %arg29[%c18, %c0_210] : memref<20x32xf32, #tpu.memory_space<vmem>>, vector<2x32xf32>
    tpu.vector_store %arg29[%c18, %c0_210], %190 {strides = array<i32>} : memref<20x32xf32, #tpu.memory_space<vmem>>, vector<2x32xf32>,
    %c2_211 = arith.constant 2 : index
    %c0_212 = arith.constant 0 : index
    %192 = vector.load %arg29[%c2_211, %c0_212] : memref<20x32xf32, #tpu.memory_space<vmem>>, vector<16x32xf32>
    tpu.vector_store %arg29[%c2_211, %c0_212], %187 {strides = array<i32>} : memref<20x32xf32, #tpu.memory_space<vmem>>, vector<16x32xf32>,
    %cst_213 = arith.constant 0.000000e+00 : f32
    %193 = vector.broadcast %cst_213 : f32 to vector<16x32xf32>
    %194 = arith.cmpf ogt, %187, %193 : vector<16x32xf32>
    %cst_214 = arith.constant 2.000000e-01 : f32
    %195 = vector.broadcast %cst_214 : f32 to vector<16x32xf32>
    %196 = arith.mulf %195, %187 : vector<16x32xf32>
    %197 = arith.select %194, %187, %196 : vector<16x32xi1>, vector<16x32xf32>
    %c0_215 = arith.constant 0 : index
    %c0_216 = arith.constant 0 : index
    %198 = vector.load %arg26[%c0_215, %c0_216] : memref<16x32xf32, #tpu.memory_space<vmem>>, vector<16x32xf32>
    tpu.vector_store %arg26[%c0_215, %c0_216], %197 {strides = array<i32>} : memref<16x32xf32, #tpu.memory_space<vmem>>, vector<16x32xf32>,
    %c0_217 = arith.constant 0 : index
    %c0_218 = arith.constant 0 : index
    %199 = tpu.strided_load %arg26[%c0_217, %c0_218] {strides = array<i32: 4, 1>} : memref<16x32xf32, #tpu.memory_space<vmem>>, vector<4x32xf32>
    %c1_219 = arith.constant 1 : index
    %c0_220 = arith.constant 0 : index
    %200 = tpu.strided_load %arg26[%c1_219, %c0_220] {strides = array<i32: 4, 1>} : memref<16x32xf32, #tpu.memory_space<vmem>>, vector<4x32xf32>
    %201 = arith.maximumf %199, %200 : vector<4x32xf32>
    %c2_221 = arith.constant 2 : index
    %c0_222 = arith.constant 0 : index
    %202 = tpu.strided_load %arg26[%c2_221, %c0_222] {strides = array<i32: 4, 1>} : memref<16x32xf32, #tpu.memory_space<vmem>>, vector<4x32xf32>
    %203 = arith.maximumf %201, %202 : vector<4x32xf32>
    %c3_223 = arith.constant 3 : index
    %c0_224 = arith.constant 0 : index
    %204 = tpu.strided_load %arg26[%c3_223, %c0_224] {strides = array<i32: 4, 1>} : memref<16x32xf32, #tpu.memory_space<vmem>>, vector<4x32xf32>
    %205 = arith.maximumf %203, %204 : vector<4x32xf32>
    %cst_225 = arith.constant 0.000000e+00 : f32
    %206 = vector.broadcast %cst_225 : f32 to vector<7x32xf32>
    %c0_226 = arith.constant 0 : index
    %c0_227 = arith.constant 0 : index
    %207 = vector.load %arg24[%c0_226, %c0_227] : memref<18x32xf32, #tpu.memory_space<vmem>>, vector<7x32xf32>
    tpu.vector_store %arg24[%c0_226, %c0_227], %206 {strides = array<i32>} : memref<18x32xf32, #tpu.memory_space<vmem>>, vector<7x32xf32>,
    %cst_228 = arith.constant 0.000000e+00 : f32
    %208 = vector.broadcast %cst_228 : f32 to vector<7x32xf32>
    %c11_229 = arith.constant 11 : index
    %c0_230 = arith.constant 0 : index
    %209 = vector.load %arg24[%c11_229, %c0_230] : memref<18x32xf32, #tpu.memory_space<vmem>>, vector<7x32xf32>
    tpu.vector_store %arg24[%c11_229, %c0_230], %208 {strides = array<i32>} : memref<18x32xf32, #tpu.memory_space<vmem>>, vector<7x32xf32>,
    %c7_231 = arith.constant 7 : index
    %c0_232 = arith.constant 0 : index
    %210 = vector.load %arg24[%c7_231, %c0_232] : memref<18x32xf32, #tpu.memory_space<vmem>>, vector<4x32xf32>
    tpu.vector_store %arg24[%c7_231, %c0_232], %205 {strides = array<i32>} : memref<18x32xf32, #tpu.memory_space<vmem>>, vector<4x32xf32>,
    %cst_233 = arith.constant 0.000000e+00 : f32
    %211 = vector.broadcast %cst_233 : f32 to vector<4x128xf32>
    %c0_234 = arith.constant 0 : index
    %c0_235 = arith.constant 0 : index
    %212 = vector.load %arg24[%c0_234, %c0_235] : memref<18x32xf32, #tpu.memory_space<vmem>>, vector<4x32xf32>
    %c0_236 = arith.constant 0 : index
    %c0_237 = arith.constant 0 : index
    %c0_238 = arith.constant 0 : index
    %213 = vector.load %arg6[%c0_236, %c0_237, %c0_238] : memref<15x32x128xf32, #tpu.memory_space<vmem>>, vector<1x32x128xf32>
    %214 = vector.shape_cast %213 : vector<1x32x128xf32> to vector<32x128xf32>
    %cst_239 = arith.constant dense<0.000000e+00> : vector<4x128xf32>
    %215 = tpu.matmul %212, %214, %cst_239 {dimension_numbers = #tpu.dot_dimension_numbers<[1], [0], [0], [1], [0, 0, 1, 1], [], []>} : vector<4x32xf32>, vector<32x128xf32>, vector<4x128xf32> -> vector<4x128xf32>
    %216 = arith.addf %211, %215 : vector<4x128xf32>
    %c1_240 = arith.constant 1 : index
    %c0_241 = arith.constant 0 : index
    %217 = vector.load %arg24[%c1_240, %c0_241] : memref<18x32xf32, #tpu.memory_space<vmem>>, vector<4x32xf32>
    %c1_242 = arith.constant 1 : index
    %c0_243 = arith.constant 0 : index
    %c0_244 = arith.constant 0 : index
    %218 = vector.load %arg6[%c1_242, %c0_243, %c0_244] : memref<15x32x128xf32, #tpu.memory_space<vmem>>, vector<1x32x128xf32>
    %219 = vector.shape_cast %218 : vector<1x32x128xf32> to vector<32x128xf32>
    %cst_245 = arith.constant dense<0.000000e+00> : vector<4x128xf32>
    %220 = tpu.matmul %217, %219, %cst_245 {dimension_numbers = #tpu.dot_dimension_numbers<[1], [0], [0], [1], [0, 0, 1, 1], [], []>} : vector<4x32xf32>, vector<32x128xf32>, vector<4x128xf32> -> vector<4x128xf32>
    %221 = arith.addf %216, %220 : vector<4x128xf32>
    %c2_246 = arith.constant 2 : index
    %c0_247 = arith.constant 0 : index
    %222 = vector.load %arg24[%c2_246, %c0_247] : memref<18x32xf32, #tpu.memory_space<vmem>>, vector<4x32xf32>
    %c2_248 = arith.constant 2 : index
    %c0_249 = arith.constant 0 : index
    %c0_250 = arith.constant 0 : index
    %223 = vector.load %arg6[%c2_248, %c0_249, %c0_250] : memref<15x32x128xf32, #tpu.memory_space<vmem>>, vector<1x32x128xf32>
    %224 = vector.shape_cast %223 : vector<1x32x128xf32> to vector<32x128xf32>
    %cst_251 = arith.constant dense<0.000000e+00> : vector<4x128xf32>
    %225 = tpu.matmul %222, %224, %cst_251 {dimension_numbers = #tpu.dot_dimension_numbers<[1], [0], [0], [1], [0, 0, 1, 1], [], []>} : vector<4x32xf32>, vector<32x128xf32>, vector<4x128xf32> -> vector<4x128xf32>
    %226 = arith.addf %221, %225 : vector<4x128xf32>
    %c3_252 = arith.constant 3 : index
    %c0_253 = arith.constant 0 : index
    %227 = vector.load %arg24[%c3_252, %c0_253] : memref<18x32xf32, #tpu.memory_space<vmem>>, vector<4x32xf32>
    %c3_254 = arith.constant 3 : index
    %c0_255 = arith.constant 0 : index
    %c0_256 = arith.constant 0 : index
    %228 = vector.load %arg6[%c3_254, %c0_255, %c0_256] : memref<15x32x128xf32, #tpu.memory_space<vmem>>, vector<1x32x128xf32>
    %229 = vector.shape_cast %228 : vector<1x32x128xf32> to vector<32x128xf32>
    %cst_257 = arith.constant dense<0.000000e+00> : vector<4x128xf32>
    %230 = tpu.matmul %227, %229, %cst_257 {dimension_numbers = #tpu.dot_dimension_numbers<[1], [0], [0], [1], [0, 0, 1, 1], [], []>} : vector<4x32xf32>, vector<32x128xf32>, vector<4x128xf32> -> vector<4x128xf32>
    %231 = arith.addf %226, %230 : vector<4x128xf32>
    %c4_258 = arith.constant 4 : index
    %c0_259 = arith.constant 0 : index
    %232 = vector.load %arg24[%c4_258, %c0_259] : memref<18x32xf32, #tpu.memory_space<vmem>>, vector<4x32xf32>
    %c4_260 = arith.constant 4 : index
    %c0_261 = arith.constant 0 : index
    %c0_262 = arith.constant 0 : index
    %233 = vector.load %arg6[%c4_260, %c0_261, %c0_262] : memref<15x32x128xf32, #tpu.memory_space<vmem>>, vector<1x32x128xf32>
    %234 = vector.shape_cast %233 : vector<1x32x128xf32> to vector<32x128xf32>
    %cst_263 = arith.constant dense<0.000000e+00> : vector<4x128xf32>
    %235 = tpu.matmul %232, %234, %cst_263 {dimension_numbers = #tpu.dot_dimension_numbers<[1], [0], [0], [1], [0, 0, 1, 1], [], []>} : vector<4x32xf32>, vector<32x128xf32>, vector<4x128xf32> -> vector<4x128xf32>
    %236 = arith.addf %231, %235 : vector<4x128xf32>
    %c5_264 = arith.constant 5 : index
    %c0_265 = arith.constant 0 : index
    %237 = vector.load %arg24[%c5_264, %c0_265] : memref<18x32xf32, #tpu.memory_space<vmem>>, vector<4x32xf32>
    %c5_266 = arith.constant 5 : index
    %c0_267 = arith.constant 0 : index
    %c0_268 = arith.constant 0 : index
    %238 = vector.load %arg6[%c5_266, %c0_267, %c0_268] : memref<15x32x128xf32, #tpu.memory_space<vmem>>, vector<1x32x128xf32>
    %239 = vector.shape_cast %238 : vector<1x32x128xf32> to vector<32x128xf32>
    %cst_269 = arith.constant dense<0.000000e+00> : vector<4x128xf32>
    %240 = tpu.matmul %237, %239, %cst_269 {dimension_numbers = #tpu.dot_dimension_numbers<[1], [0], [0], [1], [0, 0, 1, 1], [], []>} : vector<4x32xf32>, vector<32x128xf32>, vector<4x128xf32> -> vector<4x128xf32>
    %241 = arith.addf %236, %240 : vector<4x128xf32>
    %c6_270 = arith.constant 6 : index
    %c0_271 = arith.constant 0 : index
    %242 = vector.load %arg24[%c6_270, %c0_271] : memref<18x32xf32, #tpu.memory_space<vmem>>, vector<4x32xf32>
    %c6_272 = arith.constant 6 : index
    %c0_273 = arith.constant 0 : index
    %c0_274 = arith.constant 0 : index
    %243 = vector.load %arg6[%c6_272, %c0_273, %c0_274] : memref<15x32x128xf32, #tpu.memory_space<vmem>>, vector<1x32x128xf32>
    %244 = vector.shape_cast %243 : vector<1x32x128xf32> to vector<32x128xf32>
    %cst_275 = arith.constant dense<0.000000e+00> : vector<4x128xf32>
    %245 = tpu.matmul %242, %244, %cst_275 {dimension_numbers = #tpu.dot_dimension_numbers<[1], [0], [0], [1], [0, 0, 1, 1], [], []>} : vector<4x32xf32>, vector<32x128xf32>, vector<4x128xf32> -> vector<4x128xf32>
    %246 = arith.addf %241, %245 : vector<4x128xf32>
    %c7_276 = arith.constant 7 : index
    %c0_277 = arith.constant 0 : index
    %247 = vector.load %arg24[%c7_276, %c0_277] : memref<18x32xf32, #tpu.memory_space<vmem>>, vector<4x32xf32>
    %c7_278 = arith.constant 7 : index
    %c0_279 = arith.constant 0 : index
    %c0_280 = arith.constant 0 : index
    %248 = vector.load %arg6[%c7_278, %c0_279, %c0_280] : memref<15x32x128xf32, #tpu.memory_space<vmem>>, vector<1x32x128xf32>
    %249 = vector.shape_cast %248 : vector<1x32x128xf32> to vector<32x128xf32>
    %cst_281 = arith.constant dense<0.000000e+00> : vector<4x128xf32>
    %250 = tpu.matmul %247, %249, %cst_281 {dimension_numbers = #tpu.dot_dimension_numbers<[1], [0], [0], [1], [0, 0, 1, 1], [], []>} : vector<4x32xf32>, vector<32x128xf32>, vector<4x128xf32> -> vector<4x128xf32>
    %251 = arith.addf %246, %250 : vector<4x128xf32>
    %c8_282 = arith.constant 8 : index
    %c0_283 = arith.constant 0 : index
    %252 = vector.load %arg24[%c8_282, %c0_283] : memref<18x32xf32, #tpu.memory_space<vmem>>, vector<4x32xf32>
    %c8_284 = arith.constant 8 : index
    %c0_285 = arith.constant 0 : index
    %c0_286 = arith.constant 0 : index
    %253 = vector.load %arg6[%c8_284, %c0_285, %c0_286] : memref<15x32x128xf32, #tpu.memory_space<vmem>>, vector<1x32x128xf32>
    %254 = vector.shape_cast %253 : vector<1x32x128xf32> to vector<32x128xf32>
    %cst_287 = arith.constant dense<0.000000e+00> : vector<4x128xf32>
    %255 = tpu.matmul %252, %254, %cst_287 {dimension_numbers = #tpu.dot_dimension_numbers<[1], [0], [0], [1], [0, 0, 1, 1], [], []>} : vector<4x32xf32>, vector<32x128xf32>, vector<4x128xf32> -> vector<4x128xf32>
    %256 = arith.addf %251, %255 : vector<4x128xf32>
    %c9_288 = arith.constant 9 : index
    %c0_289 = arith.constant 0 : index
    %257 = vector.load %arg24[%c9_288, %c0_289] : memref<18x32xf32, #tpu.memory_space<vmem>>, vector<4x32xf32>
    %c9_290 = arith.constant 9 : index
    %c0_291 = arith.constant 0 : index
    %c0_292 = arith.constant 0 : index
    %258 = vector.load %arg6[%c9_290, %c0_291, %c0_292] : memref<15x32x128xf32, #tpu.memory_space<vmem>>, vector<1x32x128xf32>
    %259 = vector.shape_cast %258 : vector<1x32x128xf32> to vector<32x128xf32>
    %cst_293 = arith.constant dense<0.000000e+00> : vector<4x128xf32>
    %260 = tpu.matmul %257, %259, %cst_293 {dimension_numbers = #tpu.dot_dimension_numbers<[1], [0], [0], [1], [0, 0, 1, 1], [], []>} : vector<4x32xf32>, vector<32x128xf32>, vector<4x128xf32> -> vector<4x128xf32>
    %261 = arith.addf %256, %260 : vector<4x128xf32>
    %c10_294 = arith.constant 10 : index
    %c0_295 = arith.constant 0 : index
    %262 = vector.load %arg24[%c10_294, %c0_295] : memref<18x32xf32, #tpu.memory_space<vmem>>, vector<4x32xf32>
    %c10_296 = arith.constant 10 : index
    %c0_297 = arith.constant 0 : index
    %c0_298 = arith.constant 0 : index
    %263 = vector.load %arg6[%c10_296, %c0_297, %c0_298] : memref<15x32x128xf32, #tpu.memory_space<vmem>>, vector<1x32x128xf32>
    %264 = vector.shape_cast %263 : vector<1x32x128xf32> to vector<32x128xf32>
    %cst_299 = arith.constant dense<0.000000e+00> : vector<4x128xf32>
    %265 = tpu.matmul %262, %264, %cst_299 {dimension_numbers = #tpu.dot_dimension_numbers<[1], [0], [0], [1], [0, 0, 1, 1], [], []>} : vector<4x32xf32>, vector<32x128xf32>, vector<4x128xf32> -> vector<4x128xf32>
    %266 = arith.addf %261, %265 : vector<4x128xf32>
    %c11_300 = arith.constant 11 : index
    %c0_301 = arith.constant 0 : index
    %267 = vector.load %arg24[%c11_300, %c0_301] : memref<18x32xf32, #tpu.memory_space<vmem>>, vector<4x32xf32>
    %c11_302 = arith.constant 11 : index
    %c0_303 = arith.constant 0 : index
    %c0_304 = arith.constant 0 : index
    %268 = vector.load %arg6[%c11_302, %c0_303, %c0_304] : memref<15x32x128xf32, #tpu.memory_space<vmem>>, vector<1x32x128xf32>
    %269 = vector.shape_cast %268 : vector<1x32x128xf32> to vector<32x128xf32>
    %cst_305 = arith.constant dense<0.000000e+00> : vector<4x128xf32>
    %270 = tpu.matmul %267, %269, %cst_305 {dimension_numbers = #tpu.dot_dimension_numbers<[1], [0], [0], [1], [0, 0, 1, 1], [], []>} : vector<4x32xf32>, vector<32x128xf32>, vector<4x128xf32> -> vector<4x128xf32>
    %271 = arith.addf %266, %270 : vector<4x128xf32>
    %c12_306 = arith.constant 12 : index
    %c0_307 = arith.constant 0 : index
    %272 = vector.load %arg24[%c12_306, %c0_307] : memref<18x32xf32, #tpu.memory_space<vmem>>, vector<4x32xf32>
    %c12_308 = arith.constant 12 : index
    %c0_309 = arith.constant 0 : index
    %c0_310 = arith.constant 0 : index
    %273 = vector.load %arg6[%c12_308, %c0_309, %c0_310] : memref<15x32x128xf32, #tpu.memory_space<vmem>>, vector<1x32x128xf32>
    %274 = vector.shape_cast %273 : vector<1x32x128xf32> to vector<32x128xf32>
    %cst_311 = arith.constant dense<0.000000e+00> : vector<4x128xf32>
    %275 = tpu.matmul %272, %274, %cst_311 {dimension_numbers = #tpu.dot_dimension_numbers<[1], [0], [0], [1], [0, 0, 1, 1], [], []>} : vector<4x32xf32>, vector<32x128xf32>, vector<4x128xf32> -> vector<4x128xf32>
    %276 = arith.addf %271, %275 : vector<4x128xf32>
    %c13_312 = arith.constant 13 : index
    %c0_313 = arith.constant 0 : index
    %277 = vector.load %arg24[%c13_312, %c0_313] : memref<18x32xf32, #tpu.memory_space<vmem>>, vector<4x32xf32>
    %c13_314 = arith.constant 13 : index
    %c0_315 = arith.constant 0 : index
    %c0_316 = arith.constant 0 : index
    %278 = vector.load %arg6[%c13_314, %c0_315, %c0_316] : memref<15x32x128xf32, #tpu.memory_space<vmem>>, vector<1x32x128xf32>
    %279 = vector.shape_cast %278 : vector<1x32x128xf32> to vector<32x128xf32>
    %cst_317 = arith.constant dense<0.000000e+00> : vector<4x128xf32>
    %280 = tpu.matmul %277, %279, %cst_317 {dimension_numbers = #tpu.dot_dimension_numbers<[1], [0], [0], [1], [0, 0, 1, 1], [], []>} : vector<4x32xf32>, vector<32x128xf32>, vector<4x128xf32> -> vector<4x128xf32>
    %281 = arith.addf %276, %280 : vector<4x128xf32>
    %c14_318 = arith.constant 14 : index
    %c0_319 = arith.constant 0 : index
    %282 = vector.load %arg24[%c14_318, %c0_319] : memref<18x32xf32, #tpu.memory_space<vmem>>, vector<4x32xf32>
    %c14_320 = arith.constant 14 : index
    %c0_321 = arith.constant 0 : index
    %c0_322 = arith.constant 0 : index
    %283 = vector.load %arg6[%c14_320, %c0_321, %c0_322] : memref<15x32x128xf32, #tpu.memory_space<vmem>>, vector<1x32x128xf32>
    %284 = vector.shape_cast %283 : vector<1x32x128xf32> to vector<32x128xf32>
    %cst_323 = arith.constant dense<0.000000e+00> : vector<4x128xf32>
    %285 = tpu.matmul %282, %284, %cst_323 {dimension_numbers = #tpu.dot_dimension_numbers<[1], [0], [0], [1], [0, 0, 1, 1], [], []>} : vector<4x32xf32>, vector<32x128xf32>, vector<4x128xf32> -> vector<4x128xf32>
    %286 = arith.addf %281, %285 : vector<4x128xf32>
    %c0_324 = arith.constant 0 : index
    %c0_325 = arith.constant 0 : index
    %287 = vector.load %arg7[%c0_324, %c0_325] : memref<1x128xf32, #tpu.memory_space<vmem>>, vector<1x128xf32>
    %288 = vector.broadcast %287 : vector<1x128xf32> to vector<4x128xf32>
    %289 = arith.addf %286, %288 : vector<4x128xf32>
    %cst_326 = arith.constant 0.000000e+00 : f32
    %290 = vector.broadcast %cst_326 : f32 to vector<2x128xf32>
    %c0_327 = arith.constant 0 : index
    %c0_328 = arith.constant 0 : index
    %291 = vector.load %arg27[%c0_327, %c0_328] : memref<20x128xf32, #tpu.memory_space<vmem>>, vector<2x128xf32>
    tpu.vector_store %arg27[%c0_327, %c0_328], %290 {strides = array<i32>} : memref<20x128xf32, #tpu.memory_space<vmem>>, vector<2x128xf32>,
    %cst_329 = arith.constant 0.000000e+00 : f32
    %292 = vector.broadcast %cst_329 : f32 to vector<2x128xf32>
    %c18_330 = arith.constant 18 : index
    %c0_331 = arith.constant 0 : index
    %293 = vector.load %arg27[%c18_330, %c0_331] : memref<20x128xf32, #tpu.memory_space<vmem>>, vector<2x128xf32>
    tpu.vector_store %arg27[%c18_330, %c0_331], %292 {strides = array<i32>} : memref<20x128xf32, #tpu.memory_space<vmem>>, vector<2x128xf32>,
    %c0_332 = arith.constant 0 : index
    %c0_333 = arith.constant 0 : index
    %c0_334 = arith.constant 0 : index
    %294 = vector.load %arg8[%c0_332, %c0_333, %c0_334] : memref<4x128x128xf32, #tpu.memory_space<vmem>>, vector<1x128x128xf32>
    %295 = vector.shape_cast %294 : vector<1x128x128xf32> to vector<128x128xf32>
    %cst_335 = arith.constant dense<0.000000e+00> : vector<4x128xf32>
    %296 = tpu.matmul %289, %295, %cst_335 {dimension_numbers = #tpu.dot_dimension_numbers<[1], [0], [0], [1], [0, 0, 1, 1], [], []>} : vector<4x128xf32>, vector<128x128xf32>, vector<4x128xf32> -> vector<4x128xf32>
    %c0_336 = arith.constant 0 : index
    %c0_337 = arith.constant 0 : index
    %297 = vector.load %arg9[%c0_336, %c0_337] : memref<1x128xf32, #tpu.memory_space<vmem>>, vector<1x128xf32>
    %298 = vector.broadcast %297 : vector<1x128xf32> to vector<4x128xf32>
    %299 = arith.addf %296, %298 : vector<4x128xf32>
    %c2_338 = arith.constant 2 : index
    %c0_339 = arith.constant 0 : index
    %300 = tpu.strided_load %arg27[%c2_338, %c0_339] {strides = array<i32: 4, 1>} : memref<20x128xf32, #tpu.memory_space<vmem>>, vector<4x128xf32>
    tpu.strided_store %arg27[%c2_338, %c0_339], %299 {strides = array<i32: 4, 1>} : memref<20x128xf32, #tpu.memory_space<vmem>>, vector<4x128xf32>
    %c1_340 = arith.constant 1 : index
    %c0_341 = arith.constant 0 : index
    %c0_342 = arith.constant 0 : index
    %301 = vector.load %arg8[%c1_340, %c0_341, %c0_342] : memref<4x128x128xf32, #tpu.memory_space<vmem>>, vector<1x128x128xf32>
    %302 = vector.shape_cast %301 : vector<1x128x128xf32> to vector<128x128xf32>
    %cst_343 = arith.constant dense<0.000000e+00> : vector<4x128xf32>
    %303 = tpu.matmul %289, %302, %cst_343 {dimension_numbers = #tpu.dot_dimension_numbers<[1], [0], [0], [1], [0, 0, 1, 1], [], []>} : vector<4x128xf32>, vector<128x128xf32>, vector<4x128xf32> -> vector<4x128xf32>
    %c0_344 = arith.constant 0 : index
    %c0_345 = arith.constant 0 : index
    %304 = vector.load %arg9[%c0_344, %c0_345] : memref<1x128xf32, #tpu.memory_space<vmem>>, vector<1x128xf32>
    %305 = vector.broadcast %304 : vector<1x128xf32> to vector<4x128xf32>
    %306 = arith.addf %303, %305 : vector<4x128xf32>
    %c3_346 = arith.constant 3 : index
    %c0_347 = arith.constant 0 : index
    %307 = tpu.strided_load %arg27[%c3_346, %c0_347] {strides = array<i32: 4, 1>} : memref<20x128xf32, #tpu.memory_space<vmem>>, vector<4x128xf32>
    tpu.strided_store %arg27[%c3_346, %c0_347], %306 {strides = array<i32: 4, 1>} : memref<20x128xf32, #tpu.memory_space<vmem>>, vector<4x128xf32>
    %c2_348 = arith.constant 2 : index
    %c0_349 = arith.constant 0 : index
    %c0_350 = arith.constant 0 : index
    %308 = vector.load %arg8[%c2_348, %c0_349, %c0_350] : memref<4x128x128xf32, #tpu.memory_space<vmem>>, vector<1x128x128xf32>
    %309 = vector.shape_cast %308 : vector<1x128x128xf32> to vector<128x128xf32>
    %cst_351 = arith.constant dense<0.000000e+00> : vector<4x128xf32>
    %310 = tpu.matmul %289, %309, %cst_351 {dimension_numbers = #tpu.dot_dimension_numbers<[1], [0], [0], [1], [0, 0, 1, 1], [], []>} : vector<4x128xf32>, vector<128x128xf32>, vector<4x128xf32> -> vector<4x128xf32>
    %c0_352 = arith.constant 0 : index
    %c0_353 = arith.constant 0 : index
    %311 = vector.load %arg9[%c0_352, %c0_353] : memref<1x128xf32, #tpu.memory_space<vmem>>, vector<1x128xf32>
    %312 = vector.broadcast %311 : vector<1x128xf32> to vector<4x128xf32>
    %313 = arith.addf %310, %312 : vector<4x128xf32>
    %c4_354 = arith.constant 4 : index
    %c0_355 = arith.constant 0 : index
    %314 = tpu.strided_load %arg27[%c4_354, %c0_355] {strides = array<i32: 4, 1>} : memref<20x128xf32, #tpu.memory_space<vmem>>, vector<4x128xf32>
    tpu.strided_store %arg27[%c4_354, %c0_355], %313 {strides = array<i32: 4, 1>} : memref<20x128xf32, #tpu.memory_space<vmem>>, vector<4x128xf32>
    %c3_356 = arith.constant 3 : index
    %c0_357 = arith.constant 0 : index
    %c0_358 = arith.constant 0 : index
    %315 = vector.load %arg8[%c3_356, %c0_357, %c0_358] : memref<4x128x128xf32, #tpu.memory_space<vmem>>, vector<1x128x128xf32>
    %316 = vector.shape_cast %315 : vector<1x128x128xf32> to vector<128x128xf32>
    %cst_359 = arith.constant dense<0.000000e+00> : vector<4x128xf32>
    %317 = tpu.matmul %289, %316, %cst_359 {dimension_numbers = #tpu.dot_dimension_numbers<[1], [0], [0], [1], [0, 0, 1, 1], [], []>} : vector<4x128xf32>, vector<128x128xf32>, vector<4x128xf32> -> vector<4x128xf32>
    %c0_360 = arith.constant 0 : index
    %c0_361 = arith.constant 0 : index
    %318 = vector.load %arg9[%c0_360, %c0_361] : memref<1x128xf32, #tpu.memory_space<vmem>>, vector<1x128xf32>
    %319 = vector.broadcast %318 : vector<1x128xf32> to vector<4x128xf32>
    %320 = arith.addf %317, %319 : vector<4x128xf32>
    %c5_362 = arith.constant 5 : index
    %c0_363 = arith.constant 0 : index
    %321 = tpu.strided_load %arg27[%c5_362, %c0_363] {strides = array<i32: 4, 1>} : memref<20x128xf32, #tpu.memory_space<vmem>>, vector<4x128xf32>
    tpu.strided_store %arg27[%c5_362, %c0_363], %320 {strides = array<i32: 4, 1>} : memref<20x128xf32, #tpu.memory_space<vmem>>, vector<4x128xf32>
    %cst_364 = arith.constant 0.000000e+00 : f32
    %322 = vector.broadcast %cst_364 : f32 to vector<16x32xf32>
    %c0_365 = arith.constant 0 : index
    %c0_366 = arith.constant 0 : index
    %323 = vector.load %arg27[%c0_365, %c0_366] : memref<20x128xf32, #tpu.memory_space<vmem>>, vector<16x128xf32>
    %c0_367 = arith.constant 0 : index
    %c0_368 = arith.constant 0 : index
    %c0_369 = arith.constant 0 : index
    %324 = vector.load %arg10[%c0_367, %c0_368, %c0_369] : memref<5x128x32xf32, #tpu.memory_space<vmem>>, vector<1x128x32xf32>
    %325 = vector.shape_cast %324 : vector<1x128x32xf32> to vector<128x32xf32>
    %cst_370 = arith.constant dense<0.000000e+00> : vector<16x32xf32>
    %326 = tpu.matmul %323, %325, %cst_370 {dimension_numbers = #tpu.dot_dimension_numbers<[1], [0], [0], [1], [0, 0, 1, 1], [], []>} : vector<16x128xf32>, vector<128x32xf32>, vector<16x32xf32> -> vector<16x32xf32>
    %327 = arith.addf %322, %326 : vector<16x32xf32>
    %c1_371 = arith.constant 1 : index
    %c0_372 = arith.constant 0 : index
    %328 = vector.load %arg27[%c1_371, %c0_372] : memref<20x128xf32, #tpu.memory_space<vmem>>, vector<16x128xf32>
    %c1_373 = arith.constant 1 : index
    %c0_374 = arith.constant 0 : index
    %c0_375 = arith.constant 0 : index
    %329 = vector.load %arg10[%c1_373, %c0_374, %c0_375] : memref<5x128x32xf32, #tpu.memory_space<vmem>>, vector<1x128x32xf32>
    %330 = vector.shape_cast %329 : vector<1x128x32xf32> to vector<128x32xf32>
    %cst_376 = arith.constant dense<0.000000e+00> : vector<16x32xf32>
    %331 = tpu.matmul %328, %330, %cst_376 {dimension_numbers = #tpu.dot_dimension_numbers<[1], [0], [0], [1], [0, 0, 1, 1], [], []>} : vector<16x128xf32>, vector<128x32xf32>, vector<16x32xf32> -> vector<16x32xf32>
    %332 = arith.addf %327, %331 : vector<16x32xf32>
    %c2_377 = arith.constant 2 : index
    %c0_378 = arith.constant 0 : index
    %333 = vector.load %arg27[%c2_377, %c0_378] : memref<20x128xf32, #tpu.memory_space<vmem>>, vector<16x128xf32>
    %c2_379 = arith.constant 2 : index
    %c0_380 = arith.constant 0 : index
    %c0_381 = arith.constant 0 : index
    %334 = vector.load %arg10[%c2_379, %c0_380, %c0_381] : memref<5x128x32xf32, #tpu.memory_space<vmem>>, vector<1x128x32xf32>
    %335 = vector.shape_cast %334 : vector<1x128x32xf32> to vector<128x32xf32>
    %cst_382 = arith.constant dense<0.000000e+00> : vector<16x32xf32>
    %336 = tpu.matmul %333, %335, %cst_382 {dimension_numbers = #tpu.dot_dimension_numbers<[1], [0], [0], [1], [0, 0, 1, 1], [], []>} : vector<16x128xf32>, vector<128x32xf32>, vector<16x32xf32> -> vector<16x32xf32>
    %337 = arith.addf %332, %336 : vector<16x32xf32>
    %c3_383 = arith.constant 3 : index
    %c0_384 = arith.constant 0 : index
    %338 = vector.load %arg27[%c3_383, %c0_384] : memref<20x128xf32, #tpu.memory_space<vmem>>, vector<16x128xf32>
    %c3_385 = arith.constant 3 : index
    %c0_386 = arith.constant 0 : index
    %c0_387 = arith.constant 0 : index
    %339 = vector.load %arg10[%c3_385, %c0_386, %c0_387] : memref<5x128x32xf32, #tpu.memory_space<vmem>>, vector<1x128x32xf32>
    %340 = vector.shape_cast %339 : vector<1x128x32xf32> to vector<128x32xf32>
    %cst_388 = arith.constant dense<0.000000e+00> : vector<16x32xf32>
    %341 = tpu.matmul %338, %340, %cst_388 {dimension_numbers = #tpu.dot_dimension_numbers<[1], [0], [0], [1], [0, 0, 1, 1], [], []>} : vector<16x128xf32>, vector<128x32xf32>, vector<16x32xf32> -> vector<16x32xf32>
    %342 = arith.addf %337, %341 : vector<16x32xf32>
    %c4_389 = arith.constant 4 : index
    %c0_390 = arith.constant 0 : index
    %343 = vector.load %arg27[%c4_389, %c0_390] : memref<20x128xf32, #tpu.memory_space<vmem>>, vector<16x128xf32>
    %c4_391 = arith.constant 4 : index
    %c0_392 = arith.constant 0 : index
    %c0_393 = arith.constant 0 : index
    %344 = vector.load %arg10[%c4_391, %c0_392, %c0_393] : memref<5x128x32xf32, #tpu.memory_space<vmem>>, vector<1x128x32xf32>
    %345 = vector.shape_cast %344 : vector<1x128x32xf32> to vector<128x32xf32>
    %cst_394 = arith.constant dense<0.000000e+00> : vector<16x32xf32>
    %346 = tpu.matmul %343, %345, %cst_394 {dimension_numbers = #tpu.dot_dimension_numbers<[1], [0], [0], [1], [0, 0, 1, 1], [], []>} : vector<16x128xf32>, vector<128x32xf32>, vector<16x32xf32> -> vector<16x32xf32>
    %347 = arith.addf %342, %346 : vector<16x32xf32>
    %cst_395 = arith.constant 0.000000e+00 : f32
    %348 = vector.broadcast %cst_395 : f32 to vector<16x32xf32>
    %c0_396 = arith.constant 0 : index
    %c0_397 = arith.constant 0 : index
    %349 = vector.load %arg29[%c0_396, %c0_397] : memref<20x32xf32, #tpu.memory_space<vmem>>, vector<16x32xf32>
    %c0_398 = arith.constant 0 : index
    %c0_399 = arith.constant 0 : index
    %c0_400 = arith.constant 0 : index
    %350 = vector.load %arg11[%c0_398, %c0_399, %c0_400] : memref<5x32x32xf32, #tpu.memory_space<vmem>>, vector<1x32x32xf32>
    %351 = vector.shape_cast %350 : vector<1x32x32xf32> to vector<32x32xf32>
    %cst_401 = arith.constant dense<0.000000e+00> : vector<16x32xf32>
    %352 = tpu.matmul %349, %351, %cst_401 {dimension_numbers = #tpu.dot_dimension_numbers<[1], [0], [0], [1], [0, 0, 1, 1], [], []>} : vector<16x32xf32>, vector<32x32xf32>, vector<16x32xf32> -> vector<16x32xf32>
    %353 = arith.addf %348, %352 : vector<16x32xf32>
    %c1_402 = arith.constant 1 : index
    %c0_403 = arith.constant 0 : index
    %354 = vector.load %arg29[%c1_402, %c0_403] : memref<20x32xf32, #tpu.memory_space<vmem>>, vector<16x32xf32>
    %c1_404 = arith.constant 1 : index
    %c0_405 = arith.constant 0 : index
    %c0_406 = arith.constant 0 : index
    %355 = vector.load %arg11[%c1_404, %c0_405, %c0_406] : memref<5x32x32xf32, #tpu.memory_space<vmem>>, vector<1x32x32xf32>
    %356 = vector.shape_cast %355 : vector<1x32x32xf32> to vector<32x32xf32>
    %cst_407 = arith.constant dense<0.000000e+00> : vector<16x32xf32>
    %357 = tpu.matmul %354, %356, %cst_407 {dimension_numbers = #tpu.dot_dimension_numbers<[1], [0], [0], [1], [0, 0, 1, 1], [], []>} : vector<16x32xf32>, vector<32x32xf32>, vector<16x32xf32> -> vector<16x32xf32>
    %358 = arith.addf %353, %357 : vector<16x32xf32>
    %c2_408 = arith.constant 2 : index
    %c0_409 = arith.constant 0 : index
    %359 = vector.load %arg29[%c2_408, %c0_409] : memref<20x32xf32, #tpu.memory_space<vmem>>, vector<16x32xf32>
    %c2_410 = arith.constant 2 : index
    %c0_411 = arith.constant 0 : index
    %c0_412 = arith.constant 0 : index
    %360 = vector.load %arg11[%c2_410, %c0_411, %c0_412] : memref<5x32x32xf32, #tpu.memory_space<vmem>>, vector<1x32x32xf32>
    %361 = vector.shape_cast %360 : vector<1x32x32xf32> to vector<32x32xf32>
    %cst_413 = arith.constant dense<0.000000e+00> : vector<16x32xf32>
    %362 = tpu.matmul %359, %361, %cst_413 {dimension_numbers = #tpu.dot_dimension_numbers<[1], [0], [0], [1], [0, 0, 1, 1], [], []>} : vector<16x32xf32>, vector<32x32xf32>, vector<16x32xf32> -> vector<16x32xf32>
    %363 = arith.addf %358, %362 : vector<16x32xf32>
    %c3_414 = arith.constant 3 : index
    %c0_415 = arith.constant 0 : index
    %364 = vector.load %arg29[%c3_414, %c0_415] : memref<20x32xf32, #tpu.memory_space<vmem>>, vector<16x32xf32>
    %c3_416 = arith.constant 3 : index
    %c0_417 = arith.constant 0 : index
    %c0_418 = arith.constant 0 : index
    %365 = vector.load %arg11[%c3_416, %c0_417, %c0_418] : memref<5x32x32xf32, #tpu.memory_space<vmem>>, vector<1x32x32xf32>
    %366 = vector.shape_cast %365 : vector<1x32x32xf32> to vector<32x32xf32>
    %cst_419 = arith.constant dense<0.000000e+00> : vector<16x32xf32>
    %367 = tpu.matmul %364, %366, %cst_419 {dimension_numbers = #tpu.dot_dimension_numbers<[1], [0], [0], [1], [0, 0, 1, 1], [], []>} : vector<16x32xf32>, vector<32x32xf32>, vector<16x32xf32> -> vector<16x32xf32>
    %368 = arith.addf %363, %367 : vector<16x32xf32>
    %c4_420 = arith.constant 4 : index
    %c0_421 = arith.constant 0 : index
    %369 = vector.load %arg29[%c4_420, %c0_421] : memref<20x32xf32, #tpu.memory_space<vmem>>, vector<16x32xf32>
    %c4_422 = arith.constant 4 : index
    %c0_423 = arith.constant 0 : index
    %c0_424 = arith.constant 0 : index
    %370 = vector.load %arg11[%c4_422, %c0_423, %c0_424] : memref<5x32x32xf32, #tpu.memory_space<vmem>>, vector<1x32x32xf32>
    %371 = vector.shape_cast %370 : vector<1x32x32xf32> to vector<32x32xf32>
    %cst_425 = arith.constant dense<0.000000e+00> : vector<16x32xf32>
    %372 = tpu.matmul %369, %371, %cst_425 {dimension_numbers = #tpu.dot_dimension_numbers<[1], [0], [0], [1], [0, 0, 1, 1], [], []>} : vector<16x32xf32>, vector<32x32xf32>, vector<16x32xf32> -> vector<16x32xf32>
    %373 = arith.addf %368, %372 : vector<16x32xf32>
    %374 = arith.addf %347, %373 : vector<16x32xf32>
    %c0_426 = arith.constant 0 : index
    %c0_427 = arith.constant 0 : index
    %375 = vector.load %arg12[%c0_426, %c0_427] : memref<1x32xf32, #tpu.memory_space<vmem>>, vector<1x32xf32>
    %376 = vector.broadcast %375 : vector<1x32xf32> to vector<16x32xf32>
    %377 = arith.addf %374, %376 : vector<16x32xf32>
    %cst_428 = arith.constant 0.000000e+00 : f32
    %378 = vector.broadcast %cst_428 : f32 to vector<16x32xf32>
    %379 = arith.cmpf ogt, %377, %378 : vector<16x32xf32>
    %cst_429 = arith.constant 2.000000e-01 : f32
    %380 = vector.broadcast %cst_429 : f32 to vector<16x32xf32>
    %381 = arith.mulf %380, %377 : vector<16x32xf32>
    %382 = arith.select %379, %377, %381 : vector<16x32xi1>, vector<16x32xf32>
    %cst_430 = arith.constant 0.000000e+00 : f32
    %383 = vector.broadcast %cst_430 : f32 to vector<2x32xf32>
    %c0_431 = arith.constant 0 : index
    %c0_432 = arith.constant 0 : index
    %384 = vector.load %arg28[%c0_431, %c0_432] : memref<68x32xf32, #tpu.memory_space<vmem>>, vector<2x32xf32>
    tpu.vector_store %arg28[%c0_431, %c0_432], %383 {strides = array<i32>} : memref<68x32xf32, #tpu.memory_space<vmem>>, vector<2x32xf32>,
    %cst_433 = arith.constant 0.000000e+00 : f32
    %385 = vector.broadcast %cst_433 : f32 to vector<2x32xf32>
    %c66_434 = arith.constant 66 : index
    %c0_435 = arith.constant 0 : index
    %386 = vector.load %arg28[%c66_434, %c0_435] : memref<68x32xf32, #tpu.memory_space<vmem>>, vector<2x32xf32>
    tpu.vector_store %arg28[%c66_434, %c0_435], %385 {strides = array<i32>} : memref<68x32xf32, #tpu.memory_space<vmem>>, vector<2x32xf32>,
    %c0_436 = arith.constant 0 : index
    %c0_437 = arith.constant 0 : index
    %c0_438 = arith.constant 0 : index
    %387 = vector.load %arg13[%c0_436, %c0_437, %c0_438] : memref<4x32x32xf32, #tpu.memory_space<vmem>>, vector<1x32x32xf32>
    %388 = vector.shape_cast %387 : vector<1x32x32xf32> to vector<32x32xf32>
    %cst_439 = arith.constant dense<0.000000e+00> : vector<16x32xf32>
    %389 = tpu.matmul %382, %388, %cst_439 {dimension_numbers = #tpu.dot_dimension_numbers<[1], [0], [0], [1], [0, 0, 1, 1], [], []>} : vector<16x32xf32>, vector<32x32xf32>, vector<16x32xf32> -> vector<16x32xf32>
    %c0_440 = arith.constant 0 : index
    %c0_441 = arith.constant 0 : index
    %390 = vector.load %arg14[%c0_440, %c0_441] : memref<1x32xf32, #tpu.memory_space<vmem>>, vector<1x32xf32>
    %391 = vector.broadcast %390 : vector<1x32xf32> to vector<16x32xf32>
    %392 = arith.addf %389, %391 : vector<16x32xf32>
    %c2_442 = arith.constant 2 : index
    %c0_443 = arith.constant 0 : index
    %393 = tpu.strided_load %arg28[%c2_442, %c0_443] {strides = array<i32: 4, 1>} : memref<68x32xf32, #tpu.memory_space<vmem>>, vector<16x32xf32>
    tpu.strided_store %arg28[%c2_442, %c0_443], %392 {strides = array<i32: 4, 1>} : memref<68x32xf32, #tpu.memory_space<vmem>>, vector<16x32xf32>
    %c1_444 = arith.constant 1 : index
    %c0_445 = arith.constant 0 : index
    %c0_446 = arith.constant 0 : index
    %394 = vector.load %arg13[%c1_444, %c0_445, %c0_446] : memref<4x32x32xf32, #tpu.memory_space<vmem>>, vector<1x32x32xf32>
    %395 = vector.shape_cast %394 : vector<1x32x32xf32> to vector<32x32xf32>
    %cst_447 = arith.constant dense<0.000000e+00> : vector<16x32xf32>
    %396 = tpu.matmul %382, %395, %cst_447 {dimension_numbers = #tpu.dot_dimension_numbers<[1], [0], [0], [1], [0, 0, 1, 1], [], []>} : vector<16x32xf32>, vector<32x32xf32>, vector<16x32xf32> -> vector<16x32xf32>
    %c0_448 = arith.constant 0 : index
    %c0_449 = arith.constant 0 : index
    %397 = vector.load %arg14[%c0_448, %c0_449] : memref<1x32xf32, #tpu.memory_space<vmem>>, vector<1x32xf32>
    %398 = vector.broadcast %397 : vector<1x32xf32> to vector<16x32xf32>
    %399 = arith.addf %396, %398 : vector<16x32xf32>
    %c3_450 = arith.constant 3 : index
    %c0_451 = arith.constant 0 : index
    %400 = tpu.strided_load %arg28[%c3_450, %c0_451] {strides = array<i32: 4, 1>} : memref<68x32xf32, #tpu.memory_space<vmem>>, vector<16x32xf32>
    tpu.strided_store %arg28[%c3_450, %c0_451], %399 {strides = array<i32: 4, 1>} : memref<68x32xf32, #tpu.memory_space<vmem>>, vector<16x32xf32>
    %c2_452 = arith.constant 2 : index
    %c0_453 = arith.constant 0 : index
    %c0_454 = arith.constant 0 : index
    %401 = vector.load %arg13[%c2_452, %c0_453, %c0_454] : memref<4x32x32xf32, #tpu.memory_space<vmem>>, vector<1x32x32xf32>
    %402 = vector.shape_cast %401 : vector<1x32x32xf32> to vector<32x32xf32>
    %cst_455 = arith.constant dense<0.000000e+00> : vector<16x32xf32>
    %403 = tpu.matmul %382, %402, %cst_455 {dimension_numbers = #tpu.dot_dimension_numbers<[1], [0], [0], [1], [0, 0, 1, 1], [], []>} : vector<16x32xf32>, vector<32x32xf32>, vector<16x32xf32> -> vector<16x32xf32>
    %c0_456 = arith.constant 0 : index
    %c0_457 = arith.constant 0 : index
    %404 = vector.load %arg14[%c0_456, %c0_457] : memref<1x32xf32, #tpu.memory_space<vmem>>, vector<1x32xf32>
    %405 = vector.broadcast %404 : vector<1x32xf32> to vector<16x32xf32>
    %406 = arith.addf %403, %405 : vector<16x32xf32>
    %c4_458 = arith.constant 4 : index
    %c0_459 = arith.constant 0 : index
    %407 = tpu.strided_load %arg28[%c4_458, %c0_459] {strides = array<i32: 4, 1>} : memref<68x32xf32, #tpu.memory_space<vmem>>, vector<16x32xf32>
    tpu.strided_store %arg28[%c4_458, %c0_459], %406 {strides = array<i32: 4, 1>} : memref<68x32xf32, #tpu.memory_space<vmem>>, vector<16x32xf32>
    %c3_460 = arith.constant 3 : index
    %c0_461 = arith.constant 0 : index
    %c0_462 = arith.constant 0 : index
    %408 = vector.load %arg13[%c3_460, %c0_461, %c0_462] : memref<4x32x32xf32, #tpu.memory_space<vmem>>, vector<1x32x32xf32>
    %409 = vector.shape_cast %408 : vector<1x32x32xf32> to vector<32x32xf32>
    %cst_463 = arith.constant dense<0.000000e+00> : vector<16x32xf32>
    %410 = tpu.matmul %382, %409, %cst_463 {dimension_numbers = #tpu.dot_dimension_numbers<[1], [0], [0], [1], [0, 0, 1, 1], [], []>} : vector<16x32xf32>, vector<32x32xf32>, vector<16x32xf32> -> vector<16x32xf32>
    %c0_464 = arith.constant 0 : index
    %c0_465 = arith.constant 0 : index
    %411 = vector.load %arg14[%c0_464, %c0_465] : memref<1x32xf32, #tpu.memory_space<vmem>>, vector<1x32xf32>
    %412 = vector.broadcast %411 : vector<1x32xf32> to vector<16x32xf32>
    %413 = arith.addf %410, %412 : vector<16x32xf32>
    %c5_466 = arith.constant 5 : index
    %c0_467 = arith.constant 0 : index
    %414 = tpu.strided_load %arg28[%c5_466, %c0_467] {strides = array<i32: 4, 1>} : memref<68x32xf32, #tpu.memory_space<vmem>>, vector<16x32xf32>
    tpu.strided_store %arg28[%c5_466, %c0_467], %413 {strides = array<i32: 4, 1>} : memref<68x32xf32, #tpu.memory_space<vmem>>, vector<16x32xf32>
    %cst_468 = arith.constant 0.000000e+00 : f32
    %415 = vector.broadcast %cst_468 : f32 to vector<64x8xf32>
    %c0_469 = arith.constant 0 : index
    %c0_470 = arith.constant 0 : index
    %416 = vector.load %arg28[%c0_469, %c0_470] : memref<68x32xf32, #tpu.memory_space<vmem>>, vector<64x32xf32>
    %c0_471 = arith.constant 0 : index
    %c0_472 = arith.constant 0 : index
    %c0_473 = arith.constant 0 : index
    %417 = vector.load %arg15[%c0_471, %c0_472, %c0_473] : memref<5x32x8xf32, #tpu.memory_space<vmem>>, vector<1x32x8xf32>
    %418 = vector.shape_cast %417 : vector<1x32x8xf32> to vector<32x8xf32>
    %cst_474 = arith.constant dense<0.000000e+00> : vector<64x8xf32>
    %419 = tpu.matmul %416, %418, %cst_474 {dimension_numbers = #tpu.dot_dimension_numbers<[1], [0], [0], [1], [0, 0, 1, 1], [], []>} : vector<64x32xf32>, vector<32x8xf32>, vector<64x8xf32> -> vector<64x8xf32>
    %420 = arith.addf %415, %419 : vector<64x8xf32>
    %c1_475 = arith.constant 1 : index
    %c0_476 = arith.constant 0 : index
    %421 = vector.load %arg28[%c1_475, %c0_476] : memref<68x32xf32, #tpu.memory_space<vmem>>, vector<64x32xf32>
    %c1_477 = arith.constant 1 : index
    %c0_478 = arith.constant 0 : index
    %c0_479 = arith.constant 0 : index
    %422 = vector.load %arg15[%c1_477, %c0_478, %c0_479] : memref<5x32x8xf32, #tpu.memory_space<vmem>>, vector<1x32x8xf32>
    %423 = vector.shape_cast %422 : vector<1x32x8xf32> to vector<32x8xf32>
    %cst_480 = arith.constant dense<0.000000e+00> : vector<64x8xf32>
    %424 = tpu.matmul %421, %423, %cst_480 {dimension_numbers = #tpu.dot_dimension_numbers<[1], [0], [0], [1], [0, 0, 1, 1], [], []>} : vector<64x32xf32>, vector<32x8xf32>, vector<64x8xf32> -> vector<64x8xf32>
    %425 = arith.addf %420, %424 : vector<64x8xf32>
    %c2_481 = arith.constant 2 : index
    %c0_482 = arith.constant 0 : index
    %426 = vector.load %arg28[%c2_481, %c0_482] : memref<68x32xf32, #tpu.memory_space<vmem>>, vector<64x32xf32>
    %c2_483 = arith.constant 2 : index
    %c0_484 = arith.constant 0 : index
    %c0_485 = arith.constant 0 : index
    %427 = vector.load %arg15[%c2_483, %c0_484, %c0_485] : memref<5x32x8xf32, #tpu.memory_space<vmem>>, vector<1x32x8xf32>
    %428 = vector.shape_cast %427 : vector<1x32x8xf32> to vector<32x8xf32>
    %cst_486 = arith.constant dense<0.000000e+00> : vector<64x8xf32>
    %429 = tpu.matmul %426, %428, %cst_486 {dimension_numbers = #tpu.dot_dimension_numbers<[1], [0], [0], [1], [0, 0, 1, 1], [], []>} : vector<64x32xf32>, vector<32x8xf32>, vector<64x8xf32> -> vector<64x8xf32>
    %430 = arith.addf %425, %429 : vector<64x8xf32>
    %c3_487 = arith.constant 3 : index
    %c0_488 = arith.constant 0 : index
    %431 = vector.load %arg28[%c3_487, %c0_488] : memref<68x32xf32, #tpu.memory_space<vmem>>, vector<64x32xf32>
    %c3_489 = arith.constant 3 : index
    %c0_490 = arith.constant 0 : index
    %c0_491 = arith.constant 0 : index
    %432 = vector.load %arg15[%c3_489, %c0_490, %c0_491] : memref<5x32x8xf32, #tpu.memory_space<vmem>>, vector<1x32x8xf32>
    %433 = vector.shape_cast %432 : vector<1x32x8xf32> to vector<32x8xf32>
    %cst_492 = arith.constant dense<0.000000e+00> : vector<64x8xf32>
    %434 = tpu.matmul %431, %433, %cst_492 {dimension_numbers = #tpu.dot_dimension_numbers<[1], [0], [0], [1], [0, 0, 1, 1], [], []>} : vector<64x32xf32>, vector<32x8xf32>, vector<64x8xf32> -> vector<64x8xf32>
    %435 = arith.addf %430, %434 : vector<64x8xf32>
    %c4_493 = arith.constant 4 : index
    %c0_494 = arith.constant 0 : index
    %436 = vector.load %arg28[%c4_493, %c0_494] : memref<68x32xf32, #tpu.memory_space<vmem>>, vector<64x32xf32>
    %c4_495 = arith.constant 4 : index
    %c0_496 = arith.constant 0 : index
    %c0_497 = arith.constant 0 : index
    %437 = vector.load %arg15[%c4_495, %c0_496, %c0_497] : memref<5x32x8xf32, #tpu.memory_space<vmem>>, vector<1x32x8xf32>
    %438 = vector.shape_cast %437 : vector<1x32x8xf32> to vector<32x8xf32>
    %cst_498 = arith.constant dense<0.000000e+00> : vector<64x8xf32>
    %439 = tpu.matmul %436, %438, %cst_498 {dimension_numbers = #tpu.dot_dimension_numbers<[1], [0], [0], [1], [0, 0, 1, 1], [], []>} : vector<64x32xf32>, vector<32x8xf32>, vector<64x8xf32> -> vector<64x8xf32>
    %440 = arith.addf %435, %439 : vector<64x8xf32>
    %cst_499 = arith.constant 0.000000e+00 : f32
    %441 = vector.broadcast %cst_499 : f32 to vector<64x8xf32>
    %c0_500 = arith.constant 0 : index
    %c0_501 = arith.constant 0 : index
    %442 = vector.load %arg30[%c0_500, %c0_501] : memref<68x8xf32, #tpu.memory_space<vmem>>, vector<64x8xf32>
    %c0_502 = arith.constant 0 : index
    %c0_503 = arith.constant 0 : index
    %c0_504 = arith.constant 0 : index
    %443 = vector.load %arg16[%c0_502, %c0_503, %c0_504] : memref<5x8x8xf32, #tpu.memory_space<vmem>>, vector<1x8x8xf32>
    %444 = vector.shape_cast %443 : vector<1x8x8xf32> to vector<8x8xf32>
    %cst_505 = arith.constant dense<0.000000e+00> : vector<64x8xf32>
    %445 = tpu.matmul %442, %444, %cst_505 {dimension_numbers = #tpu.dot_dimension_numbers<[1], [0], [0], [1], [0, 0, 1, 1], [], []>} : vector<64x8xf32>, vector<8x8xf32>, vector<64x8xf32> -> vector<64x8xf32>
    %446 = arith.addf %441, %445 : vector<64x8xf32>
    %c1_506 = arith.constant 1 : index
    %c0_507 = arith.constant 0 : index
    %447 = vector.load %arg30[%c1_506, %c0_507] : memref<68x8xf32, #tpu.memory_space<vmem>>, vector<64x8xf32>
    %c1_508 = arith.constant 1 : index
    %c0_509 = arith.constant 0 : index
    %c0_510 = arith.constant 0 : index
    %448 = vector.load %arg16[%c1_508, %c0_509, %c0_510] : memref<5x8x8xf32, #tpu.memory_space<vmem>>, vector<1x8x8xf32>
    %449 = vector.shape_cast %448 : vector<1x8x8xf32> to vector<8x8xf32>
    %cst_511 = arith.constant dense<0.000000e+00> : vector<64x8xf32>
    %450 = tpu.matmul %447, %449, %cst_511 {dimension_numbers = #tpu.dot_dimension_numbers<[1], [0], [0], [1], [0, 0, 1, 1], [], []>} : vector<64x8xf32>, vector<8x8xf32>, vector<64x8xf32> -> vector<64x8xf32>
    %451 = arith.addf %446, %450 : vector<64x8xf32>
    %c2_512 = arith.constant 2 : index
    %c0_513 = arith.constant 0 : index
    %452 = vector.load %arg30[%c2_512, %c0_513] : memref<68x8xf32, #tpu.memory_space<vmem>>, vector<64x8xf32>
    %c2_514 = arith.constant 2 : index
    %c0_515 = arith.constant 0 : index
    %c0_516 = arith.constant 0 : index
    %453 = vector.load %arg16[%c2_514, %c0_515, %c0_516] : memref<5x8x8xf32, #tpu.memory_space<vmem>>, vector<1x8x8xf32>
    %454 = vector.shape_cast %453 : vector<1x8x8xf32> to vector<8x8xf32>
    %cst_517 = arith.constant dense<0.000000e+00> : vector<64x8xf32>
    %455 = tpu.matmul %452, %454, %cst_517 {dimension_numbers = #tpu.dot_dimension_numbers<[1], [0], [0], [1], [0, 0, 1, 1], [], []>} : vector<64x8xf32>, vector<8x8xf32>, vector<64x8xf32> -> vector<64x8xf32>
    %456 = arith.addf %451, %455 : vector<64x8xf32>
    %c3_518 = arith.constant 3 : index
    %c0_519 = arith.constant 0 : index
    %457 = vector.load %arg30[%c3_518, %c0_519] : memref<68x8xf32, #tpu.memory_space<vmem>>, vector<64x8xf32>
    %c3_520 = arith.constant 3 : index
    %c0_521 = arith.constant 0 : index
    %c0_522 = arith.constant 0 : index
    %458 = vector.load %arg16[%c3_520, %c0_521, %c0_522] : memref<5x8x8xf32, #tpu.memory_space<vmem>>, vector<1x8x8xf32>
    %459 = vector.shape_cast %458 : vector<1x8x8xf32> to vector<8x8xf32>
    %cst_523 = arith.constant dense<0.000000e+00> : vector<64x8xf32>
    %460 = tpu.matmul %457, %459, %cst_523 {dimension_numbers = #tpu.dot_dimension_numbers<[1], [0], [0], [1], [0, 0, 1, 1], [], []>} : vector<64x8xf32>, vector<8x8xf32>, vector<64x8xf32> -> vector<64x8xf32>
    %461 = arith.addf %456, %460 : vector<64x8xf32>
    %c4_524 = arith.constant 4 : index
    %c0_525 = arith.constant 0 : index
    %462 = vector.load %arg30[%c4_524, %c0_525] : memref<68x8xf32, #tpu.memory_space<vmem>>, vector<64x8xf32>
    %c4_526 = arith.constant 4 : index
    %c0_527 = arith.constant 0 : index
    %c0_528 = arith.constant 0 : index
    %463 = vector.load %arg16[%c4_526, %c0_527, %c0_528] : memref<5x8x8xf32, #tpu.memory_space<vmem>>, vector<1x8x8xf32>
    %464 = vector.shape_cast %463 : vector<1x8x8xf32> to vector<8x8xf32>
    %cst_529 = arith.constant dense<0.000000e+00> : vector<64x8xf32>
    %465 = tpu.matmul %462, %464, %cst_529 {dimension_numbers = #tpu.dot_dimension_numbers<[1], [0], [0], [1], [0, 0, 1, 1], [], []>} : vector<64x8xf32>, vector<8x8xf32>, vector<64x8xf32> -> vector<64x8xf32>
    %466 = arith.addf %461, %465 : vector<64x8xf32>
    %467 = arith.addf %440, %466 : vector<64x8xf32>
    %c0_530 = arith.constant 0 : index
    %c0_531 = arith.constant 0 : index
    %468 = vector.load %arg17[%c0_530, %c0_531] : memref<1x8xf32, #tpu.memory_space<vmem>>, vector<1x8xf32>
    %469 = vector.broadcast %468 : vector<1x8xf32> to vector<64x8xf32>
    %470 = arith.addf %467, %469 : vector<64x8xf32>
    %cst_532 = arith.constant 0.000000e+00 : f32
    %471 = vector.broadcast %cst_532 : f32 to vector<64x8xf32>
    %472 = arith.cmpf ogt, %470, %471 : vector<64x8xf32>
    %cst_533 = arith.constant 2.000000e-01 : f32
    %473 = vector.broadcast %cst_533 : f32 to vector<64x8xf32>
    %474 = arith.mulf %473, %470 : vector<64x8xf32>
    %475 = arith.select %472, %470, %474 : vector<64x8xi1>, vector<64x8xf32>
    %c0_534 = arith.constant 0 : index
    %c0_535 = arith.constant 0 : index
    %476 = vector.load %arg18[%c0_534, %c0_535] : memref<8x4xf32, #tpu.memory_space<vmem>>, vector<8x4xf32>
    %cst_536 = arith.constant dense<0.000000e+00> : vector<64x4xf32>
    %477 = tpu.matmul %475, %476, %cst_536 {dimension_numbers = #tpu.dot_dimension_numbers<[1], [0], [0], [1], [0, 0, 1, 1], [], []>} : vector<64x8xf32>, vector<8x4xf32>, vector<64x4xf32> -> vector<64x4xf32>
    %c0_537 = arith.constant 0 : index
    %c0_538 = arith.constant 0 : index
    %c0_539 = arith.constant 0 : index
    %478 = vector.load %arg1[%c0_537, %c0_538, %c0_539] : memref<1x64x6xf32, #tpu.memory_space<vmem>>, vector<1x64x6xf32>
    %479 = vector.shape_cast %478 : vector<1x64x6xf32> to vector<64x6xf32>
    %c0_540 = arith.constant 0 : index
    %c0_541 = arith.constant 0 : index
    %480 = vector.load %arg19[%c0_540, %c0_541] : memref<6x4xf32, #tpu.memory_space<vmem>>, vector<6x4xf32>
    %cst_542 = arith.constant dense<0.000000e+00> : vector<64x4xf32>
    %481 = tpu.matmul %479, %480, %cst_542 {dimension_numbers = #tpu.dot_dimension_numbers<[1], [0], [0], [1], [0, 0, 1, 1], [], []>} : vector<64x6xf32>, vector<6x4xf32>, vector<64x4xf32> -> vector<64x4xf32>
    %482 = arith.addf %477, %481 : vector<64x4xf32>
    %c0_543 = arith.constant 0 : index
    %c0_544 = arith.constant 0 : index
    %483 = vector.load %arg20[%c0_543, %c0_544] : memref<1x4xf32, #tpu.memory_space<vmem>>, vector<1x4xf32>
    %484 = vector.broadcast %483 : vector<1x4xf32> to vector<64x4xf32>
    %485 = arith.addf %482, %484 : vector<64x4xf32>
    %486 = math.tanh %485 : vector<64x4xf32>
    %c0_545 = arith.constant 0 : index
    %c0_546 = arith.constant 0 : index
    %c0_547 = arith.constant 0 : index
    %487 = vector.load %arg21[%c0_545, %c0_546, %c0_547] : memref<1x64x4xf32, #tpu.memory_space<vmem>>, vector<1x64x4xf32>
    %488 = vector.shape_cast %487 : vector<1x64x4xf32> to vector<64x4xf32>
    %489 = vector.shape_cast %486 : vector<64x4xf32> to vector<1x64x4xf32>
    tpu.vector_store %arg21[%c0_545, %c0_546, %c0_547], %489 {strides = array<i32>} : memref<1x64x4xf32, #tpu.memory_space<vmem>>, vector<1x64x4xf32>,
    return
  }
  func.func @transform_0(%arg0: i32) -> (i32, i32, i32) {
    %c0_i32 = arith.constant 0 : i32
    %c0_i32_0 = arith.constant 0 : i32
    %c0_i32_1 = arith.constant 0 : i32
    return %arg0, %c0_i32, %c0_i32_0 : i32, i32, i32
  }
  func.func @transform_1(%arg0: i32) -> (i32, i32, i32) {
    %c0_i32 = arith.constant 0 : i32
    %c0_i32_0 = arith.constant 0 : i32
    %c0_i32_1 = arith.constant 0 : i32
    %c0_i32_2 = arith.constant 0 : i32
    return %c0_i32, %c0_i32_0, %c0_i32_1 : i32, i32, i32
  }
  func.func @transform_2(%arg0: i32) -> (i32, i32) {
    %c0_i32 = arith.constant 0 : i32
    %c0_i32_0 = arith.constant 0 : i32
    %c0_i32_1 = arith.constant 0 : i32
    return %c0_i32, %c0_i32_0 : i32, i32
  }
  func.func @transform_3(%arg0: i32) -> (i32, i32, i32) {
    %c0_i32 = arith.constant 0 : i32
    %c0_i32_0 = arith.constant 0 : i32
    %c0_i32_1 = arith.constant 0 : i32
    %c0_i32_2 = arith.constant 0 : i32
    return %c0_i32, %c0_i32_0, %c0_i32_1 : i32, i32, i32
  }
  func.func @transform_4(%arg0: i32) -> (i32, i32) {
    %c0_i32 = arith.constant 0 : i32
    %c0_i32_0 = arith.constant 0 : i32
    %c0_i32_1 = arith.constant 0 : i32
    return %c0_i32, %c0_i32_0 : i32, i32
  }
  func.func @transform_5(%arg0: i32) -> (i32, i32, i32) {
    %c0_i32 = arith.constant 0 : i32
    %c0_i32_0 = arith.constant 0 : i32
    %c0_i32_1 = arith.constant 0 : i32
    %c0_i32_2 = arith.constant 0 : i32
    return %c0_i32, %c0_i32_0, %c0_i32_1 : i32, i32, i32
  }
  func.func @transform_6(%arg0: i32) -> (i32, i32) {
    %c0_i32 = arith.constant 0 : i32
    %c0_i32_0 = arith.constant 0 : i32
    %c0_i32_1 = arith.constant 0 : i32
    return %c0_i32, %c0_i32_0 : i32, i32
  }
  func.func @transform_7(%arg0: i32) -> (i32, i32, i32) {
    %c0_i32 = arith.constant 0 : i32
    %c0_i32_0 = arith.constant 0 : i32
    %c0_i32_1 = arith.constant 0 : i32
    %c0_i32_2 = arith.constant 0 : i32
    return %c0_i32, %c0_i32_0, %c0_i32_1 : i32, i32, i32
  }
  func.func @transform_8(%arg0: i32) -> (i32, i32) {
    %c0_i32 = arith.constant 0 : i32
    %c0_i32_0 = arith.constant 0 : i32
    %c0_i32_1 = arith.constant 0 : i32
    return %c0_i32, %c0_i32_0 : i32, i32
  }
  func.func @transform_9(%arg0: i32) -> (i32, i32, i32) {
    %c0_i32 = arith.constant 0 : i32
    %c0_i32_0 = arith.constant 0 : i32
    %c0_i32_1 = arith.constant 0 : i32
    %c0_i32_2 = arith.constant 0 : i32
    return %c0_i32, %c0_i32_0, %c0_i32_1 : i32, i32, i32
  }
  func.func @transform_10(%arg0: i32) -> (i32, i32, i32) {
    %c0_i32 = arith.constant 0 : i32
    %c0_i32_0 = arith.constant 0 : i32
    %c0_i32_1 = arith.constant 0 : i32
    %c0_i32_2 = arith.constant 0 : i32
    return %c0_i32, %c0_i32_0, %c0_i32_1 : i32, i32, i32
  }
  func.func @transform_11(%arg0: i32) -> (i32, i32) {
    %c0_i32 = arith.constant 0 : i32
    %c0_i32_0 = arith.constant 0 : i32
    %c0_i32_1 = arith.constant 0 : i32
    return %c0_i32, %c0_i32_0 : i32, i32
  }
  func.func @transform_12(%arg0: i32) -> (i32, i32, i32) {
    %c0_i32 = arith.constant 0 : i32
    %c0_i32_0 = arith.constant 0 : i32
    %c0_i32_1 = arith.constant 0 : i32
    %c0_i32_2 = arith.constant 0 : i32
    return %c0_i32, %c0_i32_0, %c0_i32_1 : i32, i32, i32
  }
  func.func @transform_13(%arg0: i32) -> (i32, i32) {
    %c0_i32 = arith.constant 0 : i32
    %c0_i32_0 = arith.constant 0 : i32
    %c0_i32_1 = arith.constant 0 : i32
    return %c0_i32, %c0_i32_0 : i32, i32
  }
  func.func @transform_14(%arg0: i32) -> (i32, i32, i32) {
    %c0_i32 = arith.constant 0 : i32
    %c0_i32_0 = arith.constant 0 : i32
    %c0_i32_1 = arith.constant 0 : i32
    %c0_i32_2 = arith.constant 0 : i32
    return %c0_i32, %c0_i32_0, %c0_i32_1 : i32, i32, i32
  }
  func.func @transform_15(%arg0: i32) -> (i32, i32, i32) {
    %c0_i32 = arith.constant 0 : i32
    %c0_i32_0 = arith.constant 0 : i32
    %c0_i32_1 = arith.constant 0 : i32
    %c0_i32_2 = arith.constant 0 : i32
    return %c0_i32, %c0_i32_0, %c0_i32_1 : i32, i32, i32
  }
  func.func @transform_16(%arg0: i32) -> (i32, i32) {
    %c0_i32 = arith.constant 0 : i32
    %c0_i32_0 = arith.constant 0 : i32
    %c0_i32_1 = arith.constant 0 : i32
    return %c0_i32, %c0_i32_0 : i32, i32
  }
  func.func @transform_17(%arg0: i32) -> (i32, i32) {
    %c0_i32 = arith.constant 0 : i32
    %c0_i32_0 = arith.constant 0 : i32
    %c0_i32_1 = arith.constant 0 : i32
    return %c0_i32, %c0_i32_0 : i32, i32
  }
  func.func @transform_18(%arg0: i32) -> (i32, i32) {
    %c0_i32 = arith.constant 0 : i32
    %c0_i32_0 = arith.constant 0 : i32
    %c0_i32_1 = arith.constant 0 : i32
    return %c0_i32, %c0_i32_0 : i32, i32
  }
  func.func @transform_19(%arg0: i32) -> (i32, i32) {
    %c0_i32 = arith.constant 0 : i32
    %c0_i32_0 = arith.constant 0 : i32
    %c0_i32_1 = arith.constant 0 : i32
    return %c0_i32, %c0_i32_0 : i32, i32
  }
  func.func @transform_20(%arg0: i32) -> (i32, i32, i32) {
    %c0_i32 = arith.constant 0 : i32
    %c0_i32_0 = arith.constant 0 : i32
    %c0_i32_1 = arith.constant 0 : i32
    return %arg0, %c0_i32, %c0_i32_0 : i32, i32, i32
  }
}

</mosaic_0001>

<bundles_post_ra>
// kernel: tpu_custom_call.1
= control target key start
LH: loop header
LB: loop body
LE: loop exit
PB: predicated region body
PF: predicated region fallthrough
CT: control target
= control target key end

     0   :  { %s14200_s0 = inlined_call_operand.vmem [shape: f32[2,64,6], index: 0, kind: input, shape index: {}]   ;;  %s14201_s1 = inlined_call_operand.vmem [shape: f32[15,6,8], index: 1, kind: input, shape index: {}]   ;;  %s14202_s2 = inlined_call_operand.vmem [shape: f32[1,8], index: 2, kind: input, shape index: {}]   ;;  %s14203_s3 = inlined_call_operand.hbm [shape: f32[15,8,32], index: 3, kind: input, shape index: {}]   ;;  %s14204_s4 = inlined_call_operand.vmem [shape: f32[1,32], index: 4, kind: input, shape index: {}]   ;;  %s14205_s5 = inlined_call_operand.vmem [shape: f32[15,32,128], index: 5, kind: input, shape index: {}]   ;;  %s14206_s6 = inlined_call_operand.hbm [shape: f32[1,128], index: 6, kind: input, shape index: {}]   ;;  %s14207_s7 = inlined_call_operand.vmem [shape: f32[4,128,128], index: 7, kind: input, shape index: {}]   ;;  %s14208_s8 = inlined_call_operand.hbm [shape: f32[1,128], index: 8, kind: input, shape index: {}]   ;;  %s14209_s9 = inlined_call_operand.vmem [shape: f32[5,128,32], index: 9, kind: input, shape index: {}]   ;;  %s14210_s10 = inlined_call_operand.vmem [shape: f32[5,32,32], index: 10, kind: input, shape index: {}]   ;;  %s14211_s11 = inlined_call_operand.hbm [shape: f32[1,32], index: 11, kind: input, shape index: {}]   ;;  %s14212_s12 = inlined_call_operand.hbm [shape: f32[4,32,32], index: 12, kind: input, shape index: {}]   ;;  %s14213_s13 = inlined_call_operand.vmem [shape: f32[1,32], index: 13, kind: input, shape index: {}]   ;;  %s14214_s14 = inlined_call_operand.vmem [shape: f32[5,32,8], index: 14, kind: input, shape index: {}]   ;;  %s14215_s15 = inlined_call_operand.hbm [shape: f32[5,8,8], index: 15, kind: input, shape index: {}]   ;;  %s14216_s16 = inlined_call_operand.vmem [shape: f32[1,8], index: 16, kind: input, shape index: {}]   ;;  %s14217_s17 = inlined_call_operand.vmem [shape: f32[8,4], index: 17, kind: input, shape index: {}]   ;;  %s14218_s18 = inlined_call_operand.vmem [shape: f32[6,4], index: 18, kind: input, shape index: {}]   ;;  %s14219_s19 = inlined_call_operand.vmem [shape: f32[1,4], index: 19, kind: input, shape index: {}]   ;;  %s14220_s20 = inlined_call_operand.vmem [shape: f32[2,64,4], index: 20, kind: output, shape index: {}]  }
   0x1   :  { %14230 = sst [smem:[#allocation26_spill]] %s14200_s0 }
   0x2   :  { %14231 = sst [smem:[#allocation27_spill]] %s14201_s1 }
   0x3   :  { %14232 = sst [smem:[#allocation28_spill]] %s14202_s2 }
   0x4   :  { %14233 = sst [smem:[#allocation29_spill]] %s14203_s3 }
   0x5   :  { %14234 = sst [smem:[#allocation30_spill]] %s14204_s4 }
   0x6   :  { %14235 = sst [smem:[#allocation31_spill]] %s14206_s6 }
   0x7   :  { %14236 = sst [smem:[#allocation32_spill]] %s14219_s19 }
   0x8   :  { %14237 = sst [smem:[#allocation33_spill]] %s14220_s20 }
   0x9   :  { %25 = vsyncpa [#allocation12], 0 }
   0xa   :  { %26 = vsyncpa [#allocation14], 0 }
   0xb   :  { %27 = vsyncpa [#allocation17], 0 }
   0xc   :  { %28 = vsyncpa [#allocation20], 0  ;;  %s12499_s1 = smov 0  }
   0xd LB: > { %14238 = sst [smem:[#allocation25_spill]] %s12381_s1  ;;  %s12383_s22 = smov [#allocation13]   ;;  %s12381_s1 = sphi %s12499_s1, %s34_s1  }
   0xe   : > { %s528_s23 = sshll.u32 %s12383_s22, 4  ;;  %s12505_s24 = sadd.s32 4294967295, %s12381_s1   ;;  %s12510_s23 = int_to_ptr.vmem [resolvable:$true] %s528_s23 }
   0xf   : > { %p9205_p0 = scmp.ge.s32.totalorder %s12381_s1, 1  ;;  %p490_p1 = scmp.lt.s32.totalorder %s12381_s1, 3 }
  0x10   : > { %p14224_p2 = scmp.eq.s32.totalorder %s12505_s24, 0  ;;  %s12384_s25 = smov [#allocation16]  }
  0x11   : > { %p12512_p3 = pnand %p9205_p0, %p490_p1  ;;  %s559_s3 = sshll.u32 %s12384_s25, 4  ;;  %s12518_s3 = int_to_ptr.vmem [resolvable:$true] %s559_s3 }
  0x12   : > { %s12385_s26 = smov [#allocation11]   ;;  %s12386_s4 = smov [#allocation15]  }
  0x13   : > { %s14239_s2 = scalar_select %p12512_p3, 1, 0 }
  0x14   : > { %p12125_p4 = pneg %p12512_p3  ;;  %s508_s27 = sshll.u32 %s12385_s26, 4  ;;  %s12526_s27 = int_to_ptr.vmem [resolvable:$true] %s508_s27 }
  0x15   : > { %s12528_s29 = sshll.u32 %s12386_s4, 4  ;;  %s14241_s6 = sld [smem:[#allocation31_spill]]  ;;  %s543_s29 = int_to_ptr.vmem [resolvable:$true] %s12528_s29 }
  0x16   : > { %p12522_p5 = pnand %p14224_p2, %p12125_p4 }
  0x18   : > { %p12538_p7 = pneg %p12522_p5 }
  0x1b   : > { %s12191_s21 = scalar_lea.hbm %s14241_s6, 16 }
  0x1c   : > { %p12192_p6 = scmp.ne.s32.totalorder %s14241_s6, %s12191_s21  ;;  %p12198_p10 = scmp.lt.u32.totalorder %s12191_s21, %s14241_s6 }
  0x1e   : > { %p12194_p8 = pnand %p12538_p7, %p12192_p6 }
  0x20   : > { %p12195_p9 = pneg %p12194_p8 }
  0x22   : > { %p12200_p11 = pnand %p12198_p10, %p12195_p9 }
  0x24   : > { %12203 = shalt.err (!%p12200_p11)
}
  0x25   : > { %s12204_s30 = scalar_lea.vmem %s12510_s23, 16  ;;  %s12211_s0 = scalar_lea.vmem %s12510_s23, 32 }
  0x26   : > { %p12205_p12 = scmp.ne.s32.totalorder %s12510_s23, %s12204_s30  ;;  %p12212_p1 = scmp.lt.s32.totalorder %s12510_s23, %s12510_s23 }
  0x27   : > { %p12213_p4 = scmp.lt.s32.totalorder %s12211_s0, %s12204_s30 }
  0x28   : > { %p12207_p13 = pnand %p12205_p12, %p12538_p7 }
  0x29   : > { %p12214_p6 = por %p12213_p4, %p12212_p1 }
  0x2a   : > { %p12208_p0 = pneg %p12207_p13 }
  0x2c   : > { %p12215_p8 = pnand %p12214_p6, %p12208_p0 }
  0x2e   : > { %12218 = shalt.err (!%p12215_p8)
}
  0x2f   : > { %12131 = dma.hbm_to_vmem [thread:$0]  (!%p12522_p5), %s14241_s6, 16, %s12510_s23, [#allocation14]  }
  0x30   : > { %s12219_s4 = scalar_lea.hbm %s14211_s11, 16 }
  0x31   : > { %p12220_p9 = scmp.ne.s32.totalorder %s14211_s11, %s12219_s4  ;;  %p12226_p12 = scmp.lt.u32.totalorder %s12219_s4, %s14211_s11 }
  0x33   : > { %p12222_p10 = pnand %p12220_p9, %p12538_p7 }
  0x35   : > { %p12223_p11 = pneg %p12222_p10 }
  0x37   : > { %p12228_p13 = pnand %p12226_p12, %p12223_p11 }
  0x39   : > { %12231 = shalt.err (!%p12228_p13)
}
  0x3a   : > { %s12232_s23 = scalar_lea.vmem %s12518_s3, 16  ;;  %s12239_s19 = scalar_lea.vmem %s12518_s3, 32 }
  0x3b   : > { %p12233_p0 = scmp.ne.s32.totalorder %s12518_s3, %s12232_s23  ;;  %p12240_p6 = scmp.lt.s32.totalorder %s12518_s3, %s12518_s3 }
  0x3c   : > { %p12241_p8 = scmp.lt.s32.totalorder %s12239_s19, %s12232_s23 }
  0x3d   : > { %p12235_p1 = pnand %p12233_p0, %p12538_p7 }
  0x3e   : > { %p12242_p9 = por %p12241_p8, %p12240_p6 }
  0x3f   : > { %p12236_p4 = pneg %p12235_p1 }
  0x41   : > { %p12243_p10 = pnand %p12242_p9, %p12236_p4 }
  0x43   : > { %12246 = shalt.err (!%p12243_p10)
}
  0x44   : > { %12137 = dma.hbm_to_vmem [thread:$0]  (!%p12522_p5), %s14211_s11, 16, %s12518_s3, [#allocation17]  }
  0x45   : > { %s14243_s25 = sld [smem:[#allocation29_spill]] }
  0x4b   : > { %s12247_s4 = scalar_lea.hbm %s14243_s25, 1920 }
  0x4c   : > { %p12248_p11 = scmp.ne.s32.totalorder %s14243_s25, %s12247_s4  ;;  %p12254_p0 = scmp.lt.u32.totalorder %s12247_s4, %s14243_s25 }
  0x4e   : > { %p12250_p12 = pnand %p12248_p11, %p12538_p7 }
  0x50   : > { %p12251_p13 = pneg %p12250_p12 }
  0x52   : > { %p12256_p1 = pnand %p12254_p0, %p12251_p13 }
  0x54   : > { %12259 = shalt.err (!%p12256_p1)
}
  0x55   : > { %s12260_s3 = scalar_lea.vmem %s12526_s27, 1920  ;;  %p12268_p9 = scmp.lt.s32.totalorder %s12526_s27, %s12526_s27 }
  0x56   : > { %p12261_p4 = scmp.ne.s32.totalorder %s12526_s27, %s12260_s3  ;;  %p12269_p10 = scmp.lt.s32.totalorder %s12260_s3, %s12260_s3 }
  0x58   : > { %p12263_p6 = pnand %p12261_p4, %p12538_p7  ;;  %p12270_p11 = por %p12269_p10, %p12268_p9 }
  0x5a   : > { %p12264_p8 = pneg %p12263_p6 }
  0x5c   : > { %p12271_p12 = pnand %p12270_p11, %p12264_p8 }
  0x5e   : > { %12274 = shalt.err (!%p12271_p12)
}
  0x5f   : > { %s14226_s20 = smov 128   ;;  %s14228_s1 = smov 8  }
  0x60   : > { %12128 = dma.hbm_to_vmem [thread:$0]  (!%p12522_p5), %s14243_s25, 1920, %s12526_s27, [#allocation12], %s14226_s20, %s14226_s20, %s14228_s1  }
  0x61   : > { %s12275_s0 = scalar_lea.hbm %s14208_s8, 16 }
  0x62   : > { %p12276_p13 = scmp.ne.s32.totalorder %s14208_s8, %s12275_s0  ;;  %p12282_p4 = scmp.lt.u32.totalorder %s12275_s0, %s14208_s8 }
  0x64   : > { %p12278_p0 = pnand %p12276_p13, %p12538_p7 }
  0x66   : > { %p12279_p1 = pneg %p12278_p0 }
  0x68   : > { %p12284_p6 = pnand %p12282_p4, %p12279_p1 }
  0x6a   : > { %12287 = shalt.err (!%p12284_p6)
}
  0x6b   : > { %s12288_s21 = scalar_lea.vmem %s543_s29, 16  ;;  %s12295_s27 = scalar_lea.vmem %s543_s29, 32 }
  0x6c   : > { %p12289_p8 = scmp.ne.s32.totalorder %s543_s29, %s12288_s21  ;;  %p12296_p11 = scmp.lt.s32.totalorder %s543_s29, %s543_s29 }
  0x6d   : > { %p12297_p12 = scmp.lt.s32.totalorder %s12295_s27, %s12288_s21 }
  0x6e   : > { %p12291_p9 = pnand %p12289_p8, %p12538_p7 }
  0x6f   : > { %p12298_p2 = por %p12297_p12, %p12296_p11 }
  0x70   : > { %p12292_p10 = pneg %p12291_p9 }
  0x72   : > { %p12299_p3 = pnand %p12298_p2, %p12292_p10 }
  0x74   : > { %12302 = shalt.err (!%p12299_p3)
}
  0x75   : > { %12134 = dma.hbm_to_vmem [thread:$0]  (!%p12522_p5), %s14208_s8, 16, %s543_s29, [#allocation14]  }
  0x76   : > { %s12389_s6 = smov [#allocation18]   ;;  %s12390_s0 = smov [#allocation19]  }
  0x77   : > { %s569_s30 = sshll.u32 %s12389_s6, 4  ;;  %s588_s23 = sshll.u32 %s12390_s0, 4  ;;  %s570_s30 = int_to_ptr.vmem [resolvable:$true] %s569_s30  ;;  %s589_s23 = int_to_ptr.vmem [resolvable:$true] %s588_s23 }
  0x78   : > { %s12303_s20 = scalar_lea.hbm %s14212_s12, 2048 }
  0x79   : > { %p12304_p2 = scmp.ne.s32.totalorder %s14212_s12, %s12303_s20  ;;  %p12310_p0 = scmp.lt.u32.totalorder %s12303_s20, %s14212_s12 }
  0x7b   : > { %p12306_p3 = pnand %p12304_p2, %p12538_p7 }
  0x7d   : > { %p12307_p13 = pneg %p12306_p3 }
  0x7f   : > { %p12312_p1 = pnand %p12310_p0, %p12307_p13 }
  0x81   : > { %12315 = shalt.err (!%p12312_p1)
}
  0x82   : > { %s12316_s29 = scalar_lea.vmem %s570_s30, 2048  ;;  %p12324_p9 = scmp.lt.s32.totalorder %s570_s30, %s570_s30 }
  0x83   : > { %p12317_p4 = scmp.ne.s32.totalorder %s570_s30, %s12316_s29  ;;  %p12325_p10 = scmp.lt.s32.totalorder %s12316_s29, %s12316_s29 }
  0x85   : > { %p12319_p6 = pnand %p12317_p4, %p12538_p7  ;;  %p12326_p11 = por %p12325_p10, %p12324_p9 }
  0x87   : > { %p12320_p8 = pneg %p12319_p6 }
  0x89   : > { %p12327_p12 = pnand %p12326_p11, %p12320_p8 }
  0x8b   : > { %12330 = shalt.err (!%p12327_p12)
}
  0x8c   : > { %s14244_s4 = smov 8   ;;  %s14245_s6 = smov 128  }
  0x8d   : > { %12140 = dma.hbm_to_vmem [thread:$0]  (!%p12522_p5), %s14212_s12, 2048, %s570_s30, [#allocation17], %s14245_s6, %s14245_s6, %s14244_s4  }
  0x8e   : > { %s12331_s3 = scalar_lea.hbm %s14215_s15, 640 }
  0x8f   : > { %p12332_p2 = scmp.ne.s32.totalorder %s14215_s15, %s12331_s3  ;;  %p12338_p0 = scmp.lt.u32.totalorder %s12331_s3, %s14215_s15 }
  0x91   : > { %p12334_p3 = pnand %p12332_p2, %p12538_p7 }
  0x93   : > { %p12335_p13 = pneg %p12334_p3 }
  0x95   : > { %p12340_p1 = pnand %p12338_p0, %p12335_p13 }
  0x97   : > { %12343 = shalt.err (!%p12340_p1)
}
  0x98   : > { %s12344_s1 = scalar_lea.vmem %s589_s23, 640  ;;  %p12352_p9 = scmp.lt.s32.totalorder %s589_s23, %s589_s23 }
  0x99   : > { %p12345_p4 = scmp.ne.s32.totalorder %s589_s23, %s12344_s1  ;;  %p12353_p10 = scmp.lt.s32.totalorder %s12344_s1, %s12344_s1 }
  0x9b   : > { %p12347_p6 = pnand %p12345_p4, %p12538_p7  ;;  %p12354_p11 = por %p12353_p10, %p12352_p9 }
  0x9d   : > { %p12348_p8 = pneg %p12347_p6 }
  0x9f   : > { %p12355_p12 = pnand %p12354_p11, %p12348_p8 }
  0xa1   : > { %12358 = shalt.err (!%p12355_p12)
}
  0xa2   : > { %12143 = dma.hbm_to_vmem [thread:$0]  (!%p12522_p5), %s14215_s15, 640, %s589_s23, [#allocation20], %s14245_s6, %s14245_s6, %s14244_s4  }
  0xa3   : > { %p14246_p2 = scmp.ne.s32.totalorder %s14239_s2, 0 }
  0xa4   : > { %p14247_p7 = scmp.eq.s32.totalorder (!%p14246_p2), %s12505_s24, 0 }
  0xa5   : > { %624 = sbr.rel (%p14246_p2) target bundleno = 2843 (0xb1b), region = 100 }
  0xac   : > { %12364 = dma.done.wait (%p14247_p7), [#allocation12], 1920   ;;  %p14248_p3 = pmov %p14247_p7 }
  0xae   : > { %12366 = vsyncadd (%p14248_p3), [#allocation12], 4294965376  ;;  %p14249_p13 = pmov %p14248_p3 }
  0xaf   : > { %p14250_p0 = pmov %p14248_p3 }
  0xb0   : > { %12368 = dma.done.wait (%p14249_p13), [#allocation14], 32  }
  0xb1   : > { %12370 = vsyncadd (%p14250_p0), [#allocation14], 4294967264  ;;  %p14251_p1 = pmov %p14250_p0 }
  0xb2   : > { %p14252_p5 = pmov %p14250_p0 }
  0xb3   : > { %12372 = dma.done.wait (%p14251_p1), [#allocation17], 2064  }
  0xb4   : > { %12374 = vsyncadd (%p14252_p5), [#allocation17], 4294965232  ;;  %p14253_p4 = pmov %p14250_p0 }
  0xb5   : > { %p14254_p6 = pmov %p14250_p0 }
  0xb6   : > { %12376 = dma.done.wait (%p14253_p4), [#allocation20], 640  }
  0xb7   : > { %12378 = vsyncadd (%p14254_p6), [#allocation20], 4294966656  ;;  %p702_p8 = scmp.lt.s32.totalorder %s12505_s24, 1  ;;  %vm720_vm0 = vcmask 47104   ;;  %v12391_v0 = vmov 0.0   ;;  %vm775_vm1 = vcmask 1045504  }
  0xb8   : > { %721 = vst.msk [vmem:[#allocation2] sm:$0x7f] %vm720_vm0, %v12391_v0  ;;  %722 = vst.msk [vmem:[#allocation2 + $0x47] sm:$0x7f] %vm720_vm0, %v12391_v0  ;;  %s14255_s23 = sld [smem:[#allocation26_spill]]  ;;  %vm723_vm2 = vcmask 48128  }
  0xb9   : > { %5594 = vst [vmem:[#allocation7] sm:$0x3] %v12391_v0  ;;  %5595 = vst [vmem:[#allocation7 + $0x12] sm:$0x3] %v12391_v0  ;;  %s14263_s24 = smov (!%p702_p8, %s12505_s24), 1  ;;  %s14256_s19 = sld [smem:[#allocation27_spill]] }
  0xba   : > { %s9749_s2 = sshll.u32 %s14263_s24, 6  ;;  %vm2981_vm3 = vcmask 58368   ;;  %vm3046_vm4 = vcmask 63488   ;;  %s14257_s29 = sld [smem:[#allocation28_spill]]  ;;  %vm2984_vm5 = vcmask 64512   ;;  %vm4384_vm14 = vcmask 260096  }
  0xbb   : > { %2982 = vst.msk [vmem:[#allocation10] sm:$0x3] %vm2981_vm3, %v12391_v0  ;;  %2983 = vst.msk [vmem:[#allocation10 + $0x42] sm:$0x3] %vm2981_vm3, %v12391_v0  ;;  %vm12393_vm15 = vmmov 0   ;;  %vm4363_vm0 = vcmask 261120  }
  0xbc   : > { %3047 = vst.msk [vmem:[#allocation3] sm:$0x7f] %vm3046_vm4, %v12391_v0  ;;  %3048 = vst.msk [vmem:[#allocation3 + $0x17] sm:$0x7f] %vm3046_vm4, %v12391_v0  ;;  %vm4360_vm3 = vcmask 254976   ;;  %s14258_s28 = sld [smem:[#allocation30_spill]] }
  0xbd   : > { %4385 = vst.msk [vmem:[#allocation4] sm:$0x7f] %vm4384_vm14, %v12391_v0  ;;  %4386 = vst.msk [vmem:[#allocation4 + $0xb] sm:$0x7f] %vm4384_vm14, %v12391_v0  ;;  %s14259_s6 = sld [smem:[#allocation32_spill]]  ;;  %s14260_s21 = sld [smem:[#allocation33_spill]] }
  0xbe   : > { %s12703_s4 = scalar_lea.vmem %s14255_s23, %s9749_s2  ;;  %4361 = vst.msk [vmem:[#allocation9] sm:$0x3] %vm4360_vm3, %v12391_v0  ;;  %4362 = vst.msk [vmem:[#allocation9 + $0x12] sm:$0x3] %vm4360_vm3, %v12391_v0 }
  0xbf   : > { %v9224_v1 = vld [vmem:[%s14256_s19 + $0x8] sm:$0x3f]  ;;  %v712_v2 = vld [vmem:[%s12703_s4] sm:$0xff]  ;;  %v714_v5 = vld [vmem:[%s12703_s4 + $0x10] sm:$0xff]  ;;  %6916 = vst.msk [vmem:[#allocation8] sm:$0x3] %vm4360_vm3, %v12391_v0 }
  0xc0   : > { %v713_v3 = vld [vmem:[%s12703_s4 + $0x8] sm:$0xff]  ;;  %10341 = vmatprep.subr.msk.mxu0 %vm775_vm1, %v9224_v1  ;;  %724 = vst.msk [vmem:[#allocation2 + $0x7] sm:$0xff] %vm723_vm2, %v712_v2  ;;  %v740_v4 = vld [vmem:[%s14256_s19] sm:$0x3f]  ;;  %11861 = vmatprep.subr.msk.mxu1 %vm775_vm1, %v9224_v1  ;;  %726 = vst.msk [vmem:[#allocation2 + $0x17] sm:$0xff] %vm723_vm2, %v714_v5 }
  0xc1   : > { %725 = vst.msk [vmem:[#allocation2 + $0xf] sm:$0xff] %vm723_vm2, %v713_v3  ;;  %10342 = vmatpush3.msk.msra.mxu0 %vm775_vm1, %v9224_v1  ;;  %v715_v6 = vld [vmem:[%s12703_s4 + $0x18] sm:$0xff]  ;;  %v716_v7 = vld [vmem:[%s12703_s4 + $0x20] sm:$0xff]  ;;  %v717_v8 = vld [vmem:[%s12703_s4 + $0x28] sm:$0xff]  ;;  %11862 = vmatpush3.msk.msra.mxu1 %vm775_vm1, %v9224_v1 }
  0xc2   : > { %10355 = vmatprep.subr.msk.mxu0 %vm775_vm1, %v740_v4  ;;  %727 = vst.msk [vmem:[#allocation2 + $0x1f] sm:$0xff] %vm723_vm2, %v715_v6  ;;  %728 = vst.msk [vmem:[#allocation2 + $0x27] sm:$0xff] %vm723_vm2, %v716_v7  ;;  %v718_v9 = vld [vmem:[%s12703_s4 + $0x30] sm:$0xff]  ;;  %v719_v10 = vld [vmem:[%s12703_s4 + $0x38] sm:$0xff] }
  0xc3   : > { %729 = vst.msk [vmem:[#allocation2 + $0x2f] sm:$0xff] %vm723_vm2, %v717_v8  ;;  %730 = vst.msk [vmem:[#allocation2 + $0x37] sm:$0xff] %vm723_vm2, %v718_v9  ;;  %v9243_v14 = vld [vmem:[%s14256_s19 + $0x10] sm:$0x3f]  ;;  %v9253_v17 = vld [vmem:[%s14256_s19 + $0x18] sm:$0x3f]  ;;  %s711_s27 = scalar_lea.vmem %s14260_s21, %s9749_s2 }
  0xc4   : > { %731 = vst.msk [vmem:[#allocation2 + $0x3f] sm:$0xff] %vm723_vm2, %v719_v10  ;;  %v9263_v30 = vld [vmem:[%s14256_s19 + $0x20] sm:$0x3f]  ;;  %v9273_v41 = vld [vmem:[%s14256_s19 + $0x28] sm:$0x3f] }
  0xc5   : > { %v9283_v50 = vld [vmem:[%s14256_s19 + $0x30] sm:$0x3f]  ;;  %v9293_v59 = vld [vmem:[%s14256_s19 + $0x38] sm:$0x3f]  ;;  %v9303_v5 = vld [vmem:[%s14256_s19 + $0x40] sm:$0x3f] }
  0xc6   : > { %6917 = vst.msk [vmem:[#allocation8 + $0x42] sm:$0x3] %vm4360_vm3, %v12391_v0 }
  0xc7   : > { %v741_v11 = vld [vmem:[#allocation2 + $0x1] sm:$0xff] }
  0xc8   : > { %v12732_v12 = vld [vmem:[#allocation2 + $0x9] sm:$0xff]  ;;  %v732_v13 = vld [vmem:[#allocation2] sm:$0xff]  ;;  %10343 = vmatprep.mubr.msk.f32.mxu0 %vm723_vm2, %v741_v11  ;;  %v12774_v23 = vld [vmem:[#allocation2 + $0x11] sm:$0xff] }
  0xc9   : > { %10344 = vmatmul.mubr.msk.f32.vlgmr.msra.gmra.mrb[0].mxu0 %vm723_vm2, %v12732_v12  ;;  %v12743_v15 = vld [vmem:[#allocation2 + $0x8] sm:$0xff]  ;;  %v12745_v16 = vld [vmem:[#allocation2 + $0x10] sm:$0xff]  ;;  %v12755_v18 = vld [vmem:[#allocation2 + $0x18] sm:$0xff]  ;;  %10346 = vmatprep.mubr.msk.f32.mxu1 %vm723_vm2, %v12774_v23 }
  0xca   : > { %10356 = vmatpush3.msk.msra.mxu0 %vm775_vm1, %v740_v4  ;;  %10357 = vmatprep.mubr.msk.f32.mxu0 %vm723_vm2, %v732_v13  ;;  %v12757_v19 = vld [vmem:[#allocation2 + $0x20] sm:$0xff]  ;;  %v12764_v20 = vld [vmem:[#allocation2 + $0x28] sm:$0xff]  ;;  %v12766_v21 = vld [vmem:[#allocation2 + $0x30] sm:$0xff] }
  0xcb   : > { %10369 = vmatprep.subr.msk.mxu0 %vm775_vm1, %v9243_v14  ;;  %v12772_v22 = vld [vmem:[#allocation2 + $0x38] sm:$0xff]  ;;  %v1016_v24 = vld [vmem:[#allocation2 + $0x2] sm:$0xff]  ;;  %v12789_v27 = vld [vmem:[#allocation2 + $0xa] sm:$0xff] }
  0xcc   : > { %v12776_v25 = vld [vmem:[#allocation2 + $0x19] sm:$0xff]  ;;  %v12780_v26 = vld [vmem:[#allocation2 + $0x21] sm:$0xff]  ;;  %v12793_v29 = vld [vmem:[#allocation2 + $0x29] sm:$0xff] }
  0xcd   : > { %10347 = vmatmul.mubr.msk.f32.vlgmr.msra.gmra.mrb[0].mxu1 %vm723_vm2, %v12776_v25  ;;  %v12791_v28 = vld [vmem:[#allocation2 + $0x12] sm:$0xff]  ;;  %v12809_v32 = vld [vmem:[#allocation2 + $0x1a] sm:$0xff]  ;;  %v12811_v33 = vld [vmem:[#allocation2 + $0x22] sm:$0xff] }
  0xce   : > { %10349 = vmatprep.mubr.msk.f32.mxu1 %vm723_vm2, %v12780_v26  ;;  %v12798_v31 = vld [vmem:[#allocation2 + $0x31] sm:$0xff]  ;;  %v12814_v34 = vld [vmem:[#allocation2 + $0x39] sm:$0xff]  ;;  %v1166_v38 = vld [vmem:[#allocation2 + $0x3] sm:$0xff] }
  0xcf   : > { %v12822_v35 = vld [vmem:[#allocation2 + $0x2a] sm:$0xff]  ;;  %v12824_v36 = vld [vmem:[#allocation2 + $0x32] sm:$0xff]  ;;  %v12830_v37 = vld [vmem:[#allocation2 + $0x3a] sm:$0xff] }
  0xd0   : > { %v12835_v39 = vld [vmem:[#allocation2 + $0xb] sm:$0xff]  ;;  %v12837_v40 = vld [vmem:[#allocation2 + $0x13] sm:$0xff]  ;;  %v12847_v42 = vld [vmem:[#allocation2 + $0x1b] sm:$0xff] }
  0xd1   : > { %10358 = vmatmul.mubr.msk.f32.vlgmr.msra.gmra.mrb[0].mxu0 %vm723_vm2, %v12743_v15  ;;  %10350 = vmatmul.mubr.msk.f32.gmra.mrb[2].mxu1 %vm723_vm2, %v12793_v29  ;;  %v12849_v43 = vld [vmem:[#allocation2 + $0x23] sm:$0xff]  ;;  %v12856_v44 = vld [vmem:[#allocation2 + $0x2b] sm:$0xff]  ;;  %v12858_v45 = vld [vmem:[#allocation2 + $0x33] sm:$0xff] }
  0xd2   : > { %10370 = vmatpush3.msk.msra.mxu0 %vm775_vm1, %v9243_v14  ;;  %10360 = vmatprep.mubr.msk.f32.mxu0 %vm723_vm2, %v12745_v16  ;;  %v12864_v46 = vld [vmem:[#allocation2 + $0x3b] sm:$0xff]  ;;  %v1316_v47 = vld [vmem:[#allocation2 + $0x4] sm:$0xff]  ;;  %v12869_v48 = vld [vmem:[#allocation2 + $0xc] sm:$0xff] }
  0xd3   : > { %10383 = vmatprep.subr.msk.mxu0 %vm775_vm1, %v9253_v17  ;;  %10352 = vmatprep.mubr.msk.f32.mxu1 %vm723_vm2, %v12798_v31  ;;  %v12871_v49 = vld [vmem:[#allocation2 + $0x14] sm:$0xff]  ;;  %v12881_v51 = vld [vmem:[#allocation2 + $0x1c] sm:$0xff]  ;;  %v12883_v52 = vld [vmem:[#allocation2 + $0x24] sm:$0xff] }
  0xd4   : > { %v12890_v53 = vld [vmem:[#allocation2 + $0x2c] sm:$0xff]  ;;  %v12892_v54 = vld [vmem:[#allocation2 + $0x34] sm:$0xff]  ;;  %v12898_v55 = vld [vmem:[#allocation2 + $0x3c] sm:$0xff] }
  0xd5   : > { %10361 = vmatmul.mubr.msk.f32.gmra.mrb[2].mxu0 %vm723_vm2, %v12755_v18  ;;  %10353 = vmatmul.mubr.msk.f32.gmra.mrb[4].mxu1 %vm723_vm2, %v12814_v34  ;;  %v1466_v56 = vld [vmem:[#allocation2 + $0x5] sm:$0xff]  ;;  %v12903_v57 = vld [vmem:[#allocation2 + $0xd] sm:$0xff]  ;;  %v12905_v58 = vld [vmem:[#allocation2 + $0x15] sm:$0xff] }
  0xd6   : > { %10363 = vmatprep.mubr.msk.f32.mxu0 %vm723_vm2, %v12757_v19  ;;  %v12915_v60 = vld [vmem:[#allocation2 + $0x1d] sm:$0xff]  ;;  %v12917_v61 = vld [vmem:[#allocation2 + $0x25] sm:$0xff]  ;;  %v12924_v62 = vld [vmem:[#allocation2 + $0x2d] sm:$0xff] }
  0xd7   : > { %v12926_v63 = vld [vmem:[#allocation2 + $0x35] sm:$0xff]  ;;  %v12932_v1 = vld [vmem:[#allocation2 + $0x3d] sm:$0xff]  ;;  %v1616_v2 = vld [vmem:[#allocation2 + $0x6] sm:$0xff] }
  0xd8   : > { %v12937_v3 = vld [vmem:[#allocation2 + $0xe] sm:$0xff]  ;;  %v12939_v4 = vld [vmem:[#allocation2 + $0x16] sm:$0xff]  ;;  %v12949_v6 = vld [vmem:[#allocation2 + $0x1e] sm:$0xff] }
  0xd9   : > { %10364 = vmatmul.mubr.msk.f32.gmra.mrb[4].mxu0 %vm723_vm2, %v12764_v20  ;;  %v12951_v7 = vld [vmem:[#allocation2 + $0x26] sm:$0xff]  ;;  %v12958_v8 = vld [vmem:[#allocation2 + $0x2e] sm:$0xff]  ;;  %v12960_v9 = vld [vmem:[#allocation2 + $0x36] sm:$0xff] }
  0xda   : > { %10366 = vmatprep.mubr.msk.f32.mxu0 %vm723_vm2, %v12766_v21  ;;  %v12966_v10 = vld [vmem:[#allocation2 + $0x3e] sm:$0xff]  ;;  %v1766_v11 = vld [vmem:[#allocation2 + $0x7] sm:$0xff]  ;;  %v1767_v13 = vld [vmem:[#allocation2 + $0xf] sm:$0xff] }
  0xdb   : > { %v1768_v14 = vld [vmem:[#allocation2 + $0x17] sm:$0xff] }
  0xdd   : > { %10367 = vmatmul.mubr.msk.f32.gmra.mrb[6].mxu0 %vm723_vm2, %v12772_v22 }
  0xde   : > { %10371 = vmatprep.mubr.msk.f32.mxu0 %vm723_vm2, %v1016_v24  ;;  %v1769_v24 = vld [vmem:[#allocation2 + $0x1f] sm:$0xff] }
  0xe1   : > { %10372 = vmatmul.mubr.msk.f32.vlgmr.msra.gmra.mrb[0].mxu0 %vm723_vm2, %v12789_v27 }
  0xe2   : > { %10384 = vmatpush3.msk.msra.mxu0 %vm775_vm1, %v9253_v17  ;;  %10374 = vmatprep.mubr.msk.f32.mxu0 %vm723_vm2, %v12791_v28  ;;  %v9313_v17 = vld [vmem:[%s14256_s19 + $0x48] sm:$0x3f] }
  0xe3   : > { %10397 = vmatprep.subr.msk.mxu0 %vm775_vm1, %v9263_v30 }
  0xe5   : > { %10375 = vmatmul.mubr.msk.f32.gmra.mrb[2].mxu0 %vm723_vm2, %v12809_v32 }
  0xe6   : > { %10377 = vmatprep.mubr.msk.f32.mxu0 %vm723_vm2, %v12811_v33 }
  0xe9   : > { %10378 = vmatmul.mubr.msk.f32.gmra.mrb[4].mxu0 %vm723_vm2, %v12822_v35 }
  0xea   : > { %10380 = vmatprep.mubr.msk.f32.mxu0 %vm723_vm2, %v12824_v36 }
  0xed   : > { %10381 = vmatmul.mubr.msk.f32.gmra.mrb[6].mxu0 %vm723_vm2, %v12830_v37 }
  0xee   : > { %10385 = vmatprep.mubr.msk.f32.mxu0 %vm723_vm2, %v1166_v38  ;;  %v1771_v38 = vld [vmem:[#allocation2 + $0x2f] sm:$0xff] }
  0xf1   : > { %10386 = vmatmul.mubr.msk.f32.vlgmr.msra.gmra.mrb[0].mxu0 %vm723_vm2, %v12835_v39 }
  0xf2   : > { %10398 = vmatpush3.msk.msra.mxu0 %vm775_vm1, %v9263_v30  ;;  %10388 = vmatprep.mubr.msk.f32.mxu0 %vm723_vm2, %v12837_v40  ;;  %v1770_v30 = vld [vmem:[#allocation2 + $0x27] sm:$0xff] }
  0xf3   : > { %10411 = vmatprep.subr.msk.mxu0 %vm775_vm1, %v9273_v41 }
  0xf5   : > { %10389 = vmatmul.mubr.msk.f32.gmra.mrb[2].mxu0 %vm723_vm2, %v12847_v42 }
  0xf6   : > { %10391 = vmatprep.mubr.msk.f32.mxu0 %vm723_vm2, %v12849_v43 }
  0xf9   : > { %10392 = vmatmul.mubr.msk.f32.gmra.mrb[4].mxu0 %vm723_vm2, %v12856_v44 }
  0xfa   : > { %10394 = vmatprep.mubr.msk.f32.mxu0 %vm723_vm2, %v12858_v45 }
  0xfd   : > { %10395 = vmatmul.mubr.msk.f32.gmra.mrb[6].mxu0 %vm723_vm2, %v12864_v46 }
  0xfe   : > { %10399 = vmatprep.mubr.msk.f32.mxu0 %vm723_vm2, %v1316_v47  ;;  %v1773_v47 = vld [vmem:[#allocation2 + $0x3f] sm:$0xff] }
 0x101   : > { %10400 = vmatmul.mubr.msk.f32.vlgmr.msra.gmra.mrb[0].mxu0 %vm723_vm2, %v12869_v48 }
 0x102   : > { %10412 = vmatpush3.msk.msra.mxu0 %vm775_vm1, %v9273_v41  ;;  %10402 = vmatprep.mubr.msk.f32.mxu0 %vm723_vm2, %v12871_v49  ;;  %v1772_v41 = vld [vmem:[#allocation2 + $0x37] sm:$0xff] }
 0x103   : > { %10425 = vmatprep.subr.msk.mxu0 %vm775_vm1, %v9283_v50 }
 0x105   : > { %10403 = vmatmul.mubr.msk.f32.gmra.mrb[2].mxu0 %vm723_vm2, %v12881_v51 }
 0x106   : > { %10405 = vmatprep.mubr.msk.f32.mxu0 %vm723_vm2, %v12883_v52 }
 0x109   : > { %10406 = vmatmul.mubr.msk.f32.gmra.mrb[4].mxu0 %vm723_vm2, %v12890_v53 }
 0x10a   : > { %10408 = vmatprep.mubr.msk.f32.mxu0 %vm723_vm2, %v12892_v54 }
 0x10d   : > { %10409 = vmatmul.mubr.msk.f32.gmra.mrb[6].mxu0 %vm723_vm2, %v12898_v55 }
 0x10e   : > { %10413 = vmatprep.mubr.msk.f32.mxu0 %vm723_vm2, %v1466_v56 }
 0x111   : > { %10414 = vmatmul.mubr.msk.f32.vlgmr.msra.gmra.mrb[0].mxu0 %vm723_vm2, %v12903_v57 }
 0x112   : > { %10426 = vmatpush3.msk.msra.mxu0 %vm775_vm1, %v9283_v50  ;;  %10416 = vmatprep.mubr.msk.f32.mxu0 %vm723_vm2, %v12905_v58  ;;  %v9323_v50 = vld [vmem:[%s14256_s19 + $0x50] sm:$0x3f] }
 0x113   : > { %10439 = vmatprep.subr.msk.mxu0 %vm775_vm1, %v9293_v59 }
 0x115   : > { %10417 = vmatmul.mubr.msk.f32.gmra.mrb[2].mxu0 %vm723_vm2, %v12915_v60 }
 0x116   : > { %10419 = vmatprep.mubr.msk.f32.mxu0 %vm723_vm2, %v12917_v61 }
 0x119   : > { %10420 = vmatmul.mubr.msk.f32.gmra.mrb[4].mxu0 %vm723_vm2, %v12924_v62 }
 0x11a   : > { %10422 = vmatprep.mubr.msk.f32.mxu0 %vm723_vm2, %v12926_v63 }
 0x11d   : > { %10423 = vmatmul.mubr.msk.f32.gmra.mrb[6].mxu0 %vm723_vm2, %v12932_v1 }
 0x11e   : > { %10427 = vmatprep.mubr.msk.f32.mxu0 %vm723_vm2, %v1616_v2 }
 0x121   : > { %10428 = vmatmul.mubr.msk.f32.vlgmr.msra.gmra.mrb[0].mxu0 %vm723_vm2, %v12937_v3 }
 0x122   : > { %10440 = vmatpush3.msk.msra.mxu0 %vm775_vm1, %v9293_v59  ;;  %10430 = vmatprep.mubr.msk.f32.mxu0 %vm723_vm2, %v12939_v4 }
 0x123   : > { %10453 = vmatprep.subr.msk.mxu0 %vm775_vm1, %v9303_v5 }
 0x125   : > { %10431 = vmatmul.mubr.msk.f32.gmra.mrb[2].mxu0 %vm723_vm2, %v12949_v6 }
 0x126   : > { %10433 = vmatprep.mubr.msk.f32.mxu0 %vm723_vm2, %v12951_v7 }
 0x129   : > { %10434 = vmatmul.mubr.msk.f32.gmra.mrb[4].mxu0 %vm723_vm2, %v12958_v8 }
 0x12a   : > { %10436 = vmatprep.mubr.msk.f32.mxu0 %vm723_vm2, %v12960_v9 }
 0x12d   : > { %10437 = vmatmul.mubr.msk.f32.gmra.mrb[6].mxu0 %vm723_vm2, %v12966_v10 }
 0x12e   : > { %10441 = vmatprep.mubr.msk.f32.mxu0 %vm723_vm2, %v1766_v11 }
 0x131   : > { %10442 = vmatmul.mubr.msk.f32.vlgmr.msra.gmra.mrb[0].mxu0 %vm723_vm2, %v1767_v13 }
 0x132   : > { %10454 = vmatpush3.msk.msra.mxu0 %vm775_vm1, %v9303_v5  ;;  %10444 = vmatprep.mubr.msk.f32.mxu0 %vm723_vm2, %v1768_v14 }
 0x133   : > { %10467 = vmatprep.subr.msk.mxu0 %vm775_vm1, %v9313_v17 }
 0x135   : > { %10445 = vmatmul.mubr.msk.f32.gmra.mrb[2].mxu0 %vm723_vm2, %v1769_v24 }
 0x136   : > { %10447 = vmatprep.mubr.msk.f32.mxu0 %vm723_vm2, %v1770_v30 }
 0x139   : > { %10448 = vmatmul.mubr.msk.f32.gmra.mrb[4].mxu0 %vm723_vm2, %v1771_v38 }
 0x13a   : > { %10450 = vmatprep.mubr.msk.f32.mxu0 %vm723_vm2, %v1772_v41 }
 0x13d   : > { %10451 = vmatmul.mubr.msk.f32.gmra.mrb[6].mxu0 %vm723_vm2, %v1773_v47 }
 0x13e   : > { %10455 = vmatprep.mubr.msk.f32.mxu0 %vm723_vm2, %v12743_v15  ;;  %v1923_v15 = vld [vmem:[#allocation2 + $0x40] sm:$0xff] }
 0x141   : > { %10456 = vmatmul.mubr.msk.f32.vlgmr.msra.gmra.mrb[0].mxu0 %vm723_vm2, %v12745_v16  ;;  %v9333_v16 = vld [vmem:[%s14256_s19 + $0x58] sm:$0x3f] }
 0x142   : > { %10468 = vmatpush3.msk.msra.mxu0 %vm775_vm1, %v9313_v17  ;;  %10458 = vmatprep.mubr.msk.f32.mxu0 %vm723_vm2, %v12755_v18  ;;  %v9343_v18 = vld [vmem:[%s14256_s19 + $0x60] sm:$0x3f] }
 0x143   : > { %10481 = vmatprep.subr.msk.mxu0 %vm775_vm1, %v9323_v50 }
 0x145   : > { %10459 = vmatmul.mubr.msk.f32.gmra.mrb[2].mxu0 %vm723_vm2, %v12757_v19  ;;  %v2223_v19 = vld [vmem:[#allocation2 + $0x42] sm:$0xff] }
 0x146   : > { %10461 = vmatprep.mubr.msk.f32.mxu0 %vm723_vm2, %v12764_v20  ;;  %v9353_v20 = vld [vmem:[%s14256_s19 + $0x68] sm:$0x3f] }
 0x149   : > { %10462 = vmatmul.mubr.msk.f32.gmra.mrb[4].mxu0 %vm723_vm2, %v12766_v21  ;;  %v2373_v21 = vld [vmem:[#allocation2 + $0x43] sm:$0xff] }
 0x14a   : > { %10464 = vmatprep.mubr.msk.f32.mxu0 %vm723_vm2, %v12772_v22  ;;  %v9363_v22 = vld [vmem:[%s14256_s19 + $0x70] sm:$0x3f] }
 0x14d   : > { %10465 = vmatmul.mubr.msk.f32.gmra.mrb[6].mxu0 %vm723_vm2, %v1923_v15 }
 0x14e   : > { %10469 = vmatprep.mubr.msk.f32.mxu0 %vm723_vm2, %v12732_v12  ;;  %v2073_v12 = vld [vmem:[#allocation2 + $0x41] sm:$0xff] }
 0x151   : > { %10470 = vmatmul.mubr.msk.f32.vlgmr.msra.gmra.mrb[0].mxu0 %vm723_vm2, %v12774_v23  ;;  %v2523_v23 = vld [vmem:[#allocation2 + $0x44] sm:$0xff] }
 0x152   : > { %10482 = vmatpush3.msk.msra.mxu0 %vm775_vm1, %v9323_v50  ;;  %10472 = vmatprep.mubr.msk.f32.mxu0 %vm723_vm2, %v12776_v25  ;;  %v2673_v25 = vld [vmem:[#allocation2 + $0x45] sm:$0xff] }
 0x153   : > { %10495 = vmatprep.subr.msk.mxu0 %vm775_vm1, %v9333_v16 }
 0x155   : > { %10473 = vmatmul.mubr.msk.f32.gmra.mrb[2].mxu0 %vm723_vm2, %v12780_v26  ;;  %v2823_v26 = vld [vmem:[#allocation2 + $0x46] sm:$0xff] }
 0x156   : > { %10475 = vmatprep.mubr.msk.f32.mxu0 %vm723_vm2, %v12793_v29 }
 0x159   : > { %10476 = vmatmul.mubr.msk.f32.gmra.mrb[4].mxu0 %vm723_vm2, %v12798_v31 }
 0x15a   : > { %10478 = vmatprep.mubr.msk.f32.mxu0 %vm723_vm2, %v12814_v34  ;;  %v3057_v34 = vld [vmem:[#allocation11 + $0x8] sm:$0xff] }
 0x15b   : > { %10551 = vmatprep.subr.mxu1 %v3057_v34 }
 0x15c   : > { %10552 = vmatpush3.msra.mxu1 %v3057_v34 }
 0x15d   : > { %10479 = vmatmul.mubr.msk.f32.gmra.mrb[6].mxu0 %vm723_vm2, %v2073_v12 }
 0x15e   : > { %10483 = vmatprep.mubr.msk.f32.mxu0 %vm723_vm2, %v12789_v27 }
 0x161   : > { %10484 = vmatmul.mubr.msk.f32.vlgmr.msra.gmra.mrb[0].mxu0 %vm723_vm2, %v12791_v28 }
 0x162   : > { %10496 = vmatpush3.msk.msra.mxu0 %vm775_vm1, %v9333_v16  ;;  %10486 = vmatprep.mubr.msk.f32.mxu0 %vm723_vm2, %v12809_v32 }
 0x163   : > { %10509 = vmatprep.subr.msk.mxu0 %vm775_vm1, %v9343_v18 }
 0x165   : > { %10487 = vmatmul.mubr.msk.f32.gmra.mrb[2].mxu0 %vm723_vm2, %v12811_v33 }
 0x166   : > { %10489 = vmatprep.mubr.msk.f32.mxu0 %vm723_vm2, %v12822_v35  ;;  %v13118_v35 = vld [vmem:[#allocation11] sm:$0xff] }
 0x167   : > { %10556 = vmatprep.subr.mxu1 %v13118_v35 }
 0x169   : > { %10490 = vmatmul.mubr.msk.f32.gmra.mrb[4].mxu0 %vm723_vm2, %v12824_v36  ;;  %v9373_v36 = vld [vmem:[%s14257_s29] ss:$0 sm:$0xff] }
 0x16a   : > { %10492 = vmatprep.mubr.msk.f32.mxu0 %vm723_vm2, %v12830_v37 }
 0x16d   : > { %10493 = vmatmul.mubr.msk.f32.gmra.mrb[6].mxu0 %vm723_vm2, %v2223_v19  ;;  %v12392_v19 = vmov 0.0|0.0  }
 0x16e   : > { %10497 = vmatprep.mubr.msk.f32.mxu0 %vm723_vm2, %v12835_v39 }
 0x171   : > { %10498 = vmatmul.mubr.msk.f32.vlgmr.msra.gmra.mrb[0].mxu0 %vm723_vm2, %v12837_v40 }
 0x172   : > { %10510 = vmatpush3.msk.msra.mxu0 %vm775_vm1, %v9343_v18  ;;  %10500 = vmatprep.mubr.msk.f32.mxu0 %vm723_vm2, %v12847_v42 }
 0x173   : > { %10523 = vmatprep.subr.msk.mxu0 %vm775_vm1, %v9353_v20 }
 0x175   : > { %10501 = vmatmul.mubr.msk.f32.gmra.mrb[2].mxu0 %vm723_vm2, %v12849_v43 }
 0x176   : > { %10503 = vmatprep.mubr.msk.f32.mxu0 %vm723_vm2, %v12856_v44 }
 0x179   : > { %10504 = vmatmul.mubr.msk.f32.gmra.mrb[4].mxu0 %vm723_vm2, %v12858_v45 }
 0x17a   : > { %10506 = vmatprep.mubr.msk.f32.mxu0 %vm723_vm2, %v12864_v46 }
 0x17d   : > { %10507 = vmatmul.mubr.msk.f32.gmra.mrb[6].mxu0 %vm723_vm2, %v2373_v21 }
 0x17e   : > { %10511 = vmatprep.mubr.msk.f32.mxu0 %vm723_vm2, %v12869_v48 }
 0x181   : > { %10512 = vmatmul.mubr.msk.f32.vlgmr.msra.gmra.mrb[0].mxu0 %vm723_vm2, %v12871_v49 }
 0x182   : > { %10524 = vmatpush3.msk.msra.mxu0 %vm775_vm1, %v9353_v20  ;;  %10514 = vmatprep.mubr.msk.f32.mxu0 %vm723_vm2, %v12881_v51 }
 0x183   : > { %10537 = vmatprep.subr.msk.mxu0 %vm775_vm1, %v9363_v22 }
 0x185   : > { %10515 = vmatmul.mubr.msk.f32.gmra.mrb[2].mxu0 %vm723_vm2, %v12883_v52 }
 0x186   : > { %10517 = vmatprep.mubr.msk.f32.mxu0 %vm723_vm2, %v12890_v53 }
 0x189   : > { %10518 = vmatmul.mubr.msk.f32.gmra.mrb[4].mxu0 %vm723_vm2, %v12892_v54 }
 0x18a   : > { %10520 = vmatprep.mubr.msk.f32.mxu0 %vm723_vm2, %v12898_v55 }
 0x18d   : > { %10521 = vmatmul.mubr.msk.f32.gmra.mrb[6].mxu0 %vm723_vm2, %v2523_v23 }
 0x18e   : > { %10525 = vmatprep.mubr.msk.f32.mxu0 %vm723_vm2, %v12903_v57 }
 0x191   : > { %10526 = vmatmul.mubr.msk.f32.vlgmr.msra.gmra.mrb[0].mxu0 %vm723_vm2, %v12905_v58 }
 0x192   : > { %10538 = vmatpush3.msk.msra.mxu0 %vm775_vm1, %v9363_v22  ;;  %10528 = vmatprep.mubr.msk.f32.mxu0 %vm723_vm2, %v12915_v60 }
 0x193   : > { %11541 = vmatprep.subr.bf16.mxu0 %v12392_v19 }
 0x195   : > { %10529 = vmatmul.mubr.msk.f32.gmra.mrb[2].mxu0 %vm723_vm2, %v12917_v61 }
 0x196   : > { %10531 = vmatprep.mubr.msk.f32.mxu0 %vm723_vm2, %v12924_v62 }
 0x199   : > { %10532 = vmatmul.mubr.msk.f32.gmra.mrb[4].mxu0 %vm723_vm2, %v12926_v63 }
 0x19a   : > { %10534 = vmatprep.mubr.msk.f32.mxu0 %vm723_vm2, %v12932_v1 }
 0x19d   : > { %10535 = vmatmul.mubr.msk.f32.gmra.mrb[6].mxu0 %vm723_vm2, %v2673_v25 }
 0x19e   : > { %10539 = vmatprep.mubr.msk.f32.mxu0 %vm723_vm2, %v12937_v3 }
 0x1a0   : > { %v10348_v27 = vpop.f32.mrb[0].mxu1 }
 0x1a1   : > { %10540 = vmatmul.mubr.msk.f32.vlgmr.msra.gmra.mrb[0].mxu0 %vm723_vm2, %v12939_v4  ;;  %v855_v28 = vpop.f32.mrb[1].mxu1 }
 0x1a2   : > { %10542 = vmatprep.mubr.msk.f32.mxu0 %vm723_vm2, %v12949_v6 }
 0x1a4   : > { %v10351_v29 = vpop.f32.mrb[2].mxu1 }
 0x1a5   : > { %10543 = vmatmul.mubr.msk.f32.gmra.mrb[2].mxu0 %vm723_vm2, %v12951_v7  ;;  %v865_v31 = vpop.f32.mrb[3].mxu1 }
 0x1a6   : > { %10545 = vmatprep.mubr.msk.f32.mxu0 %vm723_vm2, %v12958_v8 }
 0x1a8   : > { %v10354_v32 = vpop.f32.mrb[4].mxu1 }
 0x1a9   : > { %10546 = vmatmul.mubr.msk.f32.gmra.mrb[4].mxu0 %vm723_vm2, %v12960_v9  ;;  %v875_v33 = vpop.f32.mrb[5].mxu1 }
 0x1aa   : > { %10548 = vmatprep.mubr.msk.f32.mxu0 %vm723_vm2, %v12966_v10 }
 0x1ad   : > { %10549 = vmatmul.mubr.msk.f32.gmra.mrb[6].mxu0 %vm723_vm2, %v2823_v26 }
 0x1ae   : > { %10893 = vmatprep.mubr.msk.f32.mxu0 %vm12393_vm15, %v12391_v0 }
 0x274   : > { %v10541_v37 = vpop.f32.mrb[0].mxu0 }
 0x275   : > { %v2974_v39 = vadd.f32 %v10541_v37, %v9373_v36  ;;  %v2919_v40 = vpop.f32.mrb[1].mxu0 }
 0x276   : > { %v2973_v42 = vadd.f32 %v9373_v36, %v2919_v40 }
 0x277   : > { %2986 = vst.msk [vmem:[#allocation10 + $0xa] sm:$0xff] %vm2984_vm5, %v2974_v39  ;;  %vm2994_vm6 = vcmp.gt.f32.partialorder %v2974_v39, 0.0  ;;  %v3002_v43 = vmul.f32 0.2, %v2974_v39 }
 0x278   : > { %2985 = vst.msk [vmem:[#allocation10 + $0x2] sm:$0xff] %vm2984_vm5, %v2973_v42  ;;  %vm2993_vm7 = vcmp.gt.f32.partialorder %v2973_v42, 0.0  ;;  %v3001_v44 = vmul.f32 0.2, %v2973_v42  ;;  %v10544_v45 = vpop.f32.mrb[2].mxu0 }
 0x279   : > { %v3010_v46 = vsel %vm2994_vm6, %v2974_v39, %v3002_v43  ;;  %v11863_v48 = vadd.f32 %v10544_v45, %v10348_v27  ;;  %v2929_v49 = vpop.f32.mrb[3].mxu0  ;;  %v3484_v39 = vld [vmem:[#allocation11 + $0x28] sm:$0xff]  ;;  %v3571_v43 = vld [vmem:[#allocation11 + $0x30] sm:$0xff] }
 0x27a   : > { %3018 = vst.msk [vmem:[#allocation5 + $0x8] sm:$0xff] %vm2984_vm5, %v3010_v46  ;;  %v3009_v51 = vsel %vm2993_vm7, %v2973_v42, %v3001_v44  ;;  %v11864_v52 = vadd.f32 %v2929_v49, %v855_v28  ;;  %v3223_v28 = vld [vmem:[#allocation11 + $0x10] sm:$0xff]  ;;  %v3658_v46 = vld [vmem:[#allocation11 + $0x38] sm:$0xff]  ;;  %vm4387_vm7 = vcmask 257024  }
 0x27b   : > { %3017 = vst.msk [vmem:[#allocation5] sm:$0xff] %vm2984_vm5, %v3009_v51  ;;  %v2976_v53 = vadd.f32 %v11863_v48, %v9373_v36  ;;  %v3745_v51 = vld [vmem:[#allocation11 + $0x40] sm:$0xff] }
 0x27c   : > { %v2975_v54 = vadd.f32 %v11864_v52, %v9373_v36  ;;  %v10547_v55 = vpop.f32.mrb[4].mxu0 }
 0x27d   : > { %2988 = vst.msk [vmem:[#allocation10 + $0x1a] sm:$0xff] %vm2984_vm5, %v2976_v53  ;;  %vm2996_vm8 = vcmp.gt.f32.partialorder %v2976_v53, 0.0  ;;  %v3004_v56 = vmul.f32 0.2, %v2976_v53  ;;  %v11865_v57 = vadd.f32 %v10547_v55, %v10351_v29  ;;  %v2939_v58 = vpop.f32.mrb[5].mxu0 }
 0x27e   : > { %2987 = vst.msk [vmem:[#allocation10 + $0x12] sm:$0xff] %vm2984_vm5, %v2975_v54  ;;  %vm2995_vm9 = vcmp.gt.f32.partialorder %v2975_v54, 0.0  ;;  %v3003_v59 = vmul.f32 0.2, %v2975_v54  ;;  %v11866_v60 = vadd.f32 %v2939_v58, %v865_v31  ;;  %v4006_v58 = vld [vmem:[#allocation11 + $0x58] sm:$0xff] }
 0x27f   : > { %v3012_v61 = vsel %vm2996_vm8, %v2976_v53, %v3004_v56  ;;  %v2978_v62 = vadd.f32 %v11865_v57, %v9373_v36  ;;  %v3919_v56 = vld [vmem:[#allocation11 + $0x50] sm:$0xff] }
 0x280   : > { %3020 = vst.msk [vmem:[#allocation5 + $0x18] sm:$0xff] %vm2984_vm5, %v3012_v61  ;;  %v3011_v63 = vsel %vm2995_vm9, %v2975_v54, %v3003_v59  ;;  %v2977_v1 = vadd.f32 %v11866_v60, %v9373_v36  ;;  %v10550_v2 = vpop.f32.mrb[6].mxu0  ;;  %v3832_v54 = vld [vmem:[#allocation11 + $0x48] sm:$0xff]  ;;  %v4093_v60 = vld [vmem:[#allocation11 + $0x60] sm:$0xff] }
 0x281   : > { %3019 = vst.msk [vmem:[#allocation5 + $0x10] sm:$0xff] %vm2984_vm5, %v3011_v63  ;;  %2990 = vst.msk [vmem:[#allocation10 + $0x2a] sm:$0xff] %vm2984_vm5, %v2978_v62  ;;  %vm2998_vm10 = vcmp.gt.f32.partialorder %v2978_v62, 0.0  ;;  %v3006_v3 = vmul.f32 0.2, %v2978_v62  ;;  %v11867_v4 = vadd.f32 %v10550_v2, %v10354_v32  ;;  %v2949_v5 = vpop.f32.mrb[7].mxu0 }
 0x282   : > { %2989 = vst.msk [vmem:[#allocation10 + $0x22] sm:$0xff] %vm2984_vm5, %v2977_v1  ;;  %vm2997_vm11 = vcmp.gt.f32.partialorder %v2977_v1, 0.0  ;;  %v3005_v6 = vmul.f32 0.2, %v2977_v1  ;;  %v11868_v7 = vadd.f32 %v2949_v5, %v875_v33  ;;  %v3310_v32 = vld [vmem:[#allocation11 + $0x18] sm:$0xff] }
 0x283   : > { %v3014_v8 = vsel %vm2998_vm10, %v2978_v62, %v3006_v3  ;;  %v2980_v9 = vadd.f32 %v11867_v4, %v9373_v36  ;;  %v4180_v62 = vld [vmem:[#allocation11 + $0x68] sm:$0xff]  ;;  %v9406_v4 = vld [vmem:[%s14205_s5 + $0x28] sm:$0xff] }
 0x284   : > { %3022 = vst.msk [vmem:[#allocation5 + $0x28] sm:$0xff] %vm2984_vm5, %v3014_v8  ;;  %v3013_v10 = vsel %vm2997_vm11, %v2977_v1, %v3005_v6  ;;  %v2979_v11 = vadd.f32 %v11868_v7, %v9373_v36  ;;  %v3397_v36 = vld [vmem:[#allocation11 + $0x20] sm:$0xff]  ;;  %v4267_v1 = vld [vmem:[#allocation11 + $0x70] sm:$0xff]  ;;  %v9405_v3 = vld [vmem:[%s14205_s5 + $0x20] sm:$0xff] }
 0x285   : > { %3021 = vst.msk [vmem:[#allocation5 + $0x20] sm:$0xff] %vm2984_vm5, %v3013_v10  ;;  %2992 = vst.msk [vmem:[#allocation10 + $0x3a] sm:$0xff] %vm2984_vm5, %v2980_v9  ;;  %vm3000_vm12 = vcmp.gt.f32.partialorder %v2980_v9, 0.0  ;;  %v3008_v13 = vmul.f32 0.2, %v2980_v9  ;;  %v11404_v5 = vpack.c.bf16 %v9406_v4, %v9405_v3  ;;  %v9407_v6 = vld [vmem:[%s14205_s5 + $0x30] sm:$0xff] }
 0x286   : > { %2991 = vst.msk [vmem:[#allocation10 + $0x32] sm:$0xff] %vm2984_vm5, %v2979_v11  ;;  %vm2999_vm13 = vcmp.gt.f32.partialorder %v2979_v11, 0.0  ;;  %v3007_v14 = vmul.f32 0.2, %v2979_v11  ;;  %v9408_v7 = vld [vmem:[%s14205_s5 + $0x38] sm:$0xff]  ;;  %v4390_v10 = vld [vmem:[%s14205_s5] sm:$0xff] }
 0x287   : > { %v3016_v17 = vsel %vm3000_vm12, %v2980_v9, %v3008_v13  ;;  %v11407_v9 = vpack.c.bf16 %v9408_v7, %v9407_v6  ;;  %v4394_v13 = vld [vmem:[#allocation4 + $0x1] sm:$0xf]  ;;  %v9429_v4 = vld [vmem:[%s14205_s5 + $0xb8] sm:$0xff]  ;;  %v9431_v7 = vld [vmem:[%s14205_s5 + $0xc0] sm:$0xff] }
 0x288   : > { %v3025_v24 = vld [vmem:[#allocation5] ss:$4 sm:$0xff]  ;;  %v3029_v30 = vld [vmem:[#allocation5 + $0x1] ss:$4 sm:$0xff]  ;;  %3024 = vst.msk [vmem:[#allocation5 + $0x38] sm:$0xff] %vm2984_vm5, %v3016_v17  ;;  %v3015_v38 = vsel %vm2999_vm13, %v2979_v11, %v3007_v14 }
 0x289   : > { %3023 = vst.msk [vmem:[#allocation5 + $0x30] sm:$0xff] %vm2984_vm5, %v3015_v38  ;;  %v3032_v41 = vmax.f32 %v3025_v24, %v3029_v30  ;;  %v3035_v47 = vld [vmem:[#allocation5 + $0x2] ss:$4 sm:$0xff]  ;;  %v3041_v15 = vld [vmem:[#allocation5 + $0x3] ss:$4 sm:$0xff] }
 0x28a   : > { %v4391_v11 = vld [vmem:[%s14205_s5 + $0x8] sm:$0xff]  ;;  %v4392_v17 = vld [vmem:[%s14205_s5 + $0x10] sm:$0xff]  ;;  %v4393_v24 = vld [vmem:[%s14205_s5 + $0x18] sm:$0xff] }
 0x28b   : > { %v3038_v50 = vmax.f32 %v3032_v41, %v3035_v47  ;;  %v11410_v14 = vpack.c.bf16 %v4391_v11, %v4390_v10  ;;  %v11413_v30 = vpack.c.bf16 %v4393_v24, %v4392_v17  ;;  %v9411_v38 = vld [vmem:[%s14205_s5 + $0x40] sm:$0xff]  ;;  %v9412_v41 = vld [vmem:[%s14205_s5 + $0x48] sm:$0xff]  ;;  %v4389_v47 = vld [vmem:[#allocation4] sm:$0xf] }
 0x28c   : > { %v9428_v3 = vld [vmem:[%s14205_s5 + $0xb0] sm:$0xff]  ;;  %v9434_v11 = vld [vmem:[%s14205_s5 + $0xd8] sm:$0xff]  ;;  %v9436_v17 = vld [vmem:[%s14205_s5 + $0xe0] sm:$0xff] }
 0x28d   : > { %v3044_v16 = vmax.f32 %v3038_v50, %v3041_v15  ;;  %v11416_v50 = vpack.c.bf16 %v9412_v41, %v9411_v38  ;;  %v9413_v15 = vld [vmem:[%s14205_s5 + $0x50] sm:$0xff]  ;;  %v11437_v6 = vpack.c.bf16 %v9429_v4, %v9428_v3  ;;  %v9437_v24 = vld [vmem:[%s14205_s5 + $0xe8] sm:$0xff]  ;;  %v9439_v41 = vld [vmem:[%s14205_s5 + $0xf8] sm:$0xff] }
 0x28e   : > { %v9433_v10 = vld [vmem:[%s14205_s5 + $0xd0] sm:$0xff]  ;;  %v9469_v3 = vld [vmem:[%s14205_s5 + $0x1b8] sm:$0xff] }
 0x28f   : > { %3049 = vst.msk [vmem:[#allocation3 + $0x7] sm:$0xff] %vm2984_vm5, %v3044_v16  ;;  %v9414_v16 = vld [vmem:[%s14205_s5 + $0x58] sm:$0xff]  ;;  %v9438_v38 = vld [vmem:[%s14205_s5 + $0xf0] sm:$0xff] }
 0x290   : > { %v3027_v12 = vld [vmem:[#allocation5 + $0x20] ss:$4 sm:$0xff]  ;;  %v3031_v18 = vld [vmem:[#allocation5 + $0x21] ss:$4 sm:$0xff]  ;;  %v3037_v21 = vld [vmem:[#allocation5 + $0x22] ss:$4 sm:$0xff] }
 0x291   : > { %v3033_v20 = vmax.f32 %v3027_v12, %v3031_v18  ;;  %v3043_v23 = vld [vmem:[#allocation5 + $0x23] ss:$4 sm:$0xff]  ;;  %v11419_v12 = vpack.c.bf16 %v9414_v16, %v9413_v15 }
 0x292   : > { %v9416_v18 = vld [vmem:[%s14205_s5 + $0x60] sm:$0xff]  ;;  %v9442_v16 = vld [vmem:[%s14205_s5 + $0x108] sm:$0xff] }
 0x293   : > { %v3039_v22 = vmax.f32 %v3033_v20, %v3037_v21  ;;  %v9417_v20 = vld [vmem:[%s14205_s5 + $0x68] sm:$0xff]  ;;  %v4546_v21 = vld [vmem:[#allocation4 + $0x2] sm:$0xf]  ;;  %v9441_v15 = vld [vmem:[%s14205_s5 + $0x100] sm:$0xff] }
 0x295   : > { %v3045_v25 = vmax.f32 %v3039_v22, %v3043_v23  ;;  %v11422_v22 = vpack.c.bf16 %v9417_v20, %v9416_v18  ;;  %v9418_v23 = vld [vmem:[%s14205_s5 + $0x70] sm:$0xff]  ;;  %v9444_v20 = vld [vmem:[%s14205_s5 + $0x118] sm:$0xff] }
 0x296   : > { %v3054_v26 = vld [vmem:[#allocation3 + $0x1] sm:$0xff] }
 0x297   : > { %10553 = vmatprep.mubr.msk.f32.mxu1 %vm2984_vm5, %v3054_v26  ;;  %3050 = vst.msk [vmem:[#allocation3 + $0xf] sm:$0xff] %vm2984_vm5, %v3045_v25  ;;  %v3051_v29 = vld [vmem:[#allocation3] sm:$0xff]  ;;  %v9419_v25 = vld [vmem:[%s14205_s5 + $0x78] sm:$0xff] }
 0x298   : > { %v3220_v33 = vld [vmem:[#allocation3 + $0x2] sm:$0xff]  ;;  %v11425_v26 = vpack.c.bf16 %v9419_v25, %v9418_v23  ;;  %v9446_v23 = vld [vmem:[%s14205_s5 + $0x120] sm:$0xff]  ;;  %v9447_v25 = vld [vmem:[%s14205_s5 + $0x128] sm:$0xff] }
 0x299   : > { %v3307_v37 = vld [vmem:[#allocation3 + $0x3] sm:$0xff] }
 0x29a   : > { %v3394_v40 = vld [vmem:[#allocation3 + $0x4] sm:$0xff] }
 0x29b   : > { %v3481_v44 = vld [vmem:[#allocation3 + $0x5] sm:$0xff] }
 0x29c   : > { %v3568_v48 = vld [vmem:[#allocation3 + $0x6] sm:$0xff] }
 0x29d   : > { %v3655_v52 = vld [vmem:[#allocation3 + $0x7] sm:$0xff] }
 0x29e   : > { %v3055_v27 = vld [vmem:[#allocation3 + $0x9] sm:$0xff]  ;;  %v3830_v57 = vld [vmem:[#allocation3 + $0x11] sm:$0xff]  ;;  %v9443_v18 = vld [vmem:[%s14205_s5 + $0x110] sm:$0xff] }
 0x29f   : > { %10554 = vmatmul.mubr.msk.f32.vlgmr.msra.gmra.mrb[6].mxu1 %vm2984_vm5, %v3055_v27  ;;  %v3052_v31 = vld [vmem:[#allocation3 + $0x8] sm:$0xff]  ;;  %v3743_v55 = vld [vmem:[#allocation3 + $0x10] sm:$0xff] }
 0x2a0   : > { %10557 = vmatpush3.msra.mxu1 %v13118_v35  ;;  %10558 = vmatprep.mubr.msk.f32.mxu1 %vm2984_vm5, %v3051_v29  ;;  %v3221_v34 = vld [vmem:[#allocation3 + $0xa] sm:$0xff]  ;;  %v3917_v59 = vld [vmem:[#allocation3 + $0x12] sm:$0xff] }
 0x2a1   : > { %10561 = vmatprep.subr.mxu1 %v3223_v28  ;;  %v3308_v35 = vld [vmem:[#allocation3 + $0xb] sm:$0xff]  ;;  %v4004_v61 = vld [vmem:[#allocation3 + $0x13] sm:$0xff] }
 0x2a2   : > { %v3395_v42 = vld [vmem:[#allocation3 + $0xc] sm:$0xff]  ;;  %v4091_v63 = vld [vmem:[#allocation3 + $0x14] sm:$0xff] }
 0x2a3   : > { %v3482_v45 = vld [vmem:[#allocation3 + $0xd] sm:$0xff]  ;;  %v4178_v2 = vld [vmem:[#allocation3 + $0x15] sm:$0xff] }
 0x2a4   : > { %v3569_v49 = vld [vmem:[#allocation3 + $0xe] sm:$0xff]  ;;  %v4265_v8 = vld [vmem:[#allocation3 + $0x16] sm:$0xff] }
 0x2a5   : > { %v3656_v53 = vld [vmem:[#allocation3 + $0xf] sm:$0xff]  ;;  %v9422_v29 = vld [vmem:[%s14205_s5 + $0x88] sm:$0xff] }
 0x2a7   : > { %10559 = vmatmul.mubr.msk.f32.vlgmr.msra.gmra.mrb[6].mxu1 %vm2984_vm5, %v3052_v31 }
 0x2a8   : > { %10562 = vmatpush3.msra.mxu1 %v3223_v28  ;;  %10563 = vmatprep.mubr.msk.f32.mxu1 %vm2984_vm5, %v3220_v33  ;;  %v9421_v28 = vld [vmem:[%s14205_s5 + $0x80] sm:$0xff]  ;;  %v9424_v33 = vld [vmem:[%s14205_s5 + $0x98] sm:$0xff] }
 0x2a9   : > { %10566 = vmatprep.subr.mxu1 %v3310_v32 }
 0x2af   : > { %10564 = vmatmul.mubr.msk.f32.vlgmr.msra.gmra.mrb[6].mxu1 %vm2984_vm5, %v3221_v34 }
 0x2b0   : > { %10567 = vmatpush3.msra.mxu1 %v3310_v32  ;;  %10568 = vmatprep.mubr.msk.f32.mxu1 %vm2984_vm5, %v3307_v37  ;;  %v11428_v32 = vpack.c.bf16 %v9422_v29, %v9421_v28  ;;  %v9449_v28 = vld [vmem:[%s14205_s5 + $0x138] sm:$0xff] }
 0x2b1   : > { %10571 = vmatprep.subr.mxu1 %v3397_v36 }
 0x2b7   : > { %10569 = vmatmul.mubr.msk.f32.vlgmr.msra.gmra.mrb[6].mxu1 %vm2984_vm5, %v3308_v35 }
 0x2b8   : > { %10572 = vmatpush3.msra.mxu1 %v3397_v36  ;;  %10573 = vmatprep.mubr.msk.f32.mxu1 %vm2984_vm5, %v3394_v40  ;;  %v9404_v36 = vld [vmem:[%s14258_s28] ss:$0 sm:$0xff] }
 0x2b9   : > { %10576 = vmatprep.subr.mxu1 %v3484_v39 }
 0x2bf   : > { %10574 = vmatmul.mubr.msk.f32.vlgmr.msra.gmra.mrb[6].mxu1 %vm2984_vm5, %v3395_v42 }
 0x2c0   : > { %10577 = vmatpush3.msra.mxu1 %v3484_v39  ;;  %10578 = vmatprep.mubr.msk.f32.mxu1 %vm2984_vm5, %v3481_v44 }
 0x2c1   : > { %10581 = vmatprep.subr.mxu1 %v3571_v43 }
 0x2c7   : > { %10579 = vmatmul.mubr.msk.f32.vlgmr.msra.gmra.mrb[6].mxu1 %vm2984_vm5, %v3482_v45 }
 0x2c8   : > { %10582 = vmatpush3.msra.mxu1 %v3571_v43  ;;  %10583 = vmatprep.mubr.msk.f32.mxu1 %vm2984_vm5, %v3568_v48 }
 0x2c9   : > { %10586 = vmatprep.subr.mxu1 %v3658_v46 }
 0x2cf   : > { %10584 = vmatmul.mubr.msk.f32.vlgmr.msra.gmra.mrb[6].mxu1 %vm2984_vm5, %v3569_v49 }
 0x2d0   : > { %10587 = vmatpush3.msra.mxu1 %v3658_v46  ;;  %10588 = vmatprep.mubr.msk.f32.mxu1 %vm2984_vm5, %v3655_v52 }
 0x2d1   : > { %10591 = vmatprep.subr.mxu1 %v3745_v51 }
 0x2d7   : > { %10589 = vmatmul.mubr.msk.f32.vlgmr.msra.gmra.mrb[6].mxu1 %vm2984_vm5, %v3656_v53 }
 0x2d8   : > { %10592 = vmatpush3.msra.mxu1 %v3745_v51  ;;  %10593 = vmatprep.mubr.msk.f32.mxu1 %vm2984_vm5, %v3052_v31  ;;  %v9423_v31 = vld [vmem:[%s14205_s5 + $0x90] sm:$0xff] }
 0x2d9   : > { %10596 = vmatprep.subr.mxu1 %v3832_v54 }
 0x2df   : > { %10594 = vmatmul.mubr.msk.f32.vlgmr.msra.gmra.mrb[6].mxu1 %vm2984_vm5, %v3743_v55 }
 0x2e0   : > { %10597 = vmatpush3.msra.mxu1 %v3832_v54  ;;  %10598 = vmatprep.mubr.msk.f32.mxu1 %vm2984_vm5, %v3055_v27  ;;  %v4626_v27 = vld [vmem:[#allocation4 + $0x3] sm:$0xf] }
 0x2e1   : > { %10601 = vmatprep.subr.mxu1 %v3919_v56 }
 0x2e7   : > { %10599 = vmatmul.mubr.msk.f32.vlgmr.msra.gmra.mrb[6].mxu1 %vm2984_vm5, %v3830_v57 }
 0x2e8   : > { %10602 = vmatpush3.msra.mxu1 %v3919_v56  ;;  %10603 = vmatprep.mubr.msk.f32.mxu1 %vm2984_vm5, %v3221_v34  ;;  %v11431_v34 = vpack.c.bf16 %v9424_v33, %v9423_v31  ;;  %v9452_v33 = vld [vmem:[%s14205_s5 + $0x148] sm:$0xff] }
 0x2e9   : > { %10606 = vmatprep.subr.mxu1 %v4006_v58 }
 0x2ef   : > { %10604 = vmatmul.mubr.msk.f32.vlgmr.msra.gmra.mrb[6].mxu1 %vm2984_vm5, %v3917_v59 }
 0x2f0   : > { %10607 = vmatpush3.msra.mxu1 %v4006_v58  ;;  %10608 = vmatprep.mubr.msk.f32.mxu1 %vm2984_vm5, %v3308_v35 }
 0x2f1   : > { %10611 = vmatprep.subr.mxu1 %v4093_v60 }
 0x2f7   : > { %10609 = vmatmul.mubr.msk.f32.vlgmr.msra.gmra.mrb[6].mxu1 %vm2984_vm5, %v4004_v61  ;;  %v9427_v61 = vld [vmem:[%s14205_s5 + $0xa8] sm:$0xff] }
 0x2f8   : > { %10612 = vmatpush3.msra.mxu1 %v4093_v60  ;;  %10613 = vmatprep.mubr.msk.f32.mxu1 %vm2984_vm5, %v3395_v42  ;;  %v9426_v60 = vld [vmem:[%s14205_s5 + $0xa0] sm:$0xff] }
 0x2f9   : > { %10616 = vmatprep.subr.mxu1 %v4180_v62 }
 0x2ff   : > { %10614 = vmatmul.mubr.msk.f32.vlgmr.msra.gmra.mrb[6].mxu1 %vm2984_vm5, %v4091_v63 }
 0x300   : > { %10617 = vmatpush3.msra.mxu1 %v4180_v62  ;;  %10618 = vmatprep.mubr.msk.f32.mxu1 %vm2984_vm5, %v3482_v45 }
 0x301   : > { %10621 = vmatprep.subr.mxu1 %v4267_v1 }
 0x307   : > { %10619 = vmatmul.mubr.msk.f32.vlgmr.msra.gmra.mrb[6].mxu1 %vm2984_vm5, %v4178_v2  ;;  %v11434_v2 = vpack.c.bf16 %v9427_v61, %v9426_v60 }
 0x308   : > { %10622 = vmatpush3.msra.mxu1 %v4267_v1  ;;  %10623 = vmatprep.mubr.msk.f32.mxu1 %vm2984_vm5, %v3569_v49 }
 0x309   : > { %11403 = vmatprep.subr.bf16.mxu1 %v12392_v19 }
 0x30f   : > { %10624 = vmatmul.mubr.msk.f32.vlgmr.msra.gmra.mrb[6].mxu1 %vm2984_vm5, %v4265_v8  ;;  %v9432_v8 = vld [vmem:[%s14205_s5 + $0xc8] sm:$0xff] }
 0x310   : > { %11405 = vmatpush3.bf16.msra.mxu1 %v11404_v5  ;;  %10634 = vmatprep.mubr.msk.f32.mxu1 %vm12393_vm15, %v12391_v0 }
 0x311   : > { %11406 = vmatprep.subr.bf16.mxu1 %v12392_v19 }
 0x314   : > { %11408 = vmatpush3.bf16.msra.mxu1 %v11407_v9  ;;  %v11440_v9 = vpack.c.bf16 %v9432_v8, %v9431_v7  ;;  %v9473_v8 = vld [vmem:[%s14205_s5 + $0x1d0] sm:$0xff] }
 0x315   : > { %11409 = vmatprep.subr.bf16.mxu1 %v12392_v19 }
 0x317   : > { %10635 = vmatmul.mubr.msk.f32.vlgmr.msra.gmra.mrb[8].mxu1 %vm4363_vm0, %v4394_v13 }
 0x318   : > { %11411 = vmatpush3.bf16.msra.mxu1 %v11410_v14  ;;  %10645 = vmatprep.mubr.msk.f32.mxu1 %vm12393_vm15, %v12391_v0  ;;  %v11443_v14 = vpack.c.bf16 %v9434_v11, %v9433_v10  ;;  %v5506_v11 = vld [vmem:[#allocation4 + $0xe] sm:$0xf] }
 0x319   : > { %11412 = vmatprep.subr.bf16.mxu1 %v12392_v19 }
 0x31c   : > { %11414 = vmatpush3.bf16.msra.mxu1 %v11413_v30  ;;  %v11446_v30 = vpack.c.bf16 %v9437_v24, %v9436_v17  ;;  %v9495_v17 = vld [vmem:[%s14207_s7 + $0x100] sm:$0xff] }
 0x31d   : > { %11415 = vmatprep.subr.bf16.mxu1 %v12392_v19 }
 0x31f   : > { %10646 = vmatmul.mubr.msk.f32.vlgmr.msra.gmra.mrb[10].mxu1 %vm4363_vm0, %v4389_v47 }
 0x320   : > { %11417 = vmatpush3.bf16.msra.mxu1 %v11416_v50  ;;  %10656 = vmatprep.mubr.msk.f32.mxu1 %vm12393_vm15, %v12391_v0  ;;  %v11449_v50 = vpack.c.bf16 %v9439_v41, %v9438_v38  ;;  %v5598_v41 = vld [vmem:[%s14207_s7 + $0x10] sm:$0xff] }
 0x321   : > { %11418 = vmatprep.subr.bf16.mxu1 %v12392_v19 }
 0x324   : > { %11420 = vmatpush3.bf16.msra.mxu1 %v11419_v12  ;;  %v11452_v12 = vpack.c.bf16 %v9442_v16, %v9441_v15  ;;  %v9498_v16 = vld [vmem:[%s14207_s7 + $0x118] sm:$0xff] }
 0x325   : > { %11421 = vmatprep.subr.bf16.mxu1 %v12392_v19 }
 0x327   : > { %10657 = vmatmul.mubr.msk.f32.vlgmr.msra.gmra.mrb[12].mxu1 %vm4363_vm0, %v4546_v21 }
 0x328   : > { %11423 = vmatpush3.bf16.msra.mxu1 %v11422_v22  ;;  %10667 = vmatprep.mubr.msk.f32.mxu1 %vm12393_vm15, %v12391_v0  ;;  %v11455_v22 = vpack.c.bf16 %v9444_v20, %v9443_v18  ;;  %v5601_v18 = vld [vmem:[%s14207_s7 + $0x28] sm:$0xff] }
 0x329   : > { %11424 = vmatprep.subr.bf16.mxu1 %v12392_v19 }
 0x32c   : > { %11426 = vmatpush3.bf16.msra.mxu1 %v11425_v26  ;;  %v11458_v26 = vpack.c.bf16 %v9447_v25, %v9446_v23 }
 0x32d   : > { %11427 = vmatprep.subr.bf16.mxu1 %v12392_v19 }
 0x32f   : > { %10668 = vmatmul.mubr.msk.f32.vlgmr.msra.gmra.mrb[14].mxu1 %vm4363_vm0, %v4626_v27  ;;  %v9448_v27 = vld [vmem:[%s14205_s5 + $0x130] sm:$0xff] }
 0x330   : > { %10678 = vmatprep.mubr.msk.f32.mxu1 %vm12393_vm15, %v12391_v0  ;;  %11429 = vmatpush3.bf16.msra.mxu1 %v11428_v32  ;;  %v11461_v31 = vpack.c.bf16 %v9449_v28, %v9448_v27  ;;  %v9451_v32 = vld [vmem:[%s14205_s5 + $0x140] sm:$0xff]  ;;  %v5603_v27 = vld [vmem:[%s14207_s7 + $0x38] sm:$0xff]  ;;  %v9501_v28 = vld [vmem:[%s14207_s7 + $0x130] sm:$0xff] }
 0x331   : > { %11430 = vmatprep.subr.bf16.mxu1 %v12392_v19 }
 0x334   : > { %11432 = vmatpush3.bf16.msra.mxu1 %v11431_v34  ;;  %v11464_v34 = vpack.c.bf16 %v9452_v33, %v9451_v32  ;;  %v5604_v32 = vld [vmem:[%s14207_s7 + $0x40] sm:$0xff]  ;;  %v5605_v33 = vld [vmem:[%s14207_s7 + $0x48] sm:$0xff] }
 0x335   : > { %11433 = vmatprep.subr.bf16.mxu1 %v12392_v19 }
 0x3e2   : > { %v10625_v37 = vpop.f32.mrb[6].mxu1 }
 0x3e3   : > { %v4359_v35 = vadd.f32 %v10625_v37, %v9404_v36  ;;  %v4340_v39 = vpop.f32.mrb[7].mxu1  ;;  %v9454_v37 = vld [vmem:[%s14205_s5 + $0x158] sm:$0xff] }
 0x3e4   : > { %v4358_v40 = vadd.f32 %v9404_v36, %v4340_v39  ;;  %v9453_v36 = vld [vmem:[%s14205_s5 + $0x150] sm:$0xff] }
 0x3e5   : > { %4365 = vst.msk [vmem:[#allocation9 + $0xa] sm:$0xff] %vm4363_vm0, %v4359_v35  ;;  %vm4367_vm4 = vcmp.gt.f32.partialorder %v4359_v35, 0.0  ;;  %v4369_v42 = vmul.f32 0.2, %v4359_v35  ;;  %v11467_v39 = vpack.c.bf16 %v9454_v37, %v9453_v36  ;;  %v9503_v36 = vld [vmem:[%s14207_s7 + $0x140] sm:$0xff]  ;;  %v9504_v37 = vld [vmem:[%s14207_s7 + $0x148] sm:$0xff] }
 0x3e6   : > { %4364 = vst.msk [vmem:[#allocation9 + $0x2] sm:$0xff] %vm4363_vm0, %v4358_v40  ;;  %vm4366_vm6 = vcmp.gt.f32.partialorder %v4358_v40, 0.0  ;;  %v4368_v43 = vmul.f32 0.2, %v4358_v40 }
 0x3e7   : > { %v4371_v44 = vsel %vm4367_vm4, %v4359_v35, %v4369_v42  ;;  %v9457_v42 = vld [vmem:[%s14205_s5 + $0x168] sm:$0xff] }
 0x3e8   : > { %4373 = vst.msk [vmem:[#allocation6 + $0x8] sm:$0xff] %vm4363_vm0, %v4371_v44  ;;  %v4370_v45 = vsel %vm4366_vm6, %v4358_v40, %v4368_v43  ;;  %v9456_v40 = vld [vmem:[%s14205_s5 + $0x160] sm:$0xff]  ;;  %v9458_v44 = vld [vmem:[%s14205_s5 + $0x170] sm:$0xff] }
 0x3e9   : > { %4372 = vst.msk [vmem:[#allocation6] sm:$0xff] %vm4363_vm0, %v4370_v45  ;;  %v11470_v43 = vpack.c.bf16 %v9457_v42, %v9456_v40  ;;  %v9459_v45 = vld [vmem:[%s14205_s5 + $0x178] sm:$0xff]  ;;  %v5606_v40 = vld [vmem:[%s14207_s7 + $0x50] sm:$0xff] }
 0x3ea   : > { %v4469_v46 = vpop.f32.mrb[8].mxu1  ;;  %v5607_v42 = vld [vmem:[%s14207_s7 + $0x58] sm:$0xff] }
 0x3eb   : > { %v10636_v48 = vpop.f32.mrb[9].mxu1 }
 0x3ec   : > { %v11473_v48 = vpack.c.bf16 %v9459_v45, %v9458_v44  ;;  %v11509_v44 = vpack.c.bf16 %v5607_v42, %v5606_v40  ;;  %v9506_v45 = vld [vmem:[%s14207_s7 + $0x158] sm:$0xff]  ;;  %v9484_v40 = vld [vmem:[%s14207_s7 + $0xb0] sm:$0xff] }
 0x3ed   : > { %v9485_v42 = vld [vmem:[%s14207_s7 + $0xb8] sm:$0xff] }
 0x3f0   : > { %v4374_v49 = vld [vmem:[#allocation6] ss:$4 sm:$0xf]  ;;  %v4376_v51 = vld [vmem:[#allocation6 + $0x1] ss:$4 sm:$0xf] }
 0x3f1   : > { %v4377_v52 = vmax.f32 %v4374_v49, %v4376_v51  ;;  %v4379_v53 = vld [vmem:[#allocation6 + $0x2] ss:$4 sm:$0xf]  ;;  %v4382_v58 = vld [vmem:[#allocation6 + $0x3] ss:$4 sm:$0xf] }
 0x3f2   : > { %v4542_v54 = vpop.f32.mrb[10].mxu1  ;;  %v9461_v49 = vld [vmem:[%s14205_s5 + $0x180] sm:$0xff]  ;;  %v9462_v51 = vld [vmem:[%s14205_s5 + $0x188] sm:$0xff] }
 0x3f3   : > { %v4380_v55 = vmax.f32 %v4377_v52, %v4379_v53  ;;  %v4543_v56 = vadd.f32 %v4542_v54, %v4469_v46  ;;  %v10647_v57 = vpop.f32.mrb[11].mxu1  ;;  %v5266_v52 = vld [vmem:[#allocation4 + $0xb] sm:$0xf]  ;;  %v11476_v53 = vpack.c.bf16 %v9462_v51, %v9461_v49  ;;  %v9463_v54 = vld [vmem:[%s14205_s5 + $0x190] sm:$0xff]  ;;  %v9507_v51 = vld [vmem:[%s14207_s7 + $0x160] sm:$0xff] }
 0x3f4   : > { %v9466_v57 = vld [vmem:[%s14205_s5 + $0x1a0] sm:$0xff] }
 0x3f5   : > { %v4383_v59 = vmax.f32 %v4380_v55, %v4382_v58  ;;  %v9464_v55 = vld [vmem:[%s14205_s5 + $0x198] sm:$0xff]  ;;  %v9467_v58 = vld [vmem:[%s14205_s5 + $0x1a8] sm:$0xff] }
 0x3f7   : > { %4388 = vst.msk [vmem:[#allocation4 + $0x7] sm:$0xf] %vm4387_vm7, %v4383_v59 }
 0x3fa   : > { %v4621_v62 = vpop.f32.mrb[12].mxu1 }
 0x3fb   : > { %v13280_v63 = vadd.f32 %v4621_v62, %v4543_v56  ;;  %v10658_v1 = vpop.f32.mrb[13].mxu1  ;;  %v11479_v56 = vpack.c.bf16 %v9464_v55, %v9463_v54  ;;  %v5346_v62 = vld [vmem:[#allocation4 + $0xc] sm:$0xf]  ;;  %v5610_v55 = vld [vmem:[%s14207_s7 + $0x70] sm:$0xff] }
 0x3fc   : > { %v11482_v1 = vpack.c.bf16 %v9467_v58, %v9466_v57  ;;  %v9509_v58 = vld [vmem:[%s14207_s7 + $0x170] sm:$0xff] }
 0x3fe   : > { %v4706_v5 = vld [vmem:[#allocation4 + $0x4] sm:$0xf]  ;;  %v5026_v29 = vld [vmem:[#allocation4 + $0x8] sm:$0xf] }
 0x3ff   : > { %10679 = vmatmul.mubr.msk.f32.vlgmr.msra.gmra.mrb[16].mxu1 %vm4363_vm0, %v4706_v5  ;;  %v4786_v13 = vld [vmem:[#allocation4 + $0x5] sm:$0xf]  ;;  %v5106_v35 = vld [vmem:[#allocation4 + $0x9] sm:$0xf]  ;;  %v9472_v5 = vld [vmem:[%s14205_s5 + $0x1c8] sm:$0xff] }
 0x400   : > { %11435 = vmatpush3.bf16.msra.mxu1 %v11434_v2  ;;  %10689 = vmatprep.mubr.msk.f32.mxu1 %vm12393_vm15, %v12391_v0  ;;  %v4866_v47 = vld [vmem:[#allocation4 + $0x6] sm:$0xf]  ;;  %v5186_v46 = vld [vmem:[#allocation4 + $0xa] sm:$0xf] }
 0x401   : > { %11436 = vmatprep.subr.bf16.mxu1 %v12392_v19  ;;  %v4946_v21 = vld [vmem:[#allocation4 + $0x7] sm:$0xf] }
 0x402   : > { %v4701_v59 = vpop.f32.mrb[14].mxu1  ;;  %v9468_v2 = vld [vmem:[%s14205_s5 + $0x1b0] sm:$0xff] }
 0x403   : > { %v13418_v60 = vadd.f32 %v4701_v59, %v13280_v63  ;;  %v10669_v61 = vpop.f32.mrb[15].mxu1  ;;  %v11485_v4 = vpack.c.bf16 %v9469_v3, %v9468_v2  ;;  %v9471_v63 = vld [vmem:[%s14205_s5 + $0x1c0] sm:$0xff]  ;;  %v9510_v59 = vld [vmem:[%s14207_s7 + $0x178] sm:$0xff] }
 0x404   : > { %11438 = vmatpush3.bf16.msra.mxu1 %v11437_v6  ;;  %v5426_v6 = vld [vmem:[#allocation4 + $0xd] sm:$0xf]  ;;  %v11488_v7 = vpack.c.bf16 %v9472_v5, %v9471_v63  ;;  %v11563_v61 = vpack.c.bf16 %v9510_v59, %v9509_v58  ;;  %v9513_v59 = vld [vmem:[%s14207_s7 + $0x188] sm:$0xff] }
 0x405   : > { %11439 = vmatprep.subr.bf16.mxu1 %v12392_v19  ;;  %v9512_v58 = vld [vmem:[%s14207_s7 + $0x180] sm:$0xff] }
 0x407   : > { %10690 = vmatmul.mubr.msk.f32.vlgmr.msra.gmra.mrb[18].mxu1 %vm4363_vm0, %v4786_v13  ;;  %v5596_v13 = vld [vmem:[%s14207_s7] sm:$0xff] }
 0x408   : > { %11441 = vmatpush3.bf16.msra.mxu1 %v11440_v9  ;;  %10700 = vmatprep.mubr.msk.f32.mxu1 %vm12393_vm15, %v12391_v0  ;;  %v9474_v9 = vld [vmem:[%s14205_s5 + $0x1d8] sm:$0xff] }
 0x409   : > { %11442 = vmatprep.subr.bf16.mxu1 %v12392_v19  ;;  %v11491_v10 = vpack.c.bf16 %v9474_v9, %v9473_v8 }
 0x40c   : > { %11444 = vmatpush3.bf16.msra.mxu1 %v11443_v14  ;;  %v5597_v14 = vld [vmem:[%s14207_s7 + $0x8] sm:$0xff] }
 0x40d   : > { %11445 = vmatprep.subr.bf16.mxu1 %v12392_v19  ;;  %v11494_v24 = vpack.c.bf16 %v5597_v14, %v5596_v13 }
 0x40f   : > { %10701 = vmatmul.mubr.msk.f32.vlgmr.msra.gmra.mrb[20].mxu1 %vm4363_vm0, %v4866_v47  ;;  %v5599_v47 = vld [vmem:[%s14207_s7 + $0x18] sm:$0xff] }
 0x410   : > { %11447 = vmatpush3.bf16.msra.mxu1 %v11446_v30  ;;  %10711 = vmatprep.mubr.msk.f32.mxu1 %vm12393_vm15, %v12391_v0  ;;  %v9496_v30 = vld [vmem:[%s14207_s7 + $0x108] sm:$0xff]  ;;  %v11497_v15 = vpack.c.bf16 %v5599_v47, %v5598_v41 }
 0x411   : > { %11448 = vmatprep.subr.bf16.mxu1 %v12392_v19  ;;  %v11542_v38 = vpack.c.bf16 %v9496_v30, %v9495_v17 }
 0x413   : > { %11543 = vmatpush3.bf16.msra.mxu0 %v11542_v38 }
 0x414   : > { %11450 = vmatpush3.bf16.msra.mxu1 %v11449_v50  ;;  %11544 = vmatprep.subr.bf16.mxu0 %v12392_v19  ;;  %v9497_v50 = vld [vmem:[%s14207_s7 + $0x110] sm:$0xff] }
 0x415   : > { %11451 = vmatprep.subr.bf16.mxu1 %v12392_v19  ;;  %v11545_v20 = vpack.c.bf16 %v9498_v16, %v9497_v50 }
 0x417   : > { %10712 = vmatmul.mubr.msk.f32.vlgmr.msra.gmra.mrb[22].mxu1 %vm4363_vm0, %v4946_v21  ;;  %v9499_v21 = vld [vmem:[%s14207_s7 + $0x120] sm:$0xff]  ;;  %11546 = vmatpush3.bf16.msra.mxu0 %v11545_v20 }
 0x418   : > { %11453 = vmatpush3.bf16.msra.mxu1 %v11452_v12  ;;  %10722 = vmatprep.mubr.msk.f32.mxu1 %vm12393_vm15, %v12391_v0  ;;  %v5600_v12 = vld [vmem:[%s14207_s7 + $0x20] sm:$0xff] }
 0x419   : > { %11454 = vmatprep.subr.bf16.mxu1 %v12392_v19  ;;  %v11500_v23 = vpack.c.bf16 %v5601_v18, %v5600_v12  ;;  %11547 = vmatprep.subr.bf16.mxu0 %v12392_v19 }
 0x41c   : > { %11456 = vmatpush3.bf16.msra.mxu1 %v11455_v22  ;;  %v9500_v22 = vld [vmem:[%s14207_s7 + $0x128] sm:$0xff] }
 0x41d   : > { %11457 = vmatprep.subr.bf16.mxu1 %v12392_v19  ;;  %v11548_v25 = vpack.c.bf16 %v9500_v22, %v9499_v21 }
 0x41f   : > { %10723 = vmatmul.mubr.msk.f32.vlgmr.msra.gmra.mrb[24].mxu1 %vm4363_vm0, %v5026_v29  ;;  %11549 = vmatpush3.bf16.msra.mxu0 %v11548_v25  ;;  %v9479_v25 = vld [vmem:[%s14207_s7 + $0x88] sm:$0xff] }
 0x420   : > { %11459 = vmatpush3.bf16.msra.mxu1 %v11458_v26  ;;  %10733 = vmatprep.mubr.msk.f32.mxu1 %vm12393_vm15, %v12391_v0  ;;  %v5602_v26 = vld [vmem:[%s14207_s7 + $0x30] sm:$0xff] }
 0x421   : > { %11460 = vmatprep.subr.bf16.mxu1 %v12392_v19  ;;  %v11503_v29 = vpack.c.bf16 %v5603_v27, %v5602_v26  ;;  %11550 = vmatprep.subr.bf16.mxu0 %v12392_v19  ;;  %v9476_v27 = vld [vmem:[#allocation13] ss:$0 sm:$0xff] }
 0x424   : > { %11462 = vmatpush3.bf16.msra.mxu1 %v11461_v31  ;;  %v9502_v31 = vld [vmem:[%s14207_s7 + $0x138] sm:$0xff] }
 0x425   : > { %11463 = vmatprep.subr.bf16.mxu1 %v12392_v19 }
 0x427   : > { %10734 = vmatmul.mubr.msk.f32.vlgmr.msra.gmra.mrb[26].mxu1 %vm4363_vm0, %v5106_v35  ;;  %v11506_v35 = vpack.c.bf16 %v5605_v33, %v5604_v32  ;;  %v9480_v33 = vld [vmem:[%s14207_s7 + $0x90] sm:$0xff] }
 0x428   : > { %11465 = vmatpush3.bf16.msra.mxu1 %v11464_v34  ;;  %10744 = vmatprep.mubr.msk.f32.mxu1 %vm12393_vm15, %v12391_v0  ;;  %v11551_v34 = vpack.c.bf16 %v9502_v31, %v9501_v28 }
 0x429   : > { %11466 = vmatprep.subr.bf16.mxu1 %v12392_v19 }
 0x42a   : > { %11552 = vmatpush3.bf16.msra.mxu0 %v11551_v34  ;;  %v9481_v34 = vld [vmem:[%s14207_s7 + $0x98] sm:$0xff] }
 0x42b   : > { %11553 = vmatprep.subr.bf16.mxu0 %v12392_v19 }
 0x42c   : > { %11468 = vmatpush3.bf16.msra.mxu1 %v11467_v39  ;;  %v11554_v39 = vpack.c.bf16 %v9504_v37, %v9503_v36  ;;  %v11521_v36 = vpack.c.bf16 %v9481_v34, %v9480_v33  ;;  %v9482_v37 = vld [vmem:[%s14207_s7 + $0xa0] sm:$0xff]  ;;  %v9542_v33 = vld [vmem:[%s14209_s9 + $0xe8] sm:$0xff] }
 0x42d   : > { %11469 = vmatprep.subr.bf16.mxu1 %v12392_v19 }
 0x42e   : > { %11555 = vmatpush3.bf16.msra.mxu0 %v11554_v39 }
 0x42f   : > { %10745 = vmatmul.mubr.msk.f32.vlgmr.msra.gmra.mrb[28].mxu1 %vm4363_vm0, %v5186_v46  ;;  %11556 = vmatprep.subr.bf16.mxu0 %v12392_v19  ;;  %v5608_v46 = vld [vmem:[%s14207_s7 + $0x60] sm:$0xff] }
 0x430   : > { %11471 = vmatpush3.bf16.msra.mxu1 %v11470_v43  ;;  %10755 = vmatprep.mubr.msk.f32.mxu1 %vm12393_vm15, %v12391_v0  ;;  %v9505_v43 = vld [vmem:[%s14207_s7 + $0x150] sm:$0xff] }
 0x431   : > { %11472 = vmatprep.subr.bf16.mxu1 %v12392_v19  ;;  %v11557_v49 = vpack.c.bf16 %v9506_v45, %v9505_v43  ;;  %v11527_v43 = vpack.c.bf16 %v9485_v42, %v9484_v40  ;;  %v9487_v45 = vld [vmem:[%s14207_s7 + $0xc8] sm:$0xff] }
 0x432   : > { %v5982_v40 = vld [vmem:[%s14209_s9 + $0x8] sm:$0xff] }
 0x433   : > { %11558 = vmatpush3.bf16.msra.mxu0 %v11557_v49  ;;  %v9489_v49 = vld [vmem:[%s14207_s7 + $0xd8] sm:$0xff] }
 0x434   : > { %11474 = vmatpush3.bf16.msra.mxu1 %v11473_v48  ;;  %v5609_v48 = vld [vmem:[%s14207_s7 + $0x68] sm:$0xff]  ;;  %11559 = vmatprep.subr.bf16.mxu0 %v12392_v19 }
 0x435   : > { %11475 = vmatprep.subr.bf16.mxu1 %v12392_v19 }
 0x437   : > { %10756 = vmatmul.mubr.msk.f32.vlgmr.msra.gmra.mrb[30].mxu1 %vm4363_vm0, %v5266_v52  ;;  %v9508_v52 = vld [vmem:[%s14207_s7 + $0x168] sm:$0xff] }
 0x438   : > { %11477 = vmatpush3.bf16.msra.mxu1 %v11476_v53  ;;  %10766 = vmatprep.mubr.msk.f32.mxu1 %vm12393_vm15, %v12391_v0  ;;  %v11512_v53 = vpack.c.bf16 %v5609_v48, %v5608_v46  ;;  %v11560_v54 = vpack.c.bf16 %v9508_v52, %v9507_v51  ;;  %v9488_v48 = vld [vmem:[%s14207_s7 + $0xd0] sm:$0xff]  ;;  %v9490_v52 = vld [vmem:[%s14207_s7 + $0xe0] sm:$0xff] }
 0x439   : > { %11478 = vmatprep.subr.bf16.mxu1 %v12392_v19  ;;  %v11533_v51 = vpack.c.bf16 %v9489_v49, %v9488_v48 }
 0x43a   : > { %11561 = vmatpush3.bf16.msra.mxu0 %v11560_v54 }
 0x43b   : > { %11562 = vmatprep.subr.bf16.mxu0 %v12392_v19 }
 0x43c   : > { %11480 = vmatpush3.bf16.msra.mxu1 %v11479_v56  ;;  %v5611_v56 = vld [vmem:[%s14207_s7 + $0x78] sm:$0xff] }
 0x43d   : > { %11481 = vmatprep.subr.bf16.mxu1 %v12392_v19  ;;  %v11515_v57 = vpack.c.bf16 %v5611_v56, %v5610_v55  ;;  %v9492_v55 = vld [vmem:[%s14207_s7 + $0xf0] sm:$0xff]  ;;  %v9493_v56 = vld [vmem:[%s14207_s7 + $0xf8] sm:$0xff] }
 0x43e   : > { %11564 = vmatpush3.bf16.msra.mxu0 %v11563_v61  ;;  %v11566_v61 = vpack.c.bf16 %v9513_v59, %v9512_v58  ;;  %v5983_v58 = vld [vmem:[%s14209_s9 + $0x10] sm:$0xff]  ;;  %v5984_v59 = vld [vmem:[%s14209_s9 + $0x18] sm:$0xff] }
 0x43f   : > { %10767 = vmatmul.mubr.msk.f32.vlgmr.msra.gmra.mrb[32].mxu1 %vm4363_vm0, %v5346_v62 }
 0x440   : > { %11483 = vmatpush3.bf16.msra.mxu1 %v11482_v1  ;;  %10777 = vmatprep.mubr.msk.f32.mxu1 %vm12393_vm15, %v12391_v0 }
 0x441   : > { %11484 = vmatprep.subr.bf16.mxu1 %v12392_v19 }
 0x444   : > { %11486 = vmatpush3.bf16.msra.mxu1 %v11485_v4 }
 0x445   : > { %11487 = vmatprep.subr.bf16.mxu1 %v12392_v19 }
 0x447   : > { %10778 = vmatmul.mubr.msk.f32.vlgmr.msra.gmra.mrb[34].mxu1 %vm4363_vm0, %v5426_v6 }
 0x448   : > { %11489 = vmatpush3.bf16.msra.mxu1 %v11488_v7  ;;  %10788 = vmatprep.mubr.msk.f32.mxu1 %vm12393_vm15, %v12391_v0 }
 0x449   : > { %11490 = vmatprep.subr.bf16.mxu1 %v12392_v19 }
 0x44c   : > { %11492 = vmatpush3.bf16.msra.mxu1 %v11491_v10 }
 0x44d   : > { %11493 = vmatprep.subr.bf16.mxu1 %v12392_v19 }
 0x44f   : > { %10789 = vmatmul.mubr.msk.f32.vlgmr.msra.gmra.mrb[36].mxu1 %vm4363_vm0, %v5506_v11 }
 0x450   : > { %10823 = vmatprep.mubr.msk.f32.mxu1 %vm12393_vm15, %v12391_v0  ;;  %11495 = vmatpush3.bf16.msra.mxu1 %v11494_v24 }
 0x451   : > { %11496 = vmatprep.subr.bf16.mxu1 %v12392_v19 }
 0x454   : > { %11498 = vmatpush3.bf16.msra.mxu1 %v11497_v15 }
 0x455   : > { %11499 = vmatprep.subr.bf16.mxu1 %v12392_v19 }
 0x458   : > { %11501 = vmatpush3.bf16.msra.mxu1 %v11500_v23  ;;  %v9478_v23 = vld [vmem:[%s14207_s7 + $0x80] sm:$0xff] }
 0x459   : > { %11502 = vmatprep.subr.bf16.mxu1 %v12392_v19  ;;  %v11518_v31 = vpack.c.bf16 %v9479_v25, %v9478_v23  ;;  %v9537_v25 = vld [vmem:[%s14209_s9 + $0xc0] sm:$0xff] }
 0x45c   : > { %11504 = vmatpush3.bf16.msra.mxu1 %v11503_v29 }
 0x45d   : > { %11505 = vmatprep.subr.bf16.mxu1 %v12392_v19 }
 0x460   : > { %11507 = vmatpush3.bf16.msra.mxu1 %v11506_v35  ;;  %v9483_v35 = vld [vmem:[%s14207_s7 + $0xa8] sm:$0xff] }
 0x461   : > { %11508 = vmatprep.subr.bf16.mxu1 %v12392_v19  ;;  %v11524_v39 = vpack.c.bf16 %v9483_v35, %v9482_v37  ;;  %v9544_v37 = vld [vmem:[%s14209_s9 + $0xf8] sm:$0xff] }
 0x464   : > { %11510 = vmatpush3.bf16.msra.mxu1 %v11509_v44  ;;  %v9486_v44 = vld [vmem:[%s14207_s7 + $0xc0] sm:$0xff] }
 0x465   : > { %11511 = vmatprep.subr.bf16.mxu1 %v12392_v19  ;;  %v11530_v46 = vpack.c.bf16 %v9487_v45, %v9486_v44 }
 0x468   : > { %11513 = vmatpush3.bf16.msra.mxu1 %v11512_v53  ;;  %v9491_v53 = vld [vmem:[%s14207_s7 + $0xe8] sm:$0xff] }
 0x469   : > { %11514 = vmatprep.subr.bf16.mxu1 %v12392_v19  ;;  %v11536_v54 = vpack.c.bf16 %v9491_v53, %v9490_v52 }
 0x46c   : > { %11516 = vmatpush3.bf16.msra.mxu1 %v11515_v57  ;;  %v11539_v57 = vpack.c.bf16 %v9493_v56, %v9492_v55 }
 0x46d   : > { %11517 = vmatprep.subr.bf16.mxu1 %v12392_v19 }
 0x4d2   : > { %v4781_v62 = vpop.f32.mrb[16].mxu1 }
 0x4d3   : > { %v4785_v1 = vadd.f32 %v4781_v62, %v13418_v60  ;;  %v10680_v2 = vpop.f32.mrb[17].mxu1  ;;  %v9514_v62 = vld [vmem:[%s14207_s7 + $0x190] sm:$0xff] }
 0x4da   : > { %v4861_v3 = vpop.f32.mrb[18].mxu1 }
 0x4db   : > { %v4865_v4 = vadd.f32 %v4861_v3, %v4785_v1  ;;  %v10691_v63 = vpop.f32.mrb[19].mxu1  ;;  %v9515_v1 = vld [vmem:[%s14207_s7 + $0x198] sm:$0xff]  ;;  %v9516_v3 = vld [vmem:[%s14207_s7 + $0x1a0] sm:$0xff] }
 0x4dc   : > { %v11569_v2 = vpack.c.bf16 %v9515_v1, %v9514_v62  ;;  %v11625_v1 = vpack.c.bf16 %v5984_v59, %v5983_v58  ;;  %v9567_v58 = vld [vmem:[%s14209_s9 + $0x1b0] sm:$0xff]  ;;  %v9568_v59 = vld [vmem:[%s14209_s9 + $0x1b8] sm:$0xff] }
 0x4e2   : > { %v4941_v5 = vpop.f32.mrb[20].mxu1 }
 0x4e3   : > { %v4945_v6 = vadd.f32 %v4941_v5, %v4865_v4  ;;  %v10702_v7 = vpop.f32.mrb[21].mxu1  ;;  %v9517_v4 = vld [vmem:[%s14207_s7 + $0x1a8] sm:$0xff]  ;;  %v9518_v5 = vld [vmem:[%s14207_s7 + $0x1b0] sm:$0xff] }
 0x4e4   : > { %v11572_v63 = vpack.c.bf16 %v9517_v4, %v9516_v3  ;;  %v9520_v7 = vld [vmem:[%s14207_s7 + $0x1c0] sm:$0xff]  ;;  %v5986_v3 = vld [vmem:[%s14209_s9 + $0x28] sm:$0xff] }
 0x4ea   : > { %v5021_v8 = vpop.f32.mrb[22].mxu1 }
 0x4eb   : > { %v5025_v9 = vadd.f32 %v5021_v8, %v4945_v6  ;;  %v10713_v10 = vpop.f32.mrb[23].mxu1  ;;  %v9521_v8 = vld [vmem:[%s14207_s7 + $0x1c8] sm:$0xff] }
 0x4ec   : > { %v9522_v10 = vld [vmem:[%s14207_s7 + $0x1d0] sm:$0xff] }
 0x4f2   : > { %v5101_v11 = vpop.f32.mrb[24].mxu1 }
 0x4f3   : > { %v5105_v13 = vadd.f32 %v5101_v11, %v5025_v9  ;;  %v10724_v14 = vpop.f32.mrb[25].mxu1  ;;  %v11578_v9 = vpack.c.bf16 %v9521_v8, %v9520_v7  ;;  %v9523_v11 = vld [vmem:[%s14207_s7 + $0x1d8] sm:$0xff]  ;;  %v5989_v7 = vld [vmem:[%s14209_s9 + $0x40] sm:$0xff]  ;;  %v5990_v8 = vld [vmem:[%s14209_s9 + $0x48] sm:$0xff] }
 0x4f4   : > { %v9524_v14 = vld [vmem:[%s14207_s7 + $0x1e0] sm:$0xff] }
 0x4fa   : > { %v5181_v17 = vpop.f32.mrb[26].mxu1 }
 0x4fb   : > { %v5185_v24 = vadd.f32 %v5181_v17, %v5105_v13  ;;  %v10735_v30 = vpop.f32.mrb[27].mxu1  ;;  %v11581_v13 = vpack.c.bf16 %v9523_v11, %v9522_v10  ;;  %v9525_v17 = vld [vmem:[%s14207_s7 + $0x1e8] sm:$0xff]  ;;  %v5991_v10 = vld [vmem:[%s14209_s9 + $0x50] sm:$0xff]  ;;  %v5992_v11 = vld [vmem:[%s14209_s9 + $0x58] sm:$0xff] }
 0x4fc   : > { %v9526_v30 = vld [vmem:[%s14207_s7 + $0x1f0] sm:$0xff] }
 0x502   : > { %v5261_v38 = vpop.f32.mrb[28].mxu1 }
 0x503   : > { %v5265_v41 = vadd.f32 %v5261_v38, %v5185_v24  ;;  %v10746_v47 = vpop.f32.mrb[29].mxu1  ;;  %v11584_v24 = vpack.c.bf16 %v9525_v17, %v9524_v14  ;;  %v9527_v38 = vld [vmem:[%s14207_s7 + $0x1f8] sm:$0xff]  ;;  %v5993_v14 = vld [vmem:[%s14209_s9 + $0x60] sm:$0xff]  ;;  %v5994_v17 = vld [vmem:[%s14209_s9 + $0x68] sm:$0xff] }
 0x504   : > { %v9529_v47 = vld [vmem:[%s14209_s9 + $0x80] sm:$0xff] }
 0x50a   : > { %v5341_v60 = vpop.f32.mrb[30].mxu1 }
 0x50b   : > { %v5345_v50 = vadd.f32 %v5341_v60, %v5265_v41  ;;  %v10757_v15 = vpop.f32.mrb[31].mxu1  ;;  %v11587_v41 = vpack.c.bf16 %v9527_v38, %v9526_v30  ;;  %v9530_v60 = vld [vmem:[%s14209_s9 + $0x88] sm:$0xff]  ;;  %v5995_v30 = vld [vmem:[%s14209_s9 + $0x70] sm:$0xff]  ;;  %v5996_v38 = vld [vmem:[%s14209_s9 + $0x78] sm:$0xff] }
 0x50c   : > { %v11589_v15 = vpack.c.bf16 %v9530_v60, %v9529_v47  ;;  %v9545_v47 = vld [vmem:[%s14209_s9 + $0x100] sm:$0xff]  ;;  %v9546_v60 = vld [vmem:[%s14209_s9 + $0x108] sm:$0xff] }
 0x50e   : > { %11590 = vmatprep.subr.bf16.mxu0 %v11589_v15 }
 0x512   : > { %v5421_v16 = vpop.f32.mrb[32].mxu1 }
 0x513   : > { %v5425_v12 = vadd.f32 %v5421_v16, %v5345_v50  ;;  %v10768_v18 = vpop.f32.mrb[33].mxu1  ;;  %v9531_v50 = vld [vmem:[%s14209_s9 + $0x90] sm:$0xff] }
 0x514   : > { %v9534_v18 = vld [vmem:[%s14209_s9 + $0xa8] sm:$0xff] }
 0x51a   : > { %v5501_v20 = vpop.f32.mrb[34].mxu1 }
 0x51b   : > { %v5505_v21 = vadd.f32 %v5501_v20, %v5425_v12  ;;  %v10779_v22 = vpop.f32.mrb[35].mxu1  ;;  %v9533_v12 = vld [vmem:[%s14209_s9 + $0xa0] sm:$0xff] }
 0x51c   : > { %v11597_v20 = vpack.c.bf16 %v9534_v18, %v9533_v12  ;;  %v9536_v22 = vld [vmem:[%s14209_s9 + $0xb8] sm:$0xff]  ;;  %v9549_v18 = vld [vmem:[%s14209_s9 + $0x120] sm:$0xff] }
 0x522   : > { %v5581_v26 = vpop.f32.mrb[36].mxu1 }
 0x523   : > { %v5585_v28 = vadd.f32 %v5581_v26, %v5505_v21  ;;  %v10790_v29 = vpop.f32.mrb[37].mxu1  ;;  %v9535_v21 = vld [vmem:[%s14209_s9 + $0xb0] sm:$0xff]  ;;  %v9538_v26 = vld [vmem:[%s14209_s9 + $0xc8] sm:$0xff] }
 0x524   : > { %v11601_v23 = vpack.c.bf16 %v9536_v22, %v9535_v21  ;;  %v9540_v29 = vld [vmem:[%s14209_s9 + $0xd8] sm:$0xff] }
 0x525   : > { %v13570_v32 = vadd.f32 %v9476_v27, %v5585_v28  ;;  %v11605_v27 = vpack.c.bf16 %v9538_v26, %v9537_v25  ;;  %v9539_v28 = vld [vmem:[%s14209_s9 + $0xd0] sm:$0xff]  ;;  %v9552_v25 = vld [vmem:[%s14209_s9 + $0x138] sm:$0xff] }
 0x527   : > { %10824 = vmatmul.mubr.f32.vlgmr.msra.gmra.mrb[38].mxu1 %v13570_v32  ;;  %10894 = vmatmul.mubr.f32.vlgmr.msra.gmra.mrb[8].mxu0 %v13570_v32 }
 0x528   : > { %11519 = vmatpush3.bf16.msra.mxu1 %v11518_v31  ;;  %10858 = vmatprep.mubr.msk.f32.mxu1 %vm12393_vm15, %v12391_v0  ;;  %v11609_v31 = vpack.c.bf16 %v9540_v29, %v9539_v28  ;;  %v9554_v28 = vld [vmem:[%s14209_s9 + $0x148] sm:$0xff]  ;;  %v6918_v29 = vld [vmem:[#allocation18] sm:$0xff] }
 0x529   : > { %11520 = vmatprep.subr.bf16.mxu1 %v12392_v19  ;;  %11592 = vmatpush3.bf16.msra.mxu0 %v11589_v15  ;;  %v9547_v15 = vld [vmem:[%s14209_s9 + $0x110] sm:$0xff] }
 0x52c   : > { %11522 = vmatpush3.bf16.msra.mxu1 %v11521_v36  ;;  %v9543_v36 = vld [vmem:[%s14209_s9 + $0xf0] sm:$0xff] }
 0x52d   : > { %11523 = vmatprep.subr.bf16.mxu1 %v12392_v19  ;;  %v11617_v35 = vpack.c.bf16 %v9544_v37, %v9543_v36  ;;  %v9556_v36 = vld [vmem:[%s14209_s9 + $0x158] sm:$0xff] }
 0x530   : > { %11525 = vmatpush3.bf16.msra.mxu1 %v11524_v39  ;;  %v5981_v39 = vld [vmem:[%s14209_s9] sm:$0xff] }
 0x531   : > { %11526 = vmatprep.subr.bf16.mxu1 %v12392_v19  ;;  %v11621_v42 = vpack.c.bf16 %v5982_v40, %v5981_v39  ;;  %v9558_v39 = vld [vmem:[%s14209_s9 + $0x168] sm:$0xff] }
 0x534   : > { %11528 = vmatpush3.bf16.msra.mxu1 %v11527_v43  ;;  %v9477_v43 = vld [vmem:[#allocation15] ss:$0 sm:$0xff] }
 0x535   : > { %11529 = vmatprep.subr.bf16.mxu1 %v12392_v19 }
 0x538   : > { %11531 = vmatpush3.bf16.msra.mxu1 %v11530_v46 }
 0x539   : > { %11532 = vmatprep.subr.bf16.mxu1 %v12392_v19 }
 0x53c   : > { %11534 = vmatpush3.bf16.msra.mxu1 %v11533_v51 }
 0x53d   : > { %11535 = vmatprep.subr.bf16.mxu1 %v12392_v19 }
 0x540   : > { %11537 = vmatpush3.bf16.msra.mxu1 %v11536_v54 }
 0x541   : > { %11538 = vmatprep.subr.bf16.mxu1 %v12392_v19 }
 0x544   : > { %11540 = vmatpush3.bf16.msra.mxu1 %v11539_v57 }
 0x545   : > { %11565 = vmatprep.subr.bf16.mxu1 %v12392_v19 }
 0x547   : > { %10859 = vmatmul.mubr.f32.vlgmr.msra.gmra.mrb[40].mxu1 %v13570_v32 }
 0x548   : > { %11567 = vmatpush3.bf16.msra.mxu1 %v11566_v61  ;;  %10928 = vmatprep.mubr.msk.f32.mxu1 %vm12393_vm15, %v12391_v0  ;;  %v9519_v0 = vld [vmem:[%s14207_s7 + $0x1b8] sm:$0xff] }
 0x549   : > { %11568 = vmatprep.subr.bf16.mxu1 %v12392_v19  ;;  %v11575_v6 = vpack.c.bf16 %v9519_v0, %v9518_v5  ;;  %v5987_v5 = vld [vmem:[%s14209_s9 + $0x30] sm:$0xff]  ;;  %v5988_v0 = vld [vmem:[%s14209_s9 + $0x38] sm:$0xff] }
 0x54c   : > { %11570 = vmatpush3.bf16.msra.mxu1 %v11569_v2  ;;  %v5985_v2 = vld [vmem:[%s14209_s9 + $0x20] sm:$0xff] }
 0x54d   : > { %11571 = vmatprep.subr.bf16.mxu1 %v12392_v19 }
 0x550   : > { %11573 = vmatpush3.bf16.msra.mxu1 %v11572_v63  ;;  %v11629_v63 = vpack.c.bf16 %v5986_v3, %v5985_v2  ;;  %v9571_v3 = vld [vmem:[%s14209_s9 + $0x1d0] sm:$0xff] }
 0x551   : > { %11574 = vmatprep.subr.bf16.mxu1 %v12392_v19 }
 0x554   : > { %11576 = vmatpush3.bf16.msra.mxu1 %v11575_v6  ;;  %v11633_v6 = vpack.c.bf16 %v5988_v0, %v5987_v5  ;;  %v9573_v5 = vld [vmem:[%s14209_s9 + $0x1e0] sm:$0xff]  ;;  %v9574_v0 = vld [vmem:[%s14209_s9 + $0x1e8] sm:$0xff] }
 0x555   : > { %11577 = vmatprep.subr.bf16.mxu1 %v12392_v19 }
 0x558   : > { %11579 = vmatpush3.bf16.msra.mxu1 %v11578_v9  ;;  %v11637_v9 = vpack.c.bf16 %v5990_v8, %v5989_v7  ;;  %v9575_v7 = vld [vmem:[%s14209_s9 + $0x1f0] sm:$0xff]  ;;  %v9576_v8 = vld [vmem:[%s14209_s9 + $0x1f8] sm:$0xff] }
 0x559   : > { %11580 = vmatprep.subr.bf16.mxu1 %v12392_v19 }
 0x55c   : > { %11582 = vmatpush3.bf16.msra.mxu1 %v11581_v13  ;;  %v11641_v13 = vpack.c.bf16 %v5992_v11, %v5991_v10  ;;  %v9577_v10 = vld [vmem:[%s14209_s9 + $0x200] sm:$0xff]  ;;  %v9578_v11 = vld [vmem:[%s14209_s9 + $0x208] sm:$0xff] }
 0x55d   : > { %11583 = vmatprep.subr.bf16.mxu1 %v12392_v19 }
 0x560   : > { %11585 = vmatpush3.bf16.msra.mxu1 %v11584_v24  ;;  %v11645_v24 = vpack.c.bf16 %v5994_v17, %v5993_v14  ;;  %v9579_v14 = vld [vmem:[%s14209_s9 + $0x210] sm:$0xff]  ;;  %v9580_v17 = vld [vmem:[%s14209_s9 + $0x218] sm:$0xff] }
 0x561   : > { %11586 = vmatprep.subr.bf16.mxu1 %v12392_v19  ;;  %v9532_v19 = vld [vmem:[%s14209_s9 + $0x98] sm:$0xff] }
 0x562   : > { %v11593_v16 = vpack.c.bf16 %v9532_v19, %v9531_v50  ;;  %v11653_v50 = vpack.c.bf16 %v9546_v60, %v9545_v47  ;;  %v9548_v19 = vld [vmem:[%s14209_s9 + $0x118] sm:$0xff] }
 0x564   : > { %11588 = vmatpush3.bf16.msra.mxu1 %v11587_v41  ;;  %11594 = vmatprep.subr.bf16.mxu0 %v11593_v16  ;;  %v11649_v41 = vpack.c.bf16 %v5996_v38, %v5995_v30  ;;  %v9581_v38 = vld [vmem:[%s14209_s9 + $0x220] sm:$0xff] }
 0x565   : > { %11596 = vmatpush3.bf16.msra.mxu0 %v11593_v16  ;;  %v11657_v16 = vpack.c.bf16 %v9548_v19, %v9547_v15  ;;  %v9584_v15 = vld [vmem:[%s14209_s9 + $0x238] sm:$0xff] }
 0x566   : > { %11598 = vmatprep.subr.bf16.mxu0 %v11597_v20 }
 0x567   : > { %10929 = vmatmul.mubr.f32.vlgmr.msra.gmra.mrb[42].mxu1 %v13570_v32  ;;  %v9541_v32 = vld [vmem:[%s14209_s9 + $0xe0] sm:$0xff] }
 0x568   : > { %v11613_v34 = vpack.c.bf16 %v9542_v33, %v9541_v32 }
 0x569   : > { %11600 = vmatpush3.bf16.msra.mxu0 %v11597_v20  ;;  %v9550_v20 = vld [vmem:[%s14209_s9 + $0x128] sm:$0xff] }
 0x56a   : > { %11602 = vmatprep.subr.bf16.mxu0 %v11601_v23  ;;  %v11661_v22 = vpack.c.bf16 %v9550_v20, %v9549_v18  ;;  %v9587_v20 = vld [vmem:[%s14209_s9 + $0x250] sm:$0xff] }
 0x56d   : > { %11604 = vmatpush3.bf16.msra.mxu0 %v11601_v23  ;;  %v9551_v23 = vld [vmem:[%s14209_s9 + $0x130] sm:$0xff] }
 0x56e   : > { %11606 = vmatprep.subr.bf16.mxu0 %v11605_v27  ;;  %v11665_v26 = vpack.c.bf16 %v9552_v25, %v9551_v23  ;;  %v9589_v23 = vld [vmem:[%s14209_s9 + $0x260] sm:$0xff]  ;;  %v9590_v25 = vld [vmem:[%s14209_s9 + $0x268] sm:$0xff] }
 0x571   : > { %11608 = vmatpush3.bf16.msra.mxu0 %v11605_v27  ;;  %v9553_v27 = vld [vmem:[%s14209_s9 + $0x140] sm:$0xff] }
 0x572   : > { %11610 = vmatprep.subr.bf16.mxu0 %v11609_v31  ;;  %v11669_v33 = vpack.c.bf16 %v9554_v28, %v9553_v27  ;;  %v9591_v27 = vld [vmem:[%s14209_s9 + $0x270] sm:$0xff]  ;;  %v9592_v28 = vld [vmem:[%s14209_s9 + $0x278] sm:$0xff] }
 0x575   : > { %11612 = vmatpush3.bf16.msra.mxu0 %v11609_v31  ;;  %v6919_v31 = vld [vmem:[#allocation18 + $0x8] sm:$0xff] }
 0x576   : > { %11614 = vmatprep.subr.bf16.mxu0 %v11613_v34  ;;  %v11789_v32 = vpack.c.bf16 %v6919_v31, %v6918_v29  ;;  %v11745_v29 = vpack.c.bf16 %v9592_v28, %v9591_v27  ;;  %v9593_v31 = vld [vmem:[%s14210_s10 + $0x20] sm:$0xff] }
 0x577   : > { %v7108_v28 = vld [vmem:[#allocation18 + $0x50] sm:$0xff] }
 0x578   : > { %11790 = vmatprep.subr.bf16.mxu1 %v11789_v32 }
 0x579   : > { %11616 = vmatpush3.bf16.msra.mxu0 %v11613_v34  ;;  %v9555_v34 = vld [vmem:[%s14209_s9 + $0x150] sm:$0xff]  ;;  %11792 = vmatpush3.bf16.msra.mxu1 %v11789_v32  ;;  %v9594_v32 = vld [vmem:[%s14210_s10 + $0x28] sm:$0xff] }
 0x57a   : > { %11618 = vmatprep.subr.bf16.mxu0 %v11617_v35  ;;  %v11673_v37 = vpack.c.bf16 %v9556_v36, %v9555_v34  ;;  %v9595_v34 = vld [vmem:[%s14210_s10 + $0x30] sm:$0xff]  ;;  %v9596_v36 = vld [vmem:[%s14210_s10 + $0x38] sm:$0xff] }
 0x57d   : > { %11620 = vmatpush3.bf16.msra.mxu0 %v11617_v35  ;;  %v9557_v35 = vld [vmem:[%s14209_s9 + $0x160] sm:$0xff] }
 0x57e   : > { %11622 = vmatprep.subr.bf16.mxu0 %v11621_v42  ;;  %v11677_v40 = vpack.c.bf16 %v9558_v39, %v9557_v35  ;;  %v6456_v39 = vld [vmem:[%s14210_s10] sm:$0xff] }
 0x5fa   : > { %v5685_v44 = vpop.f32.mrb[38].mxu1  ;;  %v5877_v45 = vpop.f32.mrb[8].mxu0 }
 0x5fb   : > { %v5686_v46 = vadd.f32 %v9477_v43, %v5685_v44  ;;  %v5878_v48 = vadd.f32 %v9477_v43, %v5877_v45  ;;  %v10825_v49 = vpop.f32.mrb[39].mxu1  ;;  %v10895_v51 = vpop.f32.mrb[9].mxu0  ;;  %v9561_v45 = vld [vmem:[%s14209_s9 + $0x180] sm:$0xff] }
 0x5fc   : > { %v9563_v49 = vld [vmem:[%s14209_s9 + $0x190] sm:$0xff]  ;;  %v9564_v51 = vld [vmem:[%s14209_s9 + $0x198] sm:$0xff] }
 0x5fd   : > { %5690 = vst [vmem:[#allocation7 + $0x2] ss:$4 sm:$0xf] %v5686_v46  ;;  %5882 = vst [vmem:[#allocation7 + $0x4] ss:$4 sm:$0xf] %v5878_v48 }
 0x5fe   : > { %v9562_v46 = vld [vmem:[%s14209_s9 + $0x188] sm:$0xff] }
 0x5ff   : > { %v11685_v48 = vpack.c.bf16 %v9562_v46, %v9561_v45  ;;  %v6459_v45 = vld [vmem:[%s14210_s10 + $0x18] sm:$0xff] }
 0x61a   : > { %v5781_v52 = vpop.f32.mrb[40].mxu1 }
 0x61b   : > { %v5782_v53 = vadd.f32 %v9477_v43, %v5781_v52  ;;  %v10860_v54 = vpop.f32.mrb[41].mxu1  ;;  %v11689_v52 = vpack.c.bf16 %v9564_v51, %v9563_v49  ;;  %v9601_v49 = vld [vmem:[%s14210_s10 + $0x40] sm:$0xff]  ;;  %v9602_v51 = vld [vmem:[%s14210_s10 + $0x48] sm:$0xff] }
 0x61c   : > { %v9565_v54 = vld [vmem:[%s14209_s9 + $0x1a0] sm:$0xff] }
 0x61d   : > { %5786 = vst [vmem:[#allocation7 + $0x3] ss:$4 sm:$0xf] %v5782_v53 }
 0x63a   : > { %v5973_v55 = vpop.f32.mrb[42].mxu1 }
 0x63b   : > { %v5974_v56 = vadd.f32 %v9477_v43, %v5973_v55  ;;  %v10930_v57 = vpop.f32.mrb[43].mxu1  ;;  %v9560_v43 = vld [vmem:[%s14209_s9 + $0x178] sm:$0xff]  ;;  %v9566_v55 = vld [vmem:[%s14209_s9 + $0x1a8] sm:$0xff] }
 0x63c   : > { %v11693_v57 = vpack.c.bf16 %v9566_v55, %v9565_v54  ;;  %v9603_v54 = vld [vmem:[%s14210_s10 + $0x50] sm:$0xff]  ;;  %v9604_v55 = vld [vmem:[%s14210_s10 + $0x58] sm:$0xff] }
 0x63d   : > { %5978 = vst [vmem:[#allocation7 + $0x5] ss:$4 sm:$0xf] %v5974_v56 }
 0x644   : > { %v5997_v61 = vld [vmem:[#allocation7 + $0x1] sm:$0xff]  ;;  %v5998_v62 = vld [vmem:[#allocation7 + $0x9] sm:$0xff] }
 0x645   : > { %10963 = vmatprep.mubr.f32.mxu0 %v5997_v61  ;;  %v5979_v4 = vld [vmem:[#allocation7] sm:$0xff]  ;;  %v5980_v12 = vld [vmem:[#allocation7 + $0x8] sm:$0xff]  ;;  %v11697_v61 = vpack.c.bf16 %v9568_v59, %v9567_v58  ;;  %v9608_v59 = vld [vmem:[%s14210_s10 + $0x68] sm:$0xff] }
 0x646   : > { %10964 = vmatmul.mubr.f32.vlgmr.msra.gmra.mrb[10].mxu0 %v5998_v62  ;;  %v6166_v21 = vld [vmem:[#allocation7 + $0x2] sm:$0xff]  ;;  %v6167_v53 = vld [vmem:[#allocation7 + $0xa] sm:$0xff] }
 0x647   : > { %11624 = vmatpush3.bf16.msra.mxu0 %v11621_v42  ;;  %10998 = vmatprep.mubr.f32.mxu0 %v5979_v4  ;;  %v9559_v42 = vld [vmem:[%s14209_s9 + $0x170] sm:$0xff]  ;;  %v6262_v56 = vld [vmem:[#allocation7 + $0x3] sm:$0xff]  ;;  %v6263_v30 = vld [vmem:[#allocation7 + $0xb] sm:$0xff] }
 0x648   : > { %11626 = vmatprep.subr.bf16.mxu0 %v11625_v1  ;;  %v11681_v44 = vpack.c.bf16 %v9560_v43, %v9559_v42  ;;  %v9569_v62 = vld [vmem:[%s14209_s9 + $0x1c0] sm:$0xff]  ;;  %v9572_v4 = vld [vmem:[%s14209_s9 + $0x1d8] sm:$0xff] }
 0x649   : > { %v6358_v47 = vld [vmem:[#allocation7 + $0x4] sm:$0xff]  ;;  %v6359_v35 = vld [vmem:[#allocation7 + $0xc] sm:$0xff] }
 0x64a   : > { %v6460_v42 = vld [vmem:[#allocation9 + $0x1] sm:$0xff] }
 0x64b   : > { %11628 = vmatpush3.bf16.msra.mxu0 %v11625_v1  ;;  %v9570_v1 = vld [vmem:[%s14209_s9 + $0x1c8] sm:$0xff]  ;;  %v9607_v58 = vld [vmem:[%s14210_s10 + $0x60] sm:$0xff] }
 0x64c   : > { %11630 = vmatprep.subr.bf16.mxu0 %v11629_v63  ;;  %v11701_v2 = vpack.c.bf16 %v9570_v1, %v9569_v62  ;;  %v11773_v62 = vpack.c.bf16 %v9608_v59, %v9607_v58  ;;  %v9609_v1 = vld [vmem:[%s14210_s10 + $0x70] sm:$0xff] }
 0x64f   : > { %11632 = vmatpush3.bf16.msra.mxu0 %v11629_v63  ;;  %v11705_v63 = vpack.c.bf16 %v9572_v4, %v9571_v3  ;;  %v6630_v4 = vld [vmem:[#allocation9 + $0xa] sm:$0xff] }
 0x650   : > { %11634 = vmatprep.subr.bf16.mxu0 %v11633_v6 }
 0x653   : > { %11636 = vmatpush3.bf16.msra.mxu0 %v11633_v6  ;;  %v11709_v6 = vpack.c.bf16 %v9574_v0, %v9573_v5  ;;  %v9614_v5 = vld [vmem:[%s14210_s10 + $0x88] sm:$0xff]  ;;  %v6719_v0 = vld [vmem:[#allocation9 + $0x3] sm:$0xff] }
 0x654   : > { %11638 = vmatprep.subr.bf16.mxu0 %v11637_v9 }
 0x657   : > { %11640 = vmatpush3.bf16.msra.mxu0 %v11637_v9  ;;  %v11713_v9 = vpack.c.bf16 %v9576_v8, %v9575_v7  ;;  %v9615_v7 = vld [vmem:[%s14210_s10 + $0x90] sm:$0xff]  ;;  %v9616_v8 = vld [vmem:[%s14210_s10 + $0x98] sm:$0xff] }
 0x658   : > { %11642 = vmatprep.subr.bf16.mxu0 %v11641_v13 }
 0x65b   : > { %11644 = vmatpush3.bf16.msra.mxu0 %v11641_v13  ;;  %v11717_v13 = vpack.c.bf16 %v9578_v11, %v9577_v10  ;;  %v6720_v10 = vld [vmem:[#allocation9 + $0xb] sm:$0xff] }
 0x65c   : > { %11646 = vmatprep.subr.bf16.mxu0 %v11645_v24  ;;  %v6809_v11 = vld [vmem:[#allocation9 + $0x4] sm:$0xff] }
 0x65f   : > { %11648 = vmatpush3.bf16.msra.mxu0 %v11645_v24  ;;  %v11721_v24 = vpack.c.bf16 %v9580_v17, %v9579_v14  ;;  %v6920_v14 = vld [vmem:[#allocation18 + $0x10] sm:$0xff]  ;;  %v6921_v17 = vld [vmem:[#allocation18 + $0x18] sm:$0xff] }
 0x660   : > { %11650 = vmatprep.subr.bf16.mxu0 %v11649_v41 }
 0x663   : > { %11652 = vmatpush3.bf16.msra.mxu0 %v11649_v41  ;;  %v9582_v41 = vld [vmem:[%s14209_s9 + $0x228] sm:$0xff] }
 0x664   : > { %11654 = vmatprep.subr.bf16.mxu0 %v11653_v50  ;;  %v11725_v60 = vpack.c.bf16 %v9582_v41, %v9581_v38  ;;  %v7016_v38 = vld [vmem:[#allocation18 + $0x28] sm:$0xff] }
 0x666   : > { %10999 = vmatmul.mubr.f32.vlgmr.msra.gmra.mrb[10].mxu0 %v5980_v12  ;;  %v9586_v12 = vld [vmem:[%s14209_s9 + $0x248] sm:$0xff] }
 0x667   : > { %11656 = vmatpush3.bf16.msra.mxu0 %v11653_v50  ;;  %11033 = vmatprep.mubr.f32.mxu0 %v6166_v21  ;;  %v9583_v50 = vld [vmem:[%s14209_s9 + $0x230] sm:$0xff]  ;;  %v9588_v21 = vld [vmem:[%s14209_s9 + $0x258] sm:$0xff] }
 0x668   : > { %11658 = vmatprep.subr.bf16.mxu0 %v11657_v16  ;;  %v11729_v19 = vpack.c.bf16 %v9584_v15, %v9583_v50 }
 0x66b   : > { %11660 = vmatpush3.bf16.msra.mxu0 %v11657_v16  ;;  %v9585_v16 = vld [vmem:[%s14209_s9 + $0x240] sm:$0xff] }
 0x66c   : > { %11662 = vmatprep.subr.bf16.mxu0 %v11661_v22  ;;  %v11733_v18 = vpack.c.bf16 %v9586_v12, %v9585_v16  ;;  %v7017_v12 = vld [vmem:[#allocation18 + $0x30] sm:$0xff] }
 0x66f   : > { %11664 = vmatpush3.bf16.msra.mxu0 %v11661_v22  ;;  %v11737_v22 = vpack.c.bf16 %v9588_v21, %v9587_v20 }
 0x670   : > { %11666 = vmatprep.subr.bf16.mxu0 %v11665_v26 }
 0x673   : > { %11668 = vmatpush3.bf16.msra.mxu0 %v11665_v26  ;;  %v11741_v26 = vpack.c.bf16 %v9590_v25, %v9589_v23  ;;  %v7106_v25 = vld [vmem:[#allocation18 + $0x40] sm:$0xff] }
 0x674   : > { %11670 = vmatprep.subr.bf16.mxu0 %v11669_v33 }
 0x677   : > { %11672 = vmatpush3.bf16.msra.mxu0 %v11669_v33  ;;  %v11749_v33 = vpack.c.bf16 %v9594_v32, %v9593_v31  ;;  %v7197_v32 = vld [vmem:[#allocation18 + $0x60] sm:$0xff] }
 0x678   : > { %11674 = vmatprep.subr.bf16.mxu0 %v11673_v37 }
 0x67b   : > { %11676 = vmatpush3.bf16.msra.mxu0 %v11673_v37  ;;  %v11753_v37 = vpack.c.bf16 %v9596_v36, %v9595_v34  ;;  %v7199_v36 = vld [vmem:[#allocation18 + $0x70] sm:$0xff] }
 0x67c   : > { %11678 = vmatprep.subr.bf16.mxu0 %v11677_v40 }
 0x67f   : > { %11680 = vmatpush3.bf16.msra.mxu0 %v11677_v40  ;;  %v6457_v40 = vld [vmem:[%s14210_s10 + $0x8] sm:$0xff] }
 0x680   : > { %11682 = vmatprep.subr.bf16.mxu0 %v11681_v44  ;;  %v11757_v43 = vpack.c.bf16 %v6457_v40, %v6456_v39  ;;  %v9632_v39 = vld [vmem:[%s14214_s14 + $0x20] sm:$0xff]  ;;  %v9633_v40 = vld [vmem:[%s14214_s14 + $0x28] sm:$0xff] }
 0x683   : > { %11684 = vmatpush3.bf16.msra.mxu0 %v11681_v44  ;;  %v6458_v44 = vld [vmem:[%s14210_s10 + $0x10] sm:$0xff] }
 0x684   : > { %11686 = vmatprep.subr.bf16.mxu0 %v11685_v48  ;;  %v11761_v46 = vpack.c.bf16 %v6459_v45, %v6458_v44  ;;  %v9635_v44 = vld [vmem:[%s14214_s14 + $0x38] sm:$0xff] }
 0x686   : > { %11034 = vmatmul.mubr.f32.vlgmr.msra.gmra.mrb[10].mxu0 %v6167_v53  ;;  %v11765_v53 = vpack.c.bf16 %v9602_v51, %v9601_v49  ;;  %v9620_v51 = vld [vmem:[%s14213_s13] ss:$0 sm:$0xff] }
 0x687   : > { %11688 = vmatpush3.bf16.msra.mxu0 %v11685_v48  ;;  %11068 = vmatprep.mubr.f32.mxu0 %v6262_v56  ;;  %v6461_v48 = vld [vmem:[#allocation9 + $0x9] sm:$0xff]  ;;  %v11769_v56 = vpack.c.bf16 %v9604_v55, %v9603_v54 }
 0x688   : > { %11690 = vmatprep.subr.bf16.mxu0 %v11689_v52 }
 0x68b   : > { %11692 = vmatpush3.bf16.msra.mxu0 %v11689_v52  ;;  %v6454_v52 = vld [vmem:[#allocation9] sm:$0xff] }
 0x68c   : > { %11694 = vmatprep.subr.bf16.mxu0 %v11693_v57 }
 0x68f   : > { %11696 = vmatpush3.bf16.msra.mxu0 %v11693_v57  ;;  %v6455_v57 = vld [vmem:[#allocation9 + $0x8] sm:$0xff] }
 0x690   : > { %11698 = vmatprep.subr.bf16.mxu0 %v11697_v61 }
 0x693   : > { %11700 = vmatpush3.bf16.msra.mxu0 %v11697_v61  ;;  %v6629_v61 = vld [vmem:[#allocation9 + $0x2] sm:$0xff] }
 0x694   : > { %11702 = vmatprep.subr.bf16.mxu0 %v11701_v2 }
 0x697   : > { %11704 = vmatpush3.bf16.msra.mxu0 %v11701_v2  ;;  %v9610_v2 = vld [vmem:[%s14210_s10 + $0x78] sm:$0xff] }
 0x698   : > { %11706 = vmatprep.subr.bf16.mxu0 %v11705_v63  ;;  %v11777_v3 = vpack.c.bf16 %v9610_v2, %v9609_v1 }
 0x69b   : > { %11708 = vmatpush3.bf16.msra.mxu0 %v11705_v63  ;;  %v9613_v63 = vld [vmem:[%s14210_s10 + $0x80] sm:$0xff] }
 0x69c   : > { %11710 = vmatprep.subr.bf16.mxu0 %v11709_v6 }
 0x69f   : > { %11712 = vmatpush3.bf16.msra.mxu0 %v11709_v6  ;;  %v11781_v6 = vpack.c.bf16 %v9614_v5, %v9613_v63 }
 0x6a0   : > { %11714 = vmatprep.subr.bf16.mxu0 %v11713_v9 }
 0x6a3   : > { %11716 = vmatpush3.bf16.msra.mxu0 %v11713_v9  ;;  %v11785_v9 = vpack.c.bf16 %v9616_v8, %v9615_v7 }
 0x6a4   : > { %11718 = vmatprep.subr.bf16.mxu0 %v11717_v13 }
 0x6a6   : > { %11069 = vmatmul.mubr.f32.vlgmr.msra.gmra.mrb[10].mxu0 %v6263_v30  ;;  %v7015_v30 = vld [vmem:[#allocation18 + $0x20] sm:$0xff] }
 0x6a7   : > { %11720 = vmatpush3.bf16.msra.mxu0 %v11717_v13  ;;  %11103 = vmatprep.mubr.f32.mxu0 %v6358_v47  ;;  %v6810_v13 = vld [vmem:[#allocation9 + $0xc] sm:$0xff]  ;;  %v11797_v41 = vpack.c.bf16 %v7016_v38, %v7015_v30  ;;  %v9619_v47 = vld [vmem:[#allocation16] ss:$0 sm:$0xff] }
 0x6a8   : > { %11722 = vmatprep.subr.bf16.mxu0 %v11721_v24 }
 0x6ab   : > { %11724 = vmatpush3.bf16.msra.mxu0 %v11721_v24  ;;  %v11793_v24 = vpack.c.bf16 %v6921_v17, %v6920_v14 }
 0x6ac   : > { %11726 = vmatprep.subr.bf16.mxu0 %v11725_v60 }
 0x6ad   : > { %11794 = vmatprep.subr.bf16.mxu1 %v11793_v24 }
 0x6ae   : > { %11796 = vmatpush3.bf16.msra.mxu1 %v11793_v24 }
 0x6af   : > { %11728 = vmatpush3.bf16.msra.mxu0 %v11725_v60  ;;  %11798 = vmatprep.subr.bf16.mxu1 %v11797_v41 }
 0x6b0   : > { %11730 = vmatprep.subr.bf16.mxu0 %v11729_v19 }
 0x6b3   : > { %11732 = vmatpush3.bf16.msra.mxu0 %v11729_v19 }
 0x6b4   : > { %11734 = vmatprep.subr.bf16.mxu0 %v11733_v18 }
 0x6b7   : > { %11736 = vmatpush3.bf16.msra.mxu0 %v11733_v18  ;;  %v7018_v18 = vld [vmem:[#allocation18 + $0x38] sm:$0xff] }
 0x6b8   : > { %11738 = vmatprep.subr.bf16.mxu0 %v11737_v22 }
 0x6bb   : > { %11740 = vmatpush3.bf16.msra.mxu0 %v11737_v22  ;;  %v11801_v22 = vpack.c.bf16 %v7018_v18, %v7017_v12  ;;  %v9665_v12 = vld [vmem:[%s14214_s14 + $0x68] sm:$0xff] }
 0x6bc   : > { %11742 = vmatprep.subr.bf16.mxu0 %v11741_v26 }
 0x6bf   : > { %11744 = vmatpush3.bf16.msra.mxu0 %v11741_v26  ;;  %v7107_v26 = vld [vmem:[#allocation18 + $0x48] sm:$0xff] }
 0x6c0   : > { %11746 = vmatprep.subr.bf16.mxu0 %v11745_v29  ;;  %v11805_v27 = vpack.c.bf16 %v7107_v26, %v7106_v25  ;;  %v9666_v26 = vld [vmem:[%s14214_s14 + $0x70] sm:$0xff] }
 0x6c3   : > { %11748 = vmatpush3.bf16.msra.mxu0 %v11745_v29  ;;  %v7109_v29 = vld [vmem:[#allocation18 + $0x58] sm:$0xff] }
 0x6c4   : > { %11750 = vmatprep.subr.bf16.mxu0 %v11749_v33  ;;  %v11809_v31 = vpack.c.bf16 %v7109_v29, %v7108_v28  ;;  %v9667_v29 = vld [vmem:[%s14214_s14 + $0x78] sm:$0xff] }
 0x6c6   : > { %11104 = vmatmul.mubr.f32.vlgmr.msra.gmra.mrb[10].mxu0 %v6359_v35 }
 0x6c7   : > { %11752 = vmatpush3.bf16.msra.mxu0 %v11749_v33  ;;  %11114 = vmatprep.mubr.msk.f32.mxu0 %vm4363_vm0, %v6460_v42  ;;  %v7198_v33 = vld [vmem:[#allocation18 + $0x68] sm:$0xff]  ;;  %v11821_v42 = vpack.c.bf16 %v9633_v40, %v9632_v39  ;;  %v9677_v39 = vld [vmem:[%s14214_s14 + $0x88] sm:$0xff]  ;;  %v8788_v40 = vld [vmem:[%s12703_s4 + $0x10] sm:$0xff] }
 0x6c8   : > { %11754 = vmatprep.subr.bf16.mxu0 %v11753_v37  ;;  %v11813_v34 = vpack.c.bf16 %v7198_v33, %v7197_v32  ;;  %v8786_v32 = vld [vmem:[%s12703_s4] sm:$0xff]  ;;  %v8787_v33 = vld [vmem:[%s12703_s4 + $0x8] sm:$0xff] }
 0x6cb   : > { %11756 = vmatpush3.bf16.msra.mxu0 %v11753_v37  ;;  %v7200_v37 = vld [vmem:[#allocation18 + $0x78] sm:$0xff] }
 0x6cc   : > { %11758 = vmatprep.subr.bf16.mxu0 %v11757_v43  ;;  %v11817_v35 = vpack.c.bf16 %v7200_v37, %v7199_v36  ;;  %v11849_v36 = vpack.c.bf16 %v9667_v29, %v9666_v26  ;;  %v9676_v37 = vld [vmem:[%s14214_s14 + $0x80] sm:$0xff] }
 0x6cd   : > { %v8299_v26 = vld [vmem:[#allocation10 + $0x12] sm:$0xff]  ;;  %v8302_v29 = vld [vmem:[#allocation10 + $0x2a] sm:$0xff] }
 0x6ce   : > { %11115 = vmatmul.mubr.msk.f32.vlgmr.msra.gmra.mrb[10].mxu0 %vm4363_vm0, %v6461_v48  ;;  %v7296_v48 = vld [vmem:[%s14214_s14 + $0x8] sm:$0xff] }
 0x6cf   : > { %11760 = vmatpush3.bf16.msra.mxu0 %v11757_v43  ;;  %11125 = vmatprep.mubr.msk.f32.mxu0 %vm4363_vm0, %v6454_v52  ;;  %v9634_v43 = vld [vmem:[%s14214_s14 + $0x30] sm:$0xff] }
 0x6d0   : > { %11762 = vmatprep.subr.bf16.mxu0 %v11761_v46  ;;  %v11825_v45 = vpack.c.bf16 %v9635_v44, %v9634_v43  ;;  %v8789_v43 = vld [vmem:[%s12703_s4 + $0x18] sm:$0xff]  ;;  %v8790_v44 = vld [vmem:[%s12703_s4 + $0x20] sm:$0xff] }
 0x6d3   : > { %11764 = vmatpush3.bf16.msra.mxu0 %v11761_v46  ;;  %v7295_v46 = vld [vmem:[%s14214_s14] sm:$0xff] }
 0x6d4   : > { %11766 = vmatprep.subr.bf16.mxu0 %v11765_v53  ;;  %v11829_v49 = vpack.c.bf16 %v7296_v48, %v7295_v46 }
 0x6d6   : > { %11126 = vmatmul.mubr.msk.f32.vlgmr.msra.gmra.mrb[10].mxu0 %vm4363_vm0, %v6455_v57 }
 0x6d7   : > { %11768 = vmatpush3.bf16.msra.mxu0 %v11765_v53  ;;  %11136 = vmatprep.mubr.msk.f32.mxu0 %vm4363_vm0, %v6629_v61 }
 0x6d8   : > { %11770 = vmatprep.subr.bf16.mxu0 %v11769_v56 }
 0x6db   : > { %11772 = vmatpush3.bf16.msra.mxu0 %v11769_v56 }
 0x6dc   : > { %11774 = vmatprep.subr.bf16.mxu0 %v11773_v62 }
 0x6de   : > { %11137 = vmatmul.mubr.msk.f32.vlgmr.msra.gmra.mrb[10].mxu0 %vm4363_vm0, %v6630_v4 }
 0x6df   : > { %11776 = vmatpush3.bf16.msra.mxu0 %v11773_v62  ;;  %11147 = vmatprep.mubr.msk.f32.mxu0 %vm4363_vm0, %v6719_v0  ;;  %v7297_v0 = vld [vmem:[%s14214_s14 + $0x10] sm:$0xff] }
 0x6e0   : > { %11778 = vmatprep.subr.bf16.mxu0 %v11777_v3 }
 0x6e3   : > { %11780 = vmatpush3.bf16.msra.mxu0 %v11777_v3 }
 0x6e4   : > { %11782 = vmatprep.subr.bf16.mxu0 %v11781_v6 }
 0x6e6   : > { %11148 = vmatmul.mubr.msk.f32.vlgmr.msra.gmra.mrb[10].mxu0 %vm4363_vm0, %v6720_v10  ;;  %v9652_v10 = vld [vmem:[%s14214_s14 + $0x40] sm:$0xff] }
 0x6e7   : > { %11784 = vmatpush3.bf16.msra.mxu0 %v11781_v6  ;;  %11158 = vmatprep.mubr.msk.f32.mxu0 %vm4363_vm0, %v6809_v11  ;;  %v7298_v6 = vld [vmem:[%s14214_s14 + $0x18] sm:$0xff]  ;;  %v9653_v11 = vld [vmem:[%s14214_s14 + $0x48] sm:$0xff] }
 0x6e8   : > { %11786 = vmatprep.subr.bf16.mxu0 %v11785_v9  ;;  %v11837_v14 = vpack.c.bf16 %v9653_v11, %v9652_v10  ;;  %v8029_v11 = vld [vmem:[#allocation10 + $0x1] sm:$0xff] }
 0x6eb   : > { %11788 = vmatpush3.bf16.msra.mxu0 %v11785_v9  ;;  %v11833_v9 = vpack.c.bf16 %v7298_v6, %v7297_v0 }
 0x6ee   : > { %11159 = vmatmul.mubr.msk.f32.vlgmr.msra.gmra.mrb[10].mxu0 %vm4363_vm0, %v6810_v13 }
 0x6ef   : > { %11377 = vmatprep.mubr.msk.f32.mxu0 %vm723_vm2, %v8786_v32  ;;  %v8304_v32 = vld [vmem:[#allocation10 + $0x3a] sm:$0xff] }
 0x7c1   : > { %v11160_v60 = vpop.f32.mrb[10].mxu0 }
 0x7c2   : > { %v6909_v50 = vadd.f32 %v11160_v60, %v9619_v47  ;;  %v6888_v15 = vpop.f32.mrb[11].mxu0  ;;  %v9655_v60 = vld [vmem:[%s14214_s14 + $0x58] sm:$0xff] }
 0x7c3   : > { %v6908_v19 = vadd.f32 %v9619_v47, %v6888_v15  ;;  %v9654_v47 = vld [vmem:[%s14214_s14 + $0x50] sm:$0xff] }
 0x7c4   : > { %v6913_v16 = vmul.f32 0.2, %v6909_v50  ;;  %vm6911_vm8 = vcmp.gt.f32.partialorder %v6909_v50, 0.0  ;;  %v11841_v15 = vpack.c.bf16 %v9655_v60, %v9654_v47  ;;  %v8036_v47 = vld [vmem:[#allocation10 + $0x39] sm:$0xff] }
 0x7c5   : > { %vm6910_vm9 = vcmp.gt.f32.partialorder %v6908_v19, 0.0  ;;  %v6912_v20 = vmul.f32 0.2, %v6908_v19  ;;  %v8020_v60 = vld [vmem:[#allocation10] sm:$0xff] }
 0x7c6   : > { %v6915_v23 = vsel %vm6911_vm8, %v6909_v50, %v6913_v16  ;;  %v9664_v16 = vld [vmem:[%s14214_s14 + $0x60] sm:$0xff] }
 0x7c7   : > { %v6914_v21 = vsel %vm6910_vm9, %v6908_v19, %v6912_v20  ;;  %v11845_v20 = vpack.c.bf16 %v9665_v12, %v9664_v16  ;;  %v8023_v16 = vld [vmem:[#allocation10 + $0x18] sm:$0xff]  ;;  %v8024_v12 = vld [vmem:[#allocation10 + $0x20] sm:$0xff] }
 0x7c8   : > { %11169 = vmatprep.mubr.msk.f32.mxu1 %vm4363_vm0, %v6914_v21 }
 0x7c9   : > { %11170 = vmatmul.mubr.msk.f32.vlgmr.msra.gmra.mrb[44].mxu1 %vm4363_vm0, %v6915_v23 }
 0x7ca   : > { %11800 = vmatpush3.bf16.msra.mxu1 %v11797_v41  ;;  %11180 = vmatprep.mubr.msk.f32.mxu1 %vm4363_vm0, %v6914_v21 }
 0x7cb   : > { %11802 = vmatprep.subr.bf16.mxu1 %v11801_v22 }
 0x7ce   : > { %11804 = vmatpush3.bf16.msra.mxu1 %v11801_v22 }
 0x7cf   : > { %11806 = vmatprep.subr.bf16.mxu1 %v11805_v27 }
 0x7d1   : > { %11181 = vmatmul.mubr.msk.f32.vlgmr.msra.gmra.mrb[46].mxu1 %vm4363_vm0, %v6915_v23 }
 0x7d2   : > { %11808 = vmatpush3.bf16.msra.mxu1 %v11805_v27  ;;  %11191 = vmatprep.mubr.msk.f32.mxu1 %vm4363_vm0, %v6914_v21 }
 0x7d3   : > { %11810 = vmatprep.subr.bf16.mxu1 %v11809_v31 }
 0x7d6   : > { %11812 = vmatpush3.bf16.msra.mxu1 %v11809_v31  ;;  %v8794_v31 = vld [vmem:[%s14218_s18] sm:$0x3f] }
 0x7d7   : > { %11814 = vmatprep.subr.bf16.mxu1 %v11813_v34  ;;  %11375 = vmatprep.subr.msk.mxu0 %vm775_vm1, %v8794_v31 }
 0x7d8   : > { %11376 = vmatpush3.msk.msra.mxu0 %vm775_vm1, %v8794_v31  ;;  %v8303_v31 = vld [vmem:[#allocation10 + $0x32] sm:$0xff] }
 0x7d9   : > { %11192 = vmatmul.mubr.msk.f32.vlgmr.msra.gmra.mrb[48].mxu1 %vm4363_vm0, %v6915_v23  ;;  %11378 = vmatmul.mubr.msk.f32.vlgmr.msra.gmra.mrb[12].mxu0 %vm723_vm2, %v8787_v33  ;;  %v8444_v33 = vld [vmem:[#allocation10 + $0x3] sm:$0xff] }
 0x7da   : > { %11816 = vmatpush3.bf16.msra.mxu1 %v11813_v34  ;;  %11202 = vmatprep.mubr.msk.f32.mxu1 %vm4363_vm0, %v6914_v21  ;;  %v8785_v34 = vld [vmem:[%s14217_s17] sm:$0xff] }
 0x7db   : > { %11818 = vmatprep.subr.bf16.mxu1 %v11817_v35  ;;  %11389 = vmatprep.subr.mxu0 %v8785_v34 }
 0x7dc   : > { %11390 = vmatpush3.msra.mxu0 %v8785_v34  ;;  %11380 = vmatprep.mubr.msk.f32.mxu0 %vm723_vm2, %v8788_v40  ;;  %v8445_v34 = vld [vmem:[#allocation10 + $0xb] sm:$0xff]  ;;  %v8450_v40 = vld [vmem:[#allocation10 + $0x33] sm:$0xff] }
 0x7dd   : > { %11381 = vmatmul.mubr.msk.f32.gmra.mrb[14].mxu0 %vm723_vm2, %v8789_v43  ;;  %v8591_v43 = vld [vmem:[#allocation10 + $0x4] sm:$0xff] }
 0x7de   : > { %11820 = vmatpush3.bf16.msra.mxu1 %v11817_v35  ;;  %11383 = vmatprep.mubr.msk.f32.mxu0 %vm723_vm2, %v8790_v44  ;;  %v8592_v44 = vld [vmem:[#allocation10 + $0xc] sm:$0xff] }
 0x7df   : > { %11822 = vmatprep.subr.bf16.mxu1 %v11821_v42 }
 0x7e1   : > { %11203 = vmatmul.mubr.msk.f32.vlgmr.msra.gmra.mrb[50].mxu1 %vm4363_vm0, %v6915_v23 }
 0x7e2   : > { %11824 = vmatpush3.bf16.msra.mxu1 %v11821_v42 }
 0x7e3   : > { %11826 = vmatprep.subr.bf16.mxu1 %v11825_v45 }
 0x7e6   : > { %11828 = vmatpush3.bf16.msra.mxu1 %v11825_v45  ;;  %v11853_v45 = vpack.c.bf16 %v9677_v39, %v9676_v37  ;;  %v8447_v37 = vld [vmem:[#allocation10 + $0x1b] sm:$0xff]  ;;  %v8449_v39 = vld [vmem:[#allocation10 + $0x2b] sm:$0xff] }
 0x7e7   : > { %11830 = vmatprep.subr.bf16.mxu1 %v11829_v49 }
 0x89c   : > { %v11171_v52 = vpop.f32.mrb[44].mxu1 }
 0x89d   : > { %v7007_v53 = vadd.f32 %v11171_v52, %v9620_v51  ;;  %v7001_v54 = vpop.f32.mrb[45].mxu1 }
 0x89e   : > { %v7002_v55 = vadd.f32 %v9620_v51, %v7001_v54  ;;  %v9679_v54 = vld [vmem:[%s14214_s14 + $0x98] sm:$0xff] }
 0x89f   : > { %7013 = vst [vmem:[#allocation8 + $0x22] ss:$4 sm:$0xff] %v7007_v53  ;;  %v9678_v53 = vld [vmem:[%s14214_s14 + $0x90] sm:$0xff] }
 0x8a0   : > { %7011 = vst [vmem:[#allocation8 + $0x2] ss:$4 sm:$0xff] %v7002_v55 }
 0x8a4   : > { %v11182_v56 = vpop.f32.mrb[46].mxu1 }
 0x8a5   : > { %v7098_v57 = vadd.f32 %v11182_v56, %v9620_v51  ;;  %v7092_v58 = vpop.f32.mrb[47].mxu1  ;;  %v11857_v56 = vpack.c.bf16 %v9679_v54, %v9678_v53  ;;  %v8791_v53 = vld [vmem:[%s12703_s4 + $0x28] sm:$0xff]  ;;  %v8792_v54 = vld [vmem:[%s12703_s4 + $0x30] sm:$0xff] }
 0x8a6   : > { %v7093_v59 = vadd.f32 %v9620_v51, %v7092_v58  ;;  %11384 = vmatmul.mubr.msk.f32.gmra.mrb[16].mxu0 %vm723_vm2, %v8791_v53 }
 0x8a7   : > { %7104 = vst [vmem:[#allocation8 + $0x23] ss:$4 sm:$0xff] %v7098_v57  ;;  %11386 = vmatprep.mubr.msk.f32.mxu0 %vm723_vm2, %v8792_v54 }
 0x8a8   : > { %7102 = vst [vmem:[#allocation8 + $0x3] ss:$4 sm:$0xff] %v7093_v59 }
 0x8ac   : > { %v11193_v61 = vpop.f32.mrb[48].mxu1 }
 0x8ad   : > { %v7189_v62 = vadd.f32 %v11193_v61, %v9620_v51  ;;  %v7183_v1 = vpop.f32.mrb[49].mxu1  ;;  %v8038_v61 = vld [vmem:[#allocation19 + $0x8] sm:$0xff] }
 0x8ae   : > { %v7184_v2 = vadd.f32 %v9620_v51, %v7183_v1 }
 0x8af   : > { %7195 = vst [vmem:[#allocation8 + $0x24] ss:$4 sm:$0xff] %v7189_v62 }
 0x8b0   : > { %7193 = vst [vmem:[#allocation8 + $0x4] ss:$4 sm:$0xff] %v7184_v2 }
 0x8b4   : > { %v11204_v3 = vpop.f32.mrb[50].mxu1 }
 0x8b5   : > { %v7280_v4 = vadd.f32 %v11204_v3, %v9620_v51  ;;  %v7274_v63 = vpop.f32.mrb[51].mxu1 }
 0x8b6   : > { %v7275_v5 = vadd.f32 %v9620_v51, %v7274_v63 }
 0x8b7   : > { %7286 = vst [vmem:[#allocation8 + $0x25] ss:$4 sm:$0xff] %v7280_v4 }
 0x8b8   : > { %7284 = vst [vmem:[#allocation8 + $0x5] ss:$4 sm:$0xff] %v7275_v5  ;;  %v8028_v5 = vld [vmem:[#allocation19] sm:$0xff] }
 0x8be   : > { %v7304_v30 = vld [vmem:[#allocation8 + $0x29] sm:$0xff]  ;;  %v7305_v38 = vld [vmem:[#allocation8 + $0x31] sm:$0xff]  ;;  %v7306_v41 = vld [vmem:[#allocation8 + $0x39] sm:$0xff] }
 0x8bf   : > { %v7299_v7 = vld [vmem:[#allocation8 + $0x1] sm:$0xff]  ;;  %v7300_v8 = vld [vmem:[#allocation8 + $0x9] sm:$0xff]  ;;  %v7301_v13 = vld [vmem:[#allocation8 + $0x11] sm:$0xff] }
 0x8c0   : > { %11213 = vmatprep.mubr.msk.f32.mxu1 %vm4363_vm0, %v7299_v7  ;;  %v7302_v17 = vld [vmem:[#allocation8 + $0x19] sm:$0xff]  ;;  %v7303_v24 = vld [vmem:[#allocation8 + $0x21] sm:$0xff]  ;;  %v7289_v18 = vld [vmem:[#allocation8 + $0x10] sm:$0xff] }
 0x8c1   : > { %11214 = vmatmul.mubr.msk.f32.vlgmr.msra.gmra.mrb[52].mxu1 %vm4363_vm0, %v7300_v8  ;;  %v7287_v50 = vld [vmem:[#allocation8] sm:$0xff]  ;;  %v7288_v19 = vld [vmem:[#allocation8 + $0x8] sm:$0xff]  ;;  %v7290_v21 = vld [vmem:[#allocation8 + $0x18] sm:$0xff] }
 0x8c2   : > { %11216 = vmatprep.mubr.msk.f32.mxu1 %vm4363_vm0, %v7301_v13  ;;  %11832 = vmatpush3.bf16.msra.mxu1 %v11829_v49  ;;  %v7291_v22 = vld [vmem:[#allocation8 + $0x20] sm:$0xff]  ;;  %v7292_v23 = vld [vmem:[#allocation8 + $0x28] sm:$0xff]  ;;  %v7293_v25 = vld [vmem:[#allocation8 + $0x30] sm:$0xff] }
 0x8c3   : > { %11834 = vmatprep.subr.bf16.mxu1 %v11833_v9  ;;  %v7294_v27 = vld [vmem:[#allocation8 + $0x38] sm:$0xff]  ;;  %v7570_v28 = vld [vmem:[#allocation8 + $0x2] sm:$0xff]  ;;  %v7571_v35 = vld [vmem:[#allocation8 + $0xa] sm:$0xff] }
 0x8c4   : > { %v7572_v42 = vld [vmem:[#allocation8 + $0x12] sm:$0xff]  ;;  %v7573_v46 = vld [vmem:[#allocation8 + $0x1a] sm:$0xff]  ;;  %v7574_v48 = vld [vmem:[#allocation8 + $0x22] sm:$0xff] }
 0x8c5   : > { %11217 = vmatmul.mubr.msk.f32.gmra.mrb[54].mxu1 %vm4363_vm0, %v7302_v17  ;;  %v7575_v49 = vld [vmem:[#allocation8 + $0x2a] sm:$0xff]  ;;  %v7576_v51 = vld [vmem:[#allocation8 + $0x32] sm:$0xff]  ;;  %v7577_v52 = vld [vmem:[#allocation8 + $0x3a] sm:$0xff] }
 0x8c6   : > { %11219 = vmatprep.mubr.msk.f32.mxu1 %vm4363_vm0, %v7303_v24  ;;  %11836 = vmatpush3.bf16.msra.mxu1 %v11833_v9  ;;  %v7720_v55 = vld [vmem:[#allocation8 + $0x3] sm:$0xff]  ;;  %v7721_v57 = vld [vmem:[#allocation8 + $0xb] sm:$0xff]  ;;  %v7722_v58 = vld [vmem:[#allocation8 + $0x13] sm:$0xff] }
 0x8c7   : > { %11838 = vmatprep.subr.bf16.mxu1 %v11837_v14  ;;  %v7723_v59 = vld [vmem:[#allocation8 + $0x1b] sm:$0xff]  ;;  %v7724_v62 = vld [vmem:[#allocation8 + $0x23] sm:$0xff]  ;;  %v7725_v1 = vld [vmem:[#allocation8 + $0x2b] sm:$0xff] }
 0x8c8   : > { %v7726_v2 = vld [vmem:[#allocation8 + $0x33] sm:$0xff]  ;;  %v7727_v3 = vld [vmem:[#allocation8 + $0x3b] sm:$0xff]  ;;  %v7870_v4 = vld [vmem:[#allocation8 + $0x4] sm:$0xff] }
 0x8c9   : > { %11220 = vmatmul.mubr.msk.f32.gmra.mrb[56].mxu1 %vm4363_vm0, %v7304_v30  ;;  %v7871_v63 = vld [vmem:[#allocation8 + $0xc] sm:$0xff]  ;;  %v7872_v0 = vld [vmem:[#allocation8 + $0x14] sm:$0xff]  ;;  %v7873_v6 = vld [vmem:[#allocation8 + $0x1c] sm:$0xff] }
 0x8ca   : > { %11222 = vmatprep.mubr.msk.f32.mxu1 %vm4363_vm0, %v7305_v38  ;;  %v7874_v7 = vld [vmem:[#allocation8 + $0x24] sm:$0xff]  ;;  %v7875_v8 = vld [vmem:[#allocation8 + $0x2c] sm:$0xff]  ;;  %v7876_v9 = vld [vmem:[#allocation8 + $0x34] sm:$0xff] }
 0x8cb   : > { %v7877_v10 = vld [vmem:[#allocation8 + $0x3c] sm:$0xff]  ;;  %v8030_v13 = vld [vmem:[#allocation10 + $0x9] sm:$0xff]  ;;  %v8031_v17 = vld [vmem:[#allocation10 + $0x11] sm:$0xff] }
 0x8cc   : > { %v8032_v24 = vld [vmem:[#allocation10 + $0x19] sm:$0xff]  ;;  %v8033_v30 = vld [vmem:[#allocation10 + $0x21] sm:$0xff]  ;;  %v8034_v38 = vld [vmem:[#allocation10 + $0x29] sm:$0xff] }
 0x8cd   : > { %11223 = vmatmul.mubr.msk.f32.gmra.mrb[58].mxu1 %vm4363_vm0, %v7306_v41  ;;  %v8035_v41 = vld [vmem:[#allocation10 + $0x31] sm:$0xff] }
 0x8ce   : > { %11233 = vmatprep.mubr.msk.f32.mxu1 %vm4363_vm0, %v7287_v50  ;;  %v8021_v50 = vld [vmem:[#allocation10 + $0x8] sm:$0xff] }
 0x8d1   : > { %11234 = vmatmul.mubr.msk.f32.vlgmr.msra.gmra.mrb[52].mxu1 %vm4363_vm0, %v7288_v19  ;;  %v8022_v19 = vld [vmem:[#allocation10 + $0x10] sm:$0xff] }
 0x8d2   : > { %11236 = vmatprep.mubr.msk.f32.mxu1 %vm4363_vm0, %v7289_v18  ;;  %11840 = vmatpush3.bf16.msra.mxu1 %v11837_v14  ;;  %v8306_v14 = vld [vmem:[#allocation19 + $0x10] sm:$0xff]  ;;  %v8025_v18 = vld [vmem:[#allocation10 + $0x28] sm:$0xff] }
 0x8d3   : > { %11842 = vmatprep.subr.bf16.mxu1 %v11841_v15 }
 0x8d5   : > { %11237 = vmatmul.mubr.msk.f32.gmra.mrb[54].mxu1 %vm4363_vm0, %v7290_v21  ;;  %v8027_v21 = vld [vmem:[#allocation10 + $0x38] sm:$0xff] }
 0x8d6   : > { %11239 = vmatprep.mubr.msk.f32.mxu1 %vm4363_vm0, %v7291_v22  ;;  %11844 = vmatpush3.bf16.msra.mxu1 %v11841_v15  ;;  %v8453_v15 = vld [vmem:[#allocation19 + $0x18] sm:$0xff] }
 0x8d7   : > { %11846 = vmatprep.subr.bf16.mxu1 %v11845_v20  ;;  %v8297_v22 = vld [vmem:[#allocation10 + $0x2] sm:$0xff] }
 0x8d9   : > { %11240 = vmatmul.mubr.msk.f32.gmra.mrb[56].mxu1 %vm4363_vm0, %v7292_v23  ;;  %v8298_v23 = vld [vmem:[#allocation10 + $0xa] sm:$0xff] }
 0x8da   : > { %11242 = vmatprep.mubr.msk.f32.mxu1 %vm4363_vm0, %v7293_v25  ;;  %v8600_v25 = vld [vmem:[#allocation19 + $0x20] sm:$0xff] }
 0x8dd   : > { %11243 = vmatmul.mubr.msk.f32.gmra.mrb[58].mxu1 %vm4363_vm0, %v7294_v27  ;;  %v8300_v27 = vld [vmem:[#allocation10 + $0x1a] sm:$0xff] }
 0x8de   : > { %11253 = vmatprep.mubr.msk.f32.mxu1 %vm4363_vm0, %v7570_v28  ;;  %v8301_v28 = vld [vmem:[#allocation10 + $0x22] sm:$0xff] }
 0x8e1   : > { %11254 = vmatmul.mubr.msk.f32.vlgmr.msra.gmra.mrb[52].mxu1 %vm4363_vm0, %v7571_v35  ;;  %v8448_v35 = vld [vmem:[#allocation10 + $0x23] sm:$0xff] }
 0x8e2   : > { %11256 = vmatprep.mubr.msk.f32.mxu1 %vm4363_vm0, %v7572_v42  ;;  %11848 = vmatpush3.bf16.msra.mxu1 %v11845_v20  ;;  %v8026_v20 = vld [vmem:[#allocation10 + $0x30] sm:$0xff]  ;;  %v8451_v42 = vld [vmem:[#allocation10 + $0x3b] sm:$0xff] }
 0x8e3   : > { %11850 = vmatprep.subr.bf16.mxu1 %v11849_v36 }
 0x8e5   : > { %11257 = vmatmul.mubr.msk.f32.gmra.mrb[54].mxu1 %vm4363_vm0, %v7573_v46  ;;  %v8594_v46 = vld [vmem:[#allocation10 + $0x1c] sm:$0xff] }
 0x8e6   : > { %11259 = vmatprep.mubr.msk.f32.mxu1 %vm4363_vm0, %v7574_v48  ;;  %11852 = vmatpush3.bf16.msra.mxu1 %v11849_v36  ;;  %v8446_v36 = vld [vmem:[#allocation10 + $0x13] sm:$0xff]  ;;  %v8595_v48 = vld [vmem:[#allocation10 + $0x24] sm:$0xff] }
 0x8e7   : > { %11854 = vmatprep.subr.bf16.mxu1 %v11853_v45 }
 0x8e9   : > { %11260 = vmatmul.mubr.msk.f32.gmra.mrb[56].mxu1 %vm4363_vm0, %v7575_v49  ;;  %v8596_v49 = vld [vmem:[#allocation10 + $0x2c] sm:$0xff] }
 0x8ea   : > { %11262 = vmatprep.mubr.msk.f32.mxu1 %vm4363_vm0, %v7576_v51  ;;  %v8597_v51 = vld [vmem:[#allocation10 + $0x34] sm:$0xff] }
 0x8ed   : > { %11263 = vmatmul.mubr.msk.f32.gmra.mrb[58].mxu1 %vm4363_vm0, %v7577_v52  ;;  %v8598_v52 = vld [vmem:[#allocation10 + $0x3c] sm:$0xff] }
 0x8ee   : > { %11273 = vmatprep.mubr.msk.f32.mxu1 %vm4363_vm0, %v7720_v55  ;;  %v8793_v55 = vld [vmem:[%s12703_s4 + $0x38] sm:$0xff] }
 0x8ef   : > { %11387 = vmatmul.mubr.msk.f32.gmra.mrb[18].mxu0 %vm723_vm2, %v8793_v55 }
 0x8f1   : > { %11274 = vmatmul.mubr.msk.f32.vlgmr.msra.gmra.mrb[52].mxu1 %vm4363_vm0, %v7721_v57 }
 0x8f2   : > { %11276 = vmatprep.mubr.msk.f32.mxu1 %vm4363_vm0, %v7722_v58  ;;  %11856 = vmatpush3.bf16.msra.mxu1 %v11853_v45  ;;  %v8593_v45 = vld [vmem:[#allocation10 + $0x14] sm:$0xff] }
 0x8f3   : > { %11858 = vmatprep.subr.bf16.mxu1 %v11857_v56 }
 0x8f5   : > { %11277 = vmatmul.mubr.msk.f32.gmra.mrb[54].mxu1 %vm4363_vm0, %v7723_v59 }
 0x8f6   : > { %11279 = vmatprep.mubr.msk.f32.mxu1 %vm4363_vm0, %v7724_v62  ;;  %11860 = vmatpush3.bf16.msra.mxu1 %v11857_v56  ;;  %v9728_v56 = vld [vmem:[%s14216_s16] ss:$0 sm:$0xff] }
 0x8f7   : > { %11305 = vmatprep.subr.mxu1 %v8038_v61 }
 0x8f9   : > { %11280 = vmatmul.mubr.msk.f32.gmra.mrb[56].mxu1 %vm4363_vm0, %v7725_v1 }
 0x8fa   : > { %11282 = vmatprep.mubr.msk.f32.mxu1 %vm4363_vm0, %v7726_v2 }
 0x8fd   : > { %11283 = vmatmul.mubr.msk.f32.gmra.mrb[58].mxu1 %vm4363_vm0, %v7727_v3 }
 0x8fe   : > { %11293 = vmatprep.mubr.msk.f32.mxu1 %vm4363_vm0, %v7870_v4 }
 0x901   : > { %11294 = vmatmul.mubr.msk.f32.vlgmr.msra.gmra.mrb[52].mxu1 %vm4363_vm0, %v7871_v63 }
 0x902   : > { %11296 = vmatprep.mubr.msk.f32.mxu1 %vm4363_vm0, %v7872_v0  ;;  %11306 = vmatpush3.msra.mxu1 %v8038_v61 }
 0x903   : > { %11319 = vmatprep.subr.mxu1 %v8028_v5 }
 0x905   : > { %11297 = vmatmul.mubr.msk.f32.gmra.mrb[54].mxu1 %vm4363_vm0, %v7873_v6 }
 0x906   : > { %11299 = vmatprep.mubr.msk.f32.mxu1 %vm4363_vm0, %v7874_v7 }
 0x909   : > { %11300 = vmatmul.mubr.msk.f32.gmra.mrb[56].mxu1 %vm4363_vm0, %v7875_v8 }
 0x90a   : > { %11302 = vmatprep.mubr.msk.f32.mxu1 %vm4363_vm0, %v7876_v9 }
 0x90d   : > { %11303 = vmatmul.mubr.msk.f32.gmra.mrb[58].mxu1 %vm4363_vm0, %v7877_v10 }
 0x90e   : > { %11307 = vmatprep.mubr.msk.f32.mxu1 %vm2984_vm5, %v8029_v11 }
 0x911   : > { %11308 = vmatmul.mubr.msk.f32.vlgmr.msra.gmra.mrb[52].mxu1 %vm2984_vm5, %v8030_v13 }
 0x912   : > { %11310 = vmatprep.mubr.msk.f32.mxu1 %vm2984_vm5, %v8031_v17  ;;  %11320 = vmatpush3.msra.mxu1 %v8028_v5 }
 0x913   : > { %11333 = vmatprep.subr.mxu1 %v8306_v14 }
 0x915   : > { %11311 = vmatmul.mubr.msk.f32.gmra.mrb[54].mxu1 %vm2984_vm5, %v8032_v24 }
 0x916   : > { %11313 = vmatprep.mubr.msk.f32.mxu1 %vm2984_vm5, %v8033_v30 }
 0x919   : > { %11314 = vmatmul.mubr.msk.f32.gmra.mrb[56].mxu1 %vm2984_vm5, %v8034_v38 }
 0x91a   : > { %11316 = vmatprep.mubr.msk.f32.mxu1 %vm2984_vm5, %v8035_v41 }
 0x91d   : > { %11317 = vmatmul.mubr.msk.f32.gmra.mrb[58].mxu1 %vm2984_vm5, %v8036_v47 }
 0x91e   : > { %11321 = vmatprep.mubr.msk.f32.mxu1 %vm2984_vm5, %v8020_v60 }
 0x921   : > { %11322 = vmatmul.mubr.msk.f32.vlgmr.msra.gmra.mrb[52].mxu1 %vm2984_vm5, %v8021_v50 }
 0x922   : > { %11324 = vmatprep.mubr.msk.f32.mxu1 %vm2984_vm5, %v8022_v19  ;;  %11334 = vmatpush3.msra.mxu1 %v8306_v14 }
 0x923   : > { %11347 = vmatprep.subr.mxu1 %v8453_v15 }
 0x925   : > { %11325 = vmatmul.mubr.msk.f32.gmra.mrb[54].mxu1 %vm2984_vm5, %v8023_v16 }
 0x926   : > { %11327 = vmatprep.mubr.msk.f32.mxu1 %vm2984_vm5, %v8024_v12 }
 0x929   : > { %11328 = vmatmul.mubr.msk.f32.gmra.mrb[56].mxu1 %vm2984_vm5, %v8025_v18  ;;  %v9746_v18 = vld [vmem:[%s14259_s6] ss:$0 sm:$0xff] }
 0x92a   : > { %11330 = vmatprep.mubr.msk.f32.mxu1 %vm2984_vm5, %v8026_v20 }
 0x92d   : > { %11331 = vmatmul.mubr.msk.f32.gmra.mrb[58].mxu1 %vm2984_vm5, %v8027_v21 }
 0x92e   : > { %11335 = vmatprep.mubr.msk.f32.mxu1 %vm2984_vm5, %v8297_v22 }
 0x931   : > { %11336 = vmatmul.mubr.msk.f32.vlgmr.msra.gmra.mrb[52].mxu1 %vm2984_vm5, %v8298_v23 }
 0x932   : > { %11338 = vmatprep.mubr.msk.f32.mxu1 %vm2984_vm5, %v8299_v26  ;;  %11348 = vmatpush3.msra.mxu1 %v8453_v15 }
 0x933   : > { %11361 = vmatprep.subr.mxu1 %v8600_v25 }
 0x935   : > { %11339 = vmatmul.mubr.msk.f32.gmra.mrb[54].mxu1 %vm2984_vm5, %v8300_v27 }
 0x936   : > { %11341 = vmatprep.mubr.msk.f32.mxu1 %vm2984_vm5, %v8301_v28 }
 0x939   : > { %11342 = vmatmul.mubr.msk.f32.gmra.mrb[56].mxu1 %vm2984_vm5, %v8302_v29 }
 0x93a   : > { %11344 = vmatprep.mubr.msk.f32.mxu1 %vm2984_vm5, %v8303_v31 }
 0x93d   : > { %11345 = vmatmul.mubr.msk.f32.gmra.mrb[58].mxu1 %vm2984_vm5, %v8304_v32 }
 0x93e   : > { %11349 = vmatprep.mubr.msk.f32.mxu1 %vm2984_vm5, %v8444_v33 }
 0x941   : > { %11350 = vmatmul.mubr.msk.f32.vlgmr.msra.gmra.mrb[52].mxu1 %vm2984_vm5, %v8445_v34 }
 0x942   : > { %11352 = vmatprep.mubr.msk.f32.mxu1 %vm2984_vm5, %v8446_v36  ;;  %11362 = vmatpush3.msra.mxu1 %v8600_v25 }
 0x945   : > { %11353 = vmatmul.mubr.msk.f32.gmra.mrb[54].mxu1 %vm2984_vm5, %v8447_v37 }
 0x946   : > { %11355 = vmatprep.mubr.msk.f32.mxu1 %vm2984_vm5, %v8448_v35 }
 0x949   : > { %11356 = vmatmul.mubr.msk.f32.gmra.mrb[56].mxu1 %vm2984_vm5, %v8449_v39 }
 0x94a   : > { %11358 = vmatprep.mubr.msk.f32.mxu1 %vm2984_vm5, %v8450_v40 }
 0x94d   : > { %11359 = vmatmul.mubr.msk.f32.gmra.mrb[58].mxu1 %vm2984_vm5, %v8451_v42 }
 0x94e   : > { %11363 = vmatprep.mubr.msk.f32.mxu1 %vm2984_vm5, %v8591_v43 }
 0x951   : > { %11364 = vmatmul.mubr.msk.f32.vlgmr.msra.gmra.mrb[52].mxu1 %vm2984_vm5, %v8592_v44 }
 0x952   : > { %11366 = vmatprep.mubr.msk.f32.mxu1 %vm2984_vm5, %v8593_v45 }
 0x955   : > { %11367 = vmatmul.mubr.msk.f32.gmra.mrb[54].mxu1 %vm2984_vm5, %v8594_v46 }
 0x956   : > { %11369 = vmatprep.mubr.msk.f32.mxu1 %vm2984_vm5, %v8595_v48 }
 0x959   : > { %11370 = vmatmul.mubr.msk.f32.gmra.mrb[56].mxu1 %vm2984_vm5, %v8596_v49 }
 0x95a   : > { %11372 = vmatprep.mubr.msk.f32.mxu1 %vm2984_vm5, %v8597_v51 }
 0x95d   : > { %11373 = vmatmul.mubr.msk.f32.gmra.mrb[58].mxu1 %vm2984_vm5, %v8598_v52 }
 0xa24   : > { %v11365_v57 = vpop.f32.mrb[52].mxu1 }
 0xa25   : > { %v8754_v58 = vadd.f32 %v11365_v57, %v9728_v56  ;;  %v8691_v59 = vpop.f32.mrb[53].mxu1 }
 0xa26   : > { %v8753_v61 = vadd.f32 %v9728_v56, %v8691_v59 }
 0xa27   : > { %v8770_v62 = vmul.f32 0.2, %v8754_v58  ;;  %vm8762_vm1 = vcmp.gt.f32.partialorder %v8754_v58, 0.0 }
 0xa28   : > { %vm8761_vm10 = vcmp.gt.f32.partialorder %v8753_v61, 0.0  ;;  %v8769_v1 = vmul.f32 0.2, %v8753_v61  ;;  %v11368_v2 = vpop.f32.mrb[54].mxu1 }
 0xa29   : > { %v8756_v3 = vadd.f32 %v11368_v2, %v9728_v56  ;;  %v8701_v4 = vpop.f32.mrb[55].mxu1  ;;  %v8778_v0 = vsel %vm8762_vm1, %v8754_v58, %v8770_v62 }
 0xa2a   : > { %v8755_v63 = vadd.f32 %v9728_v56, %v8701_v4  ;;  %v8777_v5 = vsel %vm8761_vm10, %v8753_v61, %v8769_v1 }
 0xa2b   : > { %v8772_v6 = vmul.f32 0.2, %v8756_v3  ;;  %11391 = vmatprep.mubr.msk.f32.mxu0 %vm2984_vm5, %v8777_v5  ;;  %vm8764_vm2 = vcmp.gt.f32.partialorder %v8756_v3, 0.0 }
 0xa2c   : > { %vm8763_vm11 = vcmp.gt.f32.partialorder %v8755_v63, 0.0  ;;  %v8771_v7 = vmul.f32 0.2, %v8755_v63  ;;  %v11371_v8 = vpop.f32.mrb[56].mxu1  ;;  %11392 = vmatmul.mubr.msk.f32.vlgmr.msra.gmra.mrb[12].mxu0 %vm2984_vm5, %v8778_v0 }
 0xa2d   : > { %v8758_v9 = vadd.f32 %v11371_v8, %v9728_v56  ;;  %v8711_v10 = vpop.f32.mrb[57].mxu1  ;;  %v8780_v17 = vsel %vm8764_vm2, %v8756_v3, %v8772_v6 }
 0xa2e   : > { %v8757_v11 = vadd.f32 %v9728_v56, %v8711_v10  ;;  %v8779_v13 = vsel %vm8763_vm11, %v8755_v63, %v8771_v7 }
 0xa2f   : > { %v8774_v14 = vmul.f32 0.2, %v8758_v9  ;;  %11394 = vmatprep.mubr.msk.f32.mxu0 %vm2984_vm5, %v8779_v13  ;;  %vm8766_vm12 = vcmp.gt.f32.partialorder %v8758_v9, 0.0 }
 0xa30   : > { %vm8765_vm13 = vcmp.gt.f32.partialorder %v8757_v11, 0.0  ;;  %v8773_v24 = vmul.f32 0.2, %v8757_v11  ;;  %v11374_v30 = vpop.f32.mrb[58].mxu1  ;;  %11395 = vmatmul.mubr.msk.f32.gmra.mrb[14].mxu0 %vm2984_vm5, %v8780_v17 }
 0xa31   : > { %v8760_v38 = vadd.f32 %v11374_v30, %v9728_v56  ;;  %v8721_v41 = vpop.f32.mrb[59].mxu1  ;;  %v8782_v15 = vsel %vm8766_vm12, %v8758_v9, %v8774_v14 }
 0xa32   : > { %v8759_v47 = vadd.f32 %v9728_v56, %v8721_v41  ;;  %v8781_v60 = vsel %vm8765_vm13, %v8757_v11, %v8773_v24 }
 0xa33   : > { %v8776_v50 = vmul.f32 0.2, %v8760_v38  ;;  %11397 = vmatprep.mubr.msk.f32.mxu0 %vm2984_vm5, %v8781_v60  ;;  %vm8768_vm14 = vcmp.gt.f32.partialorder %v8760_v38, 0.0 }
 0xa34   : > { %vm8767_vm15 = vcmp.gt.f32.partialorder %v8759_v47, 0.0  ;;  %v8775_v19 = vmul.f32 0.2, %v8759_v47  ;;  %11398 = vmatmul.mubr.msk.f32.gmra.mrb[16].mxu0 %vm2984_vm5, %v8782_v15 }
 0xa35   : > { %v8784_v12 = vsel %vm8768_vm14, %v8760_v38, %v8776_v50 }
 0xa36   : > { %v8783_v16 = vsel %vm8767_vm15, %v8759_v47, %v8775_v19 }
 0xa37   : > { %11400 = vmatprep.mubr.msk.f32.mxu0 %vm2984_vm5, %v8783_v16 }
 0xa38   : > { %11401 = vmatmul.mubr.msk.f32.gmra.mrb[18].mxu0 %vm2984_vm5, %v8784_v12  ;;  %vm9079_vm5 = vcmask 31744  }
 0xaff   : > { %v11393_v20 = vpop.f32.mrb[12].mxu0 }
 0xb00   : > { %v9064_v21 = vadd.f32 %v11393_v20, %v9746_v18  ;;  %v9017_v22 = vpop.f32.mrb[13].mxu0 }
 0xb01   : > { %v9063_v23 = vadd.f32 %v9746_v18, %v9017_v22 }
 0xb02   : > { %12175 = vtanh.f32 %v9064_v21 }
 0xb03   : > { %12177 = vtanh.f32 %v9063_v23  ;;  %v11396_v25 = vpop.f32.mrb[14].mxu0 }
 0xb04   : > { %v9066_v26 = vadd.f32 %v11396_v25, %v9746_v18  ;;  %v9027_v27 = vpop.f32.mrb[15].mxu0 }
 0xb05   : > { %v9065_v28 = vadd.f32 %v9746_v18, %v9027_v27 }
 0xb06   : > { %12179 = vtanh.f32 %v9066_v26 }
 0xb07   : > { %12181 = vtanh.f32 %v9065_v28  ;;  %v11399_v29 = vpop.f32.mrb[16].mxu0 }
 0xb08   : > { %v9068_v31 = vadd.f32 %v11399_v29, %v9746_v18  ;;  %v9037_v32 = vpop.f32.mrb[17].mxu0 }
 0xb09   : > { %v9067_v33 = vadd.f32 %v9746_v18, %v9037_v32 }
 0xb0a   : > { %12183 = vtanh.f32 %v9068_v31 }
 0xb0b   : > { %12185 = vtanh.f32 %v9067_v33  ;;  %v11402_v34 = vpop.f32.mrb[18].mxu0 }
 0xb0c   : > { %v12176_v36 = vpop.eup %12175  ;;  %v9070_v37 = vadd.f32 %v11402_v34, %v9746_v18  ;;  %v9047_v35 = vpop.f32.mrb[19].mxu0 }
 0xb0d   : > { %v12178_v39 = vpop.eup %12177  ;;  %9081 = vst.msk [vmem:[%s711_s27 + $0x8] sm:$0xff] %vm9079_vm5, %v12176_v36  ;;  %v9069_v40 = vadd.f32 %v9746_v18, %v9047_v35 }
 0xb0e   : > { %9080 = vst.msk [vmem:[%s711_s27] sm:$0xff] %vm9079_vm5, %v12178_v39  ;;  %12187 = vtanh.f32 %v9070_v37 }
 0xb0f   : > { %12189 = vtanh.f32 %v9069_v40 }
 0xb10   : > { %v12180_v42 = vpop.eup %12179 }
 0xb11   : > { %v12182_v43 = vpop.eup %12181  ;;  %9083 = vst.msk [vmem:[%s711_s27 + $0x18] sm:$0xff] %vm9079_vm5, %v12180_v42 }
 0xb12   : > { %9082 = vst.msk [vmem:[%s711_s27 + $0x10] sm:$0xff] %vm9079_vm5, %v12182_v43 }
 0xb14   : > { %v12184_v44 = vpop.eup %12183 }
 0xb15   : > { %v12186_v45 = vpop.eup %12185  ;;  %9085 = vst.msk [vmem:[%s711_s27 + $0x28] sm:$0xff] %vm9079_vm5, %v12184_v44 }
 0xb16   : > { %9084 = vst.msk [vmem:[%s711_s27 + $0x20] sm:$0xff] %vm9079_vm5, %v12186_v45 }
 0xb18   : > { %v12188_v46 = vpop.eup %12187 }
 0xb19   : > { %v12190_v48 = vpop.eup %12189  ;;  %9087 = vst.msk [vmem:[%s711_s27 + $0x38] sm:$0xff] %vm9079_vm5, %v12188_v46 }
 0xb1a   : > { %9086 = vst.msk [vmem:[%s711_s27 + $0x30] sm:$0xff] %vm9079_vm5, %v12190_v48 }
 0xb1b PF: > { %s14261_s24 = sld [smem:[#allocation25_spill]] }
 0xb21   : > { %s34_s1 = sadd.s32 1, %s14261_s24  }
 0xb22   : > { %p31_p9 = scmp.ge.s32.totalorder %s34_s1, 4  }
 0xb24   :  { %33 = sbr.rel (!%p31_p9) target bundleno = 13 (0xd), region = 241 }
 0xb2b   :  { %9109 = vsyncpa [#allocation12], 1 }
 0xb2c   :  { %9111 = vsyncpa [#allocation12 + $0x1], 1 }
 0xb2d   :  { %9112 = vsyncpa [#allocation14], 1 }
 0xb2e   :  { %9113 = vsyncpa [#allocation17], 1 }
 0xb2f   :  { %9114 = vsyncpa [#allocation20], 1 }

</bundles_post_ra>
